<compile_context>
chip_gen: v6e
topology: v6e:2x2x1
jax: 0.10.0
libtpu: 0.0.40
codegen_flags: <defaults>
</compile_context>

<pallas_src>
import functools

import jax
import jax.numpy as jnp
from jax import lax
from jax.experimental import pallas as pl
from jax.experimental.pallas import tpu as pltpu


# ----------------------------------------------------------------------------
# Fused kernel: backbone conv3x3+ReLU -> VMEM feature -> ASPP (sum of dilated
# 3x3 convs), one batch element per grid step.
# ----------------------------------------------------------------------------
def _deeplab_kernel(xpad_ref, wbb_ref, bbb_ref, wcls_ref, bcls_ref,
                    o_ref, fpad_ref, *, H, W, Cf, K, P):
    # xpad_ref: (1, H+2, (W+2)*Cin)      row-flattened, 1-pixel zero halo
    # wbb_ref : (3, (W+2)*Cin, W*Cf)     banded backbone weights (one per row tap)
    # bbb_ref : (1, W*Cf)                backbone bias tiled over W
    # wcls_ref: (2P+1, (W+2P)*Cf, W*K)   banded ASPP weights (all branches folded)
    # bcls_ref: (1, W*K)                 pre-summed ASPP biases tiled over W
    # o_ref   : (1, H, W*K)              lane-dense logits (W*K == 128 here)
    # fpad_ref: VMEM scratch (H+2P, (W+2P)*Cf) — feature map + dilation halo

    xp = xpad_ref[0]                                      # (H+2, (W+2)*Cin)

    # ---- backbone: 3x3 conv (pad=1) as 3 banded matmuls + bias + ReLU ----
    acc_f = jnp.dot(xp[0:H, :], wbb_ref[0],
                    preferred_element_type=jnp.float32)
    for kh in range(1, 3):                                # static row-tap loop
        acc_f += jnp.dot(xp[kh:kh + H, :], wbb_ref[kh],
                         preferred_element_type=jnp.float32)
    feat = jnp.maximum(acc_f + bbb_ref[0], 0.0)           # (H, W*Cf) lane-dense

    # ---- keep the feature map in VMEM; zero-fill the dilation halo in-kernel ----
    # Full-buffer zero is ~72 KiB of unmasked vreg stores (negligible) and stays
    # correct under any megacore grid split; interior is then overwritten.
    fpad_ref[...] = jnp.zeros_like(fpad_ref)
    fpad_ref[P:P + H, P * Cf:(P + W) * Cf] = feat         # lane-aligned interior

    # ---- ASPP: all 4 branches x 9 taps folded into 2P+1 banded matmuls ----
    acc = jnp.dot(fpad_ref[0:H, :], wcls_ref[0],
                  preferred_element_type=jnp.float32)
    for r in range(1, 2 * P + 1):                         # static row-shift loop
        acc += jnp.dot(fpad_ref[r:r + H, :], wcls_ref[r],
                       preferred_element_type=jnp.float32)
    o_ref[0] = (acc + bcls_ref[0]).astype(o_ref.dtype)    # unmasked 128-lane store


# ----------------------------------------------------------------------------
# Parameter-only preprocessing: dense 3x3 weights -> banded (block-Toeplitz)
# matrices acting on the row-flattened (row, width*channels) layout.
# ----------------------------------------------------------------------------
def _build_banded_bb(w_bb, W):
    # w_bb: (3, 3, Cin, Cf) -> (3, (W+2)*Cin, W*Cf)
    Cin, Cf = w_bb.shape[2], w_bb.shape[3]
    rows = jnp.zeros((3, W + 2, Cin, W, Cf), jnp.float32)
    for kh in range(3):
        for kw in range(3):
            shift = jnp.eye(W + 2, W, k=-kw, dtype=jnp.float32)  # [p,w]=1 iff p==w+kw
            rows = rows.at[kh].add(
                jnp.einsum('pw,ck->pcwk', shift, w_bb[kh, kw]))
    return rows.reshape(3, (W + 2) * Cin, W * Cf)


def _build_banded_cls(w_cls, dilations, P, W):
    # w_cls: (n_branch, 3, 3, Cf, K) -> (2P+1, (W+2P)*Cf, W*K)
    # Taps from different branches that share the same row offset are pre-summed
    # into the same banded matrix, so the kernel runs only 2P+1 matmuls total.
    Cf, K = w_cls.shape[3], w_cls.shape[4]
    Wp = W + 2 * P
    rows = jnp.zeros((2 * P + 1, Wp, Cf, W, K), jnp.float32)
    for bi, d in enumerate(dilations):
        for kh in range(3):
            r = P - d + d * kh
            for kw in range(3):
                cbase = P - d + d * kw
                shift = jnp.eye(Wp, W, k=-cbase, dtype=jnp.float32)
                rows = rows.at[r].add(
                    jnp.einsum('pw,ck->pcwk', shift, w_cls[bi, kh, kw]))
    return rows.reshape(2 * P + 1, Wp * Cf, W * K)


# ----------------------------------------------------------------------------
# Wrapper
# ----------------------------------------------------------------------------
def deeplab_v2_forward(x_nchw, params, *, dilations=(1, 2, 3, 4)):
    """x_nchw: (N, Cin, H, W) float32 -> logits (N, K, H, W) float32."""
    w_bb, b_bb = params["w_bb"], params["b_bb"]
    w_cls, b_cls = params["w_cls"], params["b_cls"]
    N, Cin, H, W = x_nchw.shape
    Cf = w_bb.shape[-1]
    K = w_cls.shape[-1]
    P = max(dilations)

    # Parameter-only preprocessing (weights/biases re-laid out once).
    wbb_band = _build_banded_bb(w_bb, W)                       # (3, (W+2)*Cin, W*Cf)
    wcls_band = _build_banded_cls(w_cls, dilations, P, W)      # (2P+1, (W+2P)*Cf, W*K)
    bbb_flat = jnp.tile(b_bb.reshape(-1), W).reshape(1, W * Cf)
    bcls_flat = jnp.tile(jnp.sum(b_cls, axis=0), W).reshape(1, W * K)

    # NCHW -> row-flattened NHWC with a 1-pixel halo (tiny ~3 KiB pad; the big
    # feature-map pad is done in-kernel in VMEM).
    x = jnp.transpose(x_nchw, (0, 2, 3, 1))
    xpad = jnp.pad(x, ((0, 0), (1, 1), (1, 1), (0, 0)))
    xpad_flat = xpad.reshape(N, H + 2, (W + 2) * Cin)

    kernel = functools.partial(_deeplab_kernel, H=H, W=W, Cf=Cf, K=K, P=P)
    out_flat = pl.pallas_call(
        kernel,
        out_shape=jax.ShapeDtypeStruct((N, H, W * K), jnp.float32),
        grid=(N,),
        in_specs=[
            pl.BlockSpec((1, H + 2, (W + 2) * Cin), lambda n: (n, 0, 0)),
            pl.BlockSpec(wbb_band.shape, lambda n: (0, 0, 0)),
            pl.BlockSpec(bbb_flat.shape, lambda n: (0, 0)),
            pl.BlockSpec(wcls_band.shape, lambda n: (0, 0, 0)),
            pl.BlockSpec(bcls_flat.shape, lambda n: (0, 0)),
        ],
        out_specs=pl.BlockSpec((1, H, W * K), lambda n: (n, 0, 0)),
        scratch_shapes=[pltpu.VMEM((H + 2 * P, (W + 2 * P) * Cf), jnp.float32)],
        compiler_params=pltpu.CompilerParams(
            dimension_semantics=("parallel",),
            vmem_limit_bytes=64 << 20,  # ample headroom; actual use ≈ 9 MiB
        ),
    )(xpad_flat, wbb_band, bbb_flat, wcls_band, bcls_flat)

    # (N, H, W*K) -> NCHW to match the PyTorch output convention.
    out = out_flat.reshape(N, H, W, K)
    return jnp.transpose(out, (0, 3, 1, 2))


# ----------------------------------------------------------------------------
# Pure-JAX reference (lax.conv_general_dilated) for correctness checking
# ----------------------------------------------------------------------------
def _reference(x_nchw, params, dilations=(1, 2, 3, 4)):
    x = jnp.transpose(x_nchw, (0, 2, 3, 1))
    dn = ("NHWC", "HWIO", "NHWC")
    feat = lax.conv_general_dilated(x, params["w_bb"], (1, 1), "SAME",
                                    dimension_numbers=dn) + params["b_bb"][0]
    feat = jnp.maximum(feat, 0.0)
    out = None
    for bi, d in enumerate(dilations):
        y = lax.conv_general_dilated(feat, params["w_cls"][bi], (1, 1),
                                     [(d, d), (d, d)], rhs_dilation=(d, d),
                                     dimension_numbers=dn) + params["b_cls"][bi]
        out = y if out is None else out + y
    return jnp.transpose(out, (0, 3, 1, 2))


# ----------------------------------------------------------------------------
# Main
# ----------------------------------------------------------------------------
if __name__ == "__main__":
    N, Cin, H, W = 2, 4, 16, 16      # input
    Cf = 32                          # backbone feature channels
    K = 8                            # num classes (W*K = 128 -> lane-dense output)
    dilations = (1, 2, 3, 4)         # scaled-down DeepLabV2 dilation series

    key = jax.random.PRNGKey(0)
    k0, k1, k2, k3, k4 = jax.random.split(key, 5)

    params = {
        "w_bb":  0.1 * jax.random.normal(k1, (3, 3, Cin, Cf), jnp.float32),
        "b_bb":  0.1 * jax.random.normal(k2, (1, Cf), jnp.float32),
        "w_cls": 0.1 * jax.random.normal(k3, (len(dilations), 3, 3, Cf, K),
                                         jnp.float32),
        "b_cls": 0.1 * jax.random.normal(k4, (len(dilations), K), jnp.float32),
    }
    x = jax.random.normal(k0, (N, Cin, H, W), jnp.float32)

    out = deeplab_v2_forward(x, params, dilations=dilations)
    out = jax.block_until_ready(out)

    ref = jax.block_until_ready(_reference(x, params, dilations))
    assert out.shape == (N, K, H, W)
    assert jnp.max(jnp.abs(out - ref)) < 1e-3, "mismatch vs. reference conv"

    print("KERNEL_OK")
</pallas_src>

<mosaic_0001>
module attributes {stable_mosaic.version = 11 : i64} {
  func.func @_deeplab_kernel(%arg0: i32, %arg1: memref<1x18x72xf32, #tpu.memory_space<vmem>>, %arg2: memref<3x72x512xf32, #tpu.memory_space<vmem>>, %arg3: memref<1x512xf32, #tpu.memory_space<vmem>>, %arg4: memref<9x768x128xf32, #tpu.memory_space<vmem>>, %arg5: memref<1x128xf32, #tpu.memory_space<vmem>>, %arg6: memref<1x16x128xf32, #tpu.memory_space<vmem>>, %arg7: memref<24x768xf32, #tpu.memory_space<vmem>>) attributes {dimension_semantics = [#tpu.dimension_semantics<parallel>], iteration_bounds = array<i64: 2>, scalar_prefetch = 0 : i64, scratch_operands = 1 : i64, tpu.core_type = #tpu.core_type<tc>, window_params = [{transform_indices = @transform_0, window_bounds = array<i64: 1, 18, 72>}, {pipeline_mode = #tpu.pipeline_mode<synchronous>, transform_indices = @transform_1, window_bounds = array<i64: 3, 72, 512>}, {pipeline_mode = #tpu.pipeline_mode<synchronous>, transform_indices = @transform_2, window_bounds = array<i64: 1, 512>}, {pipeline_mode = #tpu.pipeline_mode<synchronous>, transform_indices = @transform_3, window_bounds = array<i64: 9, 768, 128>}, {pipeline_mode = #tpu.pipeline_mode<synchronous>, transform_indices = @transform_4, window_bounds = array<i64: 1, 128>}, {transform_indices = @transform_5, window_bounds = array<i64: 1, 16, 128>}]} {
    %c0 = arith.constant 0 : index
    %c0_0 = arith.constant 0 : index
    %c0_1 = arith.constant 0 : index
    %0 = vector.load %arg1[%c0, %c0_0, %c0_1] : memref<1x18x72xf32, #tpu.memory_space<vmem>>, vector<1x18x72xf32>
    %1 = vector.shape_cast %0 : vector<1x18x72xf32> to vector<18x72xf32>
    %2 = vector.extract_strided_slice %1 {offsets = [0, 0], sizes = [16, 72], strides = [1, 1]} : vector<18x72xf32> to vector<16x72xf32>
    %c0_2 = arith.constant 0 : index
    %c0_3 = arith.constant 0 : index
    %c0_4 = arith.constant 0 : index
    %3 = vector.load %arg2[%c0_2, %c0_3, %c0_4] : memref<3x72x512xf32, #tpu.memory_space<vmem>>, vector<1x72x512xf32>
    %4 = vector.shape_cast %3 : vector<1x72x512xf32> to vector<72x512xf32>
    %cst = arith.constant dense<0.000000e+00> : vector<16x512xf32>
    %5 = tpu.matmul %2, %4, %cst {dimension_numbers = #tpu.dot_dimension_numbers<[1], [0], [0], [1], [0, 0, 1, 1], [], []>} : vector<16x72xf32>, vector<72x512xf32>, vector<16x512xf32> -> vector<16x512xf32>
    %6 = vector.extract_strided_slice %1 {offsets = [1, 0], sizes = [16, 72], strides = [1, 1]} : vector<18x72xf32> to vector<16x72xf32>
    %c1 = arith.constant 1 : index
    %c0_5 = arith.constant 0 : index
    %c0_6 = arith.constant 0 : index
    %7 = vector.load %arg2[%c1, %c0_5, %c0_6] : memref<3x72x512xf32, #tpu.memory_space<vmem>>, vector<1x72x512xf32>
    %8 = vector.shape_cast %7 : vector<1x72x512xf32> to vector<72x512xf32>
    %cst_7 = arith.constant dense<0.000000e+00> : vector<16x512xf32>
    %9 = tpu.matmul %6, %8, %cst_7 {dimension_numbers = #tpu.dot_dimension_numbers<[1], [0], [0], [1], [0, 0, 1, 1], [], []>} : vector<16x72xf32>, vector<72x512xf32>, vector<16x512xf32> -> vector<16x512xf32>
    %10 = arith.addf %5, %9 : vector<16x512xf32>
    %11 = vector.extract_strided_slice %1 {offsets = [2, 0], sizes = [16, 72], strides = [1, 1]} : vector<18x72xf32> to vector<16x72xf32>
    %c2 = arith.constant 2 : index
    %c0_8 = arith.constant 0 : index
    %c0_9 = arith.constant 0 : index
    %12 = vector.load %arg2[%c2, %c0_8, %c0_9] : memref<3x72x512xf32, #tpu.memory_space<vmem>>, vector<1x72x512xf32>
    %13 = vector.shape_cast %12 : vector<1x72x512xf32> to vector<72x512xf32>
    %cst_10 = arith.constant dense<0.000000e+00> : vector<16x512xf32>
    %14 = tpu.matmul %11, %13, %cst_10 {dimension_numbers = #tpu.dot_dimension_numbers<[1], [0], [0], [1], [0, 0, 1, 1], [], []>} : vector<16x72xf32>, vector<72x512xf32>, vector<16x512xf32> -> vector<16x512xf32>
    %15 = arith.addf %10, %14 : vector<16x512xf32>
    %c0_11 = arith.constant 0 : index
    %c0_12 = arith.constant 0 : index
    %16 = vector.load %arg3[%c0_11, %c0_12] : memref<1x512xf32, #tpu.memory_space<vmem>>, vector<1x512xf32>
    %17 = vector.shape_cast %16 : vector<1x512xf32> to vector<512xf32>
    %18 = vector.shape_cast %17 : vector<512xf32> to vector<1x512xf32>
    %19 = vector.broadcast %18 : vector<1x512xf32> to vector<16x512xf32>
    %20 = arith.addf %15, %19 : vector<16x512xf32>
    %cst_13 = arith.constant 0.000000e+00 : f32
    %21 = vector.broadcast %cst_13 : f32 to vector<16x512xf32>
    %22 = arith.maximumf %20, %21 : vector<16x512xf32>
    %cst_14 = arith.constant 0.000000e+00 : f32
    %23 = vector.broadcast %cst_14 : f32 to vector<24x768xf32>
    %c0_15 = arith.constant 0 : index
    %c0_16 = arith.constant 0 : index
    %24 = vector.load %arg7[%c0_15, %c0_16] : memref<24x768xf32, #tpu.memory_space<vmem>>, vector<24x768xf32>
    tpu.vector_store %arg7[%c0_15, %c0_16], %23 {strides = array<i32>} : memref<24x768xf32, #tpu.memory_space<vmem>>, vector<24x768xf32>,
    %c4 = arith.constant 4 : index
    %c128 = arith.constant 128 : index
    %25 = vector.load %arg7[%c4, %c128] : memref<24x768xf32, #tpu.memory_space<vmem>>, vector<16x512xf32>
    tpu.vector_store %arg7[%c4, %c128], %22 {strides = array<i32>} : memref<24x768xf32, #tpu.memory_space<vmem>>, vector<16x512xf32>,
    %c0_17 = arith.constant 0 : index
    %c0_18 = arith.constant 0 : index
    %26 = vector.load %arg7[%c0_17, %c0_18] : memref<24x768xf32, #tpu.memory_space<vmem>>, vector<16x768xf32>
    %c0_19 = arith.constant 0 : index
    %c0_20 = arith.constant 0 : index
    %c0_21 = arith.constant 0 : index
    %27 = vector.load %arg4[%c0_19, %c0_20, %c0_21] : memref<9x768x128xf32, #tpu.memory_space<vmem>>, vector<1x768x128xf32>
    %28 = vector.shape_cast %27 : vector<1x768x128xf32> to vector<768x128xf32>
    %cst_22 = arith.constant dense<0.000000e+00> : vector<16x128xf32>
    %29 = tpu.matmul %26, %28, %cst_22 {dimension_numbers = #tpu.dot_dimension_numbers<[1], [0], [0], [1], [0, 0, 1, 1], [], []>} : vector<16x768xf32>, vector<768x128xf32>, vector<16x128xf32> -> vector<16x128xf32>
    %c1_23 = arith.constant 1 : index
    %c0_24 = arith.constant 0 : index
    %30 = vector.load %arg7[%c1_23, %c0_24] : memref<24x768xf32, #tpu.memory_space<vmem>>, vector<16x768xf32>
    %c1_25 = arith.constant 1 : index
    %c0_26 = arith.constant 0 : index
    %c0_27 = arith.constant 0 : index
    %31 = vector.load %arg4[%c1_25, %c0_26, %c0_27] : memref<9x768x128xf32, #tpu.memory_space<vmem>>, vector<1x768x128xf32>
    %32 = vector.shape_cast %31 : vector<1x768x128xf32> to vector<768x128xf32>
    %cst_28 = arith.constant dense<0.000000e+00> : vector<16x128xf32>
    %33 = tpu.matmul %30, %32, %cst_28 {dimension_numbers = #tpu.dot_dimension_numbers<[1], [0], [0], [1], [0, 0, 1, 1], [], []>} : vector<16x768xf32>, vector<768x128xf32>, vector<16x128xf32> -> vector<16x128xf32>
    %34 = arith.addf %29, %33 : vector<16x128xf32>
    %c2_29 = arith.constant 2 : index
    %c0_30 = arith.constant 0 : index
    %35 = vector.load %arg7[%c2_29, %c0_30] : memref<24x768xf32, #tpu.memory_space<vmem>>, vector<16x768xf32>
    %c2_31 = arith.constant 2 : index
    %c0_32 = arith.constant 0 : index
    %c0_33 = arith.constant 0 : index
    %36 = vector.load %arg4[%c2_31, %c0_32, %c0_33] : memref<9x768x128xf32, #tpu.memory_space<vmem>>, vector<1x768x128xf32>
    %37 = vector.shape_cast %36 : vector<1x768x128xf32> to vector<768x128xf32>
    %cst_34 = arith.constant dense<0.000000e+00> : vector<16x128xf32>
    %38 = tpu.matmul %35, %37, %cst_34 {dimension_numbers = #tpu.dot_dimension_numbers<[1], [0], [0], [1], [0, 0, 1, 1], [], []>} : vector<16x768xf32>, vector<768x128xf32>, vector<16x128xf32> -> vector<16x128xf32>
    %39 = arith.addf %34, %38 : vector<16x128xf32>
    %c3 = arith.constant 3 : index
    %c0_35 = arith.constant 0 : index
    %40 = vector.load %arg7[%c3, %c0_35] : memref<24x768xf32, #tpu.memory_space<vmem>>, vector<16x768xf32>
    %c3_36 = arith.constant 3 : index
    %c0_37 = arith.constant 0 : index
    %c0_38 = arith.constant 0 : index
    %41 = vector.load %arg4[%c3_36, %c0_37, %c0_38] : memref<9x768x128xf32, #tpu.memory_space<vmem>>, vector<1x768x128xf32>
    %42 = vector.shape_cast %41 : vector<1x768x128xf32> to vector<768x128xf32>
    %cst_39 = arith.constant dense<0.000000e+00> : vector<16x128xf32>
    %43 = tpu.matmul %40, %42, %cst_39 {dimension_numbers = #tpu.dot_dimension_numbers<[1], [0], [0], [1], [0, 0, 1, 1], [], []>} : vector<16x768xf32>, vector<768x128xf32>, vector<16x128xf32> -> vector<16x128xf32>
    %44 = arith.addf %39, %43 : vector<16x128xf32>
    %c4_40 = arith.constant 4 : index
    %c0_41 = arith.constant 0 : index
    %45 = vector.load %arg7[%c4_40, %c0_41] : memref<24x768xf32, #tpu.memory_space<vmem>>, vector<16x768xf32>
    %c4_42 = arith.constant 4 : index
    %c0_43 = arith.constant 0 : index
    %c0_44 = arith.constant 0 : index
    %46 = vector.load %arg4[%c4_42, %c0_43, %c0_44] : memref<9x768x128xf32, #tpu.memory_space<vmem>>, vector<1x768x128xf32>
    %47 = vector.shape_cast %46 : vector<1x768x128xf32> to vector<768x128xf32>
    %cst_45 = arith.constant dense<0.000000e+00> : vector<16x128xf32>
    %48 = tpu.matmul %45, %47, %cst_45 {dimension_numbers = #tpu.dot_dimension_numbers<[1], [0], [0], [1], [0, 0, 1, 1], [], []>} : vector<16x768xf32>, vector<768x128xf32>, vector<16x128xf32> -> vector<16x128xf32>
    %49 = arith.addf %44, %48 : vector<16x128xf32>
    %c5 = arith.constant 5 : index
    %c0_46 = arith.constant 0 : index
    %50 = vector.load %arg7[%c5, %c0_46] : memref<24x768xf32, #tpu.memory_space<vmem>>, vector<16x768xf32>
    %c5_47 = arith.constant 5 : index
    %c0_48 = arith.constant 0 : index
    %c0_49 = arith.constant 0 : index
    %51 = vector.load %arg4[%c5_47, %c0_48, %c0_49] : memref<9x768x128xf32, #tpu.memory_space<vmem>>, vector<1x768x128xf32>
    %52 = vector.shape_cast %51 : vector<1x768x128xf32> to vector<768x128xf32>
    %cst_50 = arith.constant dense<0.000000e+00> : vector<16x128xf32>
    %53 = tpu.matmul %50, %52, %cst_50 {dimension_numbers = #tpu.dot_dimension_numbers<[1], [0], [0], [1], [0, 0, 1, 1], [], []>} : vector<16x768xf32>, vector<768x128xf32>, vector<16x128xf32> -> vector<16x128xf32>
    %54 = arith.addf %49, %53 : vector<16x128xf32>
    %c6 = arith.constant 6 : index
    %c0_51 = arith.constant 0 : index
    %55 = vector.load %arg7[%c6, %c0_51] : memref<24x768xf32, #tpu.memory_space<vmem>>, vector<16x768xf32>
    %c6_52 = arith.constant 6 : index
    %c0_53 = arith.constant 0 : index
    %c0_54 = arith.constant 0 : index
    %56 = vector.load %arg4[%c6_52, %c0_53, %c0_54] : memref<9x768x128xf32, #tpu.memory_space<vmem>>, vector<1x768x128xf32>
    %57 = vector.shape_cast %56 : vector<1x768x128xf32> to vector<768x128xf32>
    %cst_55 = arith.constant dense<0.000000e+00> : vector<16x128xf32>
    %58 = tpu.matmul %55, %57, %cst_55 {dimension_numbers = #tpu.dot_dimension_numbers<[1], [0], [0], [1], [0, 0, 1, 1], [], []>} : vector<16x768xf32>, vector<768x128xf32>, vector<16x128xf32> -> vector<16x128xf32>
    %59 = arith.addf %54, %58 : vector<16x128xf32>
    %c7 = arith.constant 7 : index
    %c0_56 = arith.constant 0 : index
    %60 = vector.load %arg7[%c7, %c0_56] : memref<24x768xf32, #tpu.memory_space<vmem>>, vector<16x768xf32>
    %c7_57 = arith.constant 7 : index
    %c0_58 = arith.constant 0 : index
    %c0_59 = arith.constant 0 : index
    %61 = vector.load %arg4[%c7_57, %c0_58, %c0_59] : memref<9x768x128xf32, #tpu.memory_space<vmem>>, vector<1x768x128xf32>
    %62 = vector.shape_cast %61 : vector<1x768x128xf32> to vector<768x128xf32>
    %cst_60 = arith.constant dense<0.000000e+00> : vector<16x128xf32>
    %63 = tpu.matmul %60, %62, %cst_60 {dimension_numbers = #tpu.dot_dimension_numbers<[1], [0], [0], [1], [0, 0, 1, 1], [], []>} : vector<16x768xf32>, vector<768x128xf32>, vector<16x128xf32> -> vector<16x128xf32>
    %64 = arith.addf %59, %63 : vector<16x128xf32>
    %c8 = arith.constant 8 : index
    %c0_61 = arith.constant 0 : index
    %65 = vector.load %arg7[%c8, %c0_61] : memref<24x768xf32, #tpu.memory_space<vmem>>, vector<16x768xf32>
    %c8_62 = arith.constant 8 : index
    %c0_63 = arith.constant 0 : index
    %c0_64 = arith.constant 0 : index
    %66 = vector.load %arg4[%c8_62, %c0_63, %c0_64] : memref<9x768x128xf32, #tpu.memory_space<vmem>>, vector<1x768x128xf32>
    %67 = vector.shape_cast %66 : vector<1x768x128xf32> to vector<768x128xf32>
    %cst_65 = arith.constant dense<0.000000e+00> : vector<16x128xf32>
    %68 = tpu.matmul %65, %67, %cst_65 {dimension_numbers = #tpu.dot_dimension_numbers<[1], [0], [0], [1], [0, 0, 1, 1], [], []>} : vector<16x768xf32>, vector<768x128xf32>, vector<16x128xf32> -> vector<16x128xf32>
    %69 = arith.addf %64, %68 : vector<16x128xf32>
    %c0_66 = arith.constant 0 : index
    %c0_67 = arith.constant 0 : index
    %70 = vector.load %arg5[%c0_66, %c0_67] : memref<1x128xf32, #tpu.memory_space<vmem>>, vector<1x128xf32>
    %71 = vector.shape_cast %70 : vector<1x128xf32> to vector<128xf32>
    %72 = vector.shape_cast %71 : vector<128xf32> to vector<1x128xf32>
    %73 = vector.broadcast %72 : vector<1x128xf32> to vector<16x128xf32>
    %74 = arith.addf %69, %73 : vector<16x128xf32>
    %c0_68 = arith.constant 0 : index
    %c0_69 = arith.constant 0 : index
    %c0_70 = arith.constant 0 : index
    %75 = vector.load %arg6[%c0_68, %c0_69, %c0_70] : memref<1x16x128xf32, #tpu.memory_space<vmem>>, vector<1x16x128xf32>
    %76 = vector.shape_cast %75 : vector<1x16x128xf32> to vector<16x128xf32>
    %77 = vector.shape_cast %74 : vector<16x128xf32> to vector<1x16x128xf32>
    tpu.vector_store %arg6[%c0_68, %c0_69, %c0_70], %77 {strides = array<i32>} : memref<1x16x128xf32, #tpu.memory_space<vmem>>, vector<1x16x128xf32>,
    return
  }
  func.func @transform_0(%arg0: i32) -> (i32, i32, i32) {
    %c0_i32 = arith.constant 0 : i32
    %c0_i32_0 = arith.constant 0 : i32
    %c0_i32_1 = arith.constant 0 : i32
    return %arg0, %c0_i32, %c0_i32_0 : i32, i32, i32
  }
  func.func @transform_1(%arg0: i32) -> (i32, i32, i32) {
    %c0_i32 = arith.constant 0 : i32
    %c0_i32_0 = arith.constant 0 : i32
    %c0_i32_1 = arith.constant 0 : i32
    %c0_i32_2 = arith.constant 0 : i32
    return %c0_i32, %c0_i32_0, %c0_i32_1 : i32, i32, i32
  }
  func.func @transform_2(%arg0: i32) -> (i32, i32) {
    %c0_i32 = arith.constant 0 : i32
    %c0_i32_0 = arith.constant 0 : i32
    %c0_i32_1 = arith.constant 0 : i32
    return %c0_i32, %c0_i32_0 : i32, i32
  }
  func.func @transform_3(%arg0: i32) -> (i32, i32, i32) {
    %c0_i32 = arith.constant 0 : i32
    %c0_i32_0 = arith.constant 0 : i32
    %c0_i32_1 = arith.constant 0 : i32
    %c0_i32_2 = arith.constant 0 : i32
    return %c0_i32, %c0_i32_0, %c0_i32_1 : i32, i32, i32
  }
  func.func @transform_4(%arg0: i32) -> (i32, i32) {
    %c0_i32 = arith.constant 0 : i32
    %c0_i32_0 = arith.constant 0 : i32
    %c0_i32_1 = arith.constant 0 : i32
    return %c0_i32, %c0_i32_0 : i32, i32
  }
  func.func @transform_5(%arg0: i32) -> (i32, i32, i32) {
    %c0_i32 = arith.constant 0 : i32
    %c0_i32_0 = arith.constant 0 : i32
    %c0_i32_1 = arith.constant 0 : i32
    return %arg0, %c0_i32, %c0_i32_0 : i32, i32, i32
  }
}

</mosaic_0001>

<bundles_post_ra>
// kernel: tpu_custom_call.1
= control target key start
LH: loop header
LB: loop body
LE: loop exit
PB: predicated region body
PF: predicated region fallthrough
CT: control target
= control target key end

     0   :  { %10 = vsyncpa [#allocation4], 0  ;;  %s6491_s0 = inlined_call_operand.vmem [shape: f32[2,18,72], index: 0, kind: input, shape index: {}]   ;;  %s6492_s1 = inlined_call_operand.hbm [shape: f32[3,72,512], index: 1, kind: input, shape index: {}]   ;;  %s6493_s2 = inlined_call_operand.hbm [shape: f32[1,512], index: 2, kind: input, shape index: {}]   ;;  %s6494_s3 = inlined_call_operand.hbm [shape: f32[9,768,128], index: 3, kind: input, shape index: {}]   ;;  %s6495_s4 = inlined_call_operand.hbm [shape: f32[1,128], index: 4, kind: input, shape index: {}]   ;;  %s6496_s5 = inlined_call_operand.hbm [shape: f32[2,16,128], index: 5, kind: output, shape index: {}]  }
   0x1   :  { %11 = vsyncpa [#allocation7], 0 }
   0x2   :  { %12 = vsyncpa [#allocation10], 0 }
   0x3   :  { %13 = vsyncpa [#allocation5], 0 }
   0x4   :  { %15 = vsyncpa [#allocation5 + $0x1], 0  ;;  %s5908_s18 = smov 0   ;;  %s5910_s19 = smov 0  }
   0x5   :  { %s5912_s20 = smov 0   ;;  %s5914_s21 = smov 0  }
   0x6 LB: > { %s5929_s22 = sadd.s32 4294967295, %s5864_s21   ;;  %s4525_s23 = sadd.s32 4294967294, %s5864_s21   ;;  %s5864_s21 = sphi %s5914_s21, %s6526_s21   ;;  %s5860_s20 = sphi %s5912_s20, %s6525_s20   ;;  %s5856_s19 = sphi %s5910_s19, %s6524_s19   ;;  %s5852_s18 = sphi %s5908_s18, %s6523_s18  }
   0x7   : > { %s5933_s24 = sadd.s32 1, %s5864_s21   ;;  %s138_s25 = sadd.s32 1, %s5860_s20 }
   0x8   : > { %s135_s26 = ssub.s32 %s5864_s21, %s5933_s24  ;;  %p148_p0 = scmp.ne.s32.totalorder %s5860_s20, %s5856_s19 }
   0x9   : > { %p136_p1 = scmp.eq.s32.totalorder %s135_s26, 0  ;;  %p149_p2 = scmp.eq.s32.totalorder %s5929_s22, 1 }
   0xa   : > { %p154_p3 = scmp.ne.s32.totalorder %s5856_s19, %s5852_s18  ;;  %p155_p4 = scmp.eq.s32.totalorder %s4525_s23, 1 }
   0xb   : > { %s5944_s27 = scalar_select %p136_p1, %s5860_s20, %s138_s25  }
   0xc   : > { %p5946_p5 = por %p149_p2, %p148_p0  ;;  %p5950_p6 = por %p155_p4, %p154_p3 }
   0xd   : > { %p4526_p7 = scmp.ge.s32.totalorder %s5864_s21, 1  ;;  %p162_p8 = scmp.lt.s32.totalorder %s5864_s21, 3 }
   0xe   : > { %s6500_s28 = scalar_select %p5946_p5, 1, 0 }
   0xf   : > { %s6501_s29 = scalar_select %p5950_p6, 1, 0 }
  0x10   : > { %p6497_p9 = scmp.eq.s32.totalorder %s5929_s22, 0  ;;  %p5957_p10 = pnand %p4526_p7, %p162_p8 }
  0x11   : > { %s5866_s6 = smov [#allocation6]   ;;  %s5867_s8 = smov [#allocation3]  }
  0x12   : > { %s6502_s30 = scalar_select %p5957_p10, 1, 0 }
  0x13   : > { %s188_s7 = sshll.u32 %s5866_s6, 4  ;;  %p5603_p11 = pneg %p5957_p10  ;;  %s189_s7 = int_to_ptr.vmem [resolvable:$true] %s188_s7 }
  0x14   : > { %s174_s9 = sshll.u32 %s5867_s8, 4  ;;  %s5868_s11 = smov [#allocation8]   ;;  %s175_s9 = int_to_ptr.vmem [resolvable:$true] %s174_s9 }
  0x15   : > { %p5965_p12 = pnand %p6497_p9, %p5603_p11  ;;  %s198_s12 = sshll.u32 %s5868_s11, 4  ;;  %s199_s12 = int_to_ptr.vmem [resolvable:$true] %s198_s12 }
  0x16   : > { %s5699_s13 = scalar_lea.vmem %s189_s7, 64  ;;  %p5707_p3 = scmp.lt.s32.totalorder %s189_s7, %s189_s7 }
  0x17   : > { %p5690_p13 = pneg %p5965_p12  ;;  %p5700_p0 = scmp.ne.s32.totalorder %s189_s7, %s5699_s13 }
  0x18   : > { %p5708_p4 = scmp.lt.s32.totalorder %s5699_s13, %s5699_s13 }
  0x19   : > { %p5702_p1 = pnand %p5700_p0, %p5690_p13 }
  0x1a   : > { %p5709_p7 = por %p5708_p4, %p5707_p3 }
  0x1b   : > { %p5703_p2 = pneg %p5702_p1 }
  0x1d   : > { %p5710_p8 = pnand %p5709_p7, %p5703_p2 }
  0x1f   : > { %5713 = shalt.err (!%p5710_p8)
}
  0x20   : > { %5609 = dma.hbm_to_vmem [thread:$0]  (!%p5965_p12), %s6493_s2, 64, %s189_s7, [#allocation7]  }
  0x21   : > { %s5725_s16 = scalar_lea.vmem %s175_s9, 13824  ;;  %p5733_p0 = scmp.lt.s32.totalorder %s175_s9, %s175_s9 }
  0x22   : > { %p5726_p11 = scmp.ne.s32.totalorder %s175_s9, %s5725_s16  ;;  %p5734_p1 = scmp.lt.s32.totalorder %s5725_s16, %s5725_s16 }
  0x24   : > { %p5728_p9 = pnand %p5726_p11, %p5690_p13  ;;  %p5735_p5 = por %p5734_p1, %p5733_p0 }
  0x26   : > { %p5729_p6 = pneg %p5728_p9 }
  0x28   : > { %p5736_p10 = pnand %p5735_p5, %p5729_p6 }
  0x2a   : > { %5739 = shalt.err (!%p5736_p10)
}
  0x2b   : > { %s5869_s17 = smov 512   ;;  %s5870_s23 = smov 32  }
  0x2c   : > { %5606 = dma.hbm_to_vmem [thread:$0]  (!%p5965_p12), %s6492_s1, 13824, %s175_s9, [#allocation4], %s5869_s17, %s5869_s17, %s5870_s23  }
  0x2d   : > { %s5751_s6 = scalar_lea.vmem %s199_s12, 110592  ;;  %p5759_p4 = scmp.lt.s32.totalorder %s199_s12, %s199_s12 }
  0x2e   : > { %p5752_p2 = scmp.ne.s32.totalorder %s199_s12, %s5751_s6  ;;  %p5760_p7 = scmp.lt.s32.totalorder %s5751_s6, %s5751_s6 }
  0x30   : > { %p5754_p9 = pnand %p5752_p2, %p5690_p13  ;;  %p5761_p5 = por %p5760_p7, %p5759_p4 }
  0x32   : > { %p5755_p3 = pneg %p5754_p9 }
  0x34   : > { %p5762_p6 = pnand %p5761_p5, %p5755_p3 }
  0x36   : > { %5765 = shalt.err (!%p5762_p6)
}
  0x37   : > { %s5871_s7 = smov 128   ;;  %s5872_s8 = smov 8  }
  0x38   : > { %5612 = dma.hbm_to_vmem [thread:$0]  (!%p5965_p12), %s6494_s3, 110592, %s199_s12, [#allocation7], %s5871_s7, %s5871_s7, %s5872_s8  }
  0x39   : > { %s5873_s9 = smov [#allocation9]  }
  0x3a   : > { %s212_s14 = sshll.u32 %s5873_s9, 4  ;;  %s213_s14 = int_to_ptr.vmem [resolvable:$true] %s212_s14 }
  0x3b   : > { %s5777_s15 = scalar_lea.vmem %s213_s14, 16  ;;  %s5784_s16 = scalar_lea.vmem %s213_s14, 32 }
  0x3c   : > { %p5778_p10 = scmp.ne.s32.totalorder %s213_s14, %s5777_s15  ;;  %p5785_p0 = scmp.lt.s32.totalorder %s213_s14, %s213_s14 }
  0x3d   : > { %p5786_p1 = scmp.lt.s32.totalorder %s5784_s16, %s5777_s15 }
  0x3e   : > { %p5780_p8 = pnand %p5778_p10, %p5690_p13 }
  0x3f   : > { %p5787_p2 = por %p5786_p1, %p5785_p0 }
  0x40   : > { %p5781_p11 = pneg %p5780_p8 }
  0x42   : > { %p5788_p9 = pnand %p5787_p2, %p5781_p11 }
  0x44   : > { %5791 = shalt.err (!%p5788_p9)
}
  0x45   : > { %5615 = dma.hbm_to_vmem [thread:$0]  (!%p5965_p12), %s6495_s4, 16, %s213_s14, [#allocation10]  }
  0x46   : > { %p6504_p3 = scmp.ne.s32.totalorder %s6502_s30, 0 }
  0x48   : > { %233 = sbr.rel (%p6504_p3) target bundleno = 1030 (0x406), region = 40 }
  0x4d   : > { %p6505_p4 = scmp.eq.s32.totalorder %s5929_s22, 0 }
  0x4f   : > { %5835 = dma.done.wait (%p6505_p4), [#allocation4], 13824   ;;  %p6506_p13 = pmov %p6505_p4 }
  0x50   : > { %p6507_p7 = pmov %p6505_p4 }
  0x51   : > { %5837 = vsyncadd (%p6506_p13), [#allocation4], 4294953472 }
  0x52   : > { %5839 = dma.done.wait (%p6507_p7), [#allocation7], 110656   ;;  %p6508_p5 = pmov %p6505_p4 }
  0x53   : > { %p6509_p6 = pmov %p6505_p4 }
  0x54   : > { %5841 = vsyncadd (%p6508_p5), [#allocation7], 4294856640 }
  0x55   : > { %5843 = dma.done.wait (%p6509_p6), [#allocation10], 16   ;;  %p6510_p12 = pmov %p6505_p4 }
  0x56   : > { %v5874_v0 = vmov 0.0   ;;  %p273_p10 = scmp.lt.s32.totalorder %s5929_s22, 1  ;;  %v351_v1 = vld [vmem:[#allocation3 + $0x228] sm:$0xff]  ;;  %v350_v3 = vld [vmem:[#allocation3 + $0x220] sm:$0xff]  ;;  %vm357_vm0 = vcmask 1046528   ;;  %vm363_vm1 = vcmask 588800  }
  0x57   : > { %5845 = vsyncadd (%p6510_p12), [#allocation10], 4294967280  ;;  %432 = vmatprep.mubr.f32.mxu1 %v5874_v0  ;;  %927 = vst [vmem:[#allocation2] sm:$0xff] %v5874_v0  ;;  %590 = vmatprep.mubr.f32.mxu0 %v5874_v0  ;;  %v314_v2 = vld [vmem:[#allocation3 + $0x108] sm:$0xff]  ;;  %v313_v4 = vld [vmem:[#allocation3 + $0x100] sm:$0xff]  ;;  %vm717_vm2 = vcmask 1045504  }
  0x58   : > { %928 = vst [vmem:[#allocation2 + $0x38] sm:$0xff] %v5874_v0  ;;  %929 = vst [vmem:[#allocation2 + $0x78] sm:$0xff] %v5874_v0  ;;  %382 = vmatprep.subr.mxu1 %v351_v1  ;;  %540 = vmatprep.subr.mxu0 %v314_v2  ;;  %v347_v5 = vld [vmem:[#allocation3 + $0x208] sm:$0xff]  ;;  %s6033_s30 = scalar_select %p273_p10, %s5929_s22, 1  ;;  %v346_v7 = vld [vmem:[#allocation3 + $0x200] sm:$0xff]  ;;  %vm953_vm3 = vcmask 1043456  }
  0x59   : > { %930 = vst [vmem:[#allocation2 + $0x58] sm:$0xff] %v5874_v0  ;;  %931 = vst [vmem:[#allocation2 + $0x20] sm:$0xff] %v5874_v0  ;;  %v310_v6 = vld [vmem:[#allocation3 + $0xe8] sm:$0xff]  ;;  %383 = vmatpush1.msra.mxu1 %v350_v3  ;;  %541 = vmatpush1.msra.mxu0 %v313_v4  ;;  %v309_v8 = vld [vmem:[#allocation3 + $0xe0] sm:$0xff]  ;;  %vm2234_vm4 = vcmask 1044480   ;;  %vm3015_vm5 = vcmask 1042432  }
  0x5a   : > { %932 = vst [vmem:[#allocation2 + $0x8] sm:$0xff] %v5874_v0  ;;  %939 = vst [vmem:[#allocation2 + $0x10] sm:$0xff] %v5874_v0  ;;  %v343_v9 = vld [vmem:[#allocation3 + $0x1e8] sm:$0xff]  ;;  %384 = vmatprep.subr.mxu1 %v347_v5  ;;  %542 = vmatprep.subr.mxu0 %v310_v6  ;;  %v342_v11 = vld [vmem:[#allocation3 + $0x1e0] sm:$0xff]  ;;  %s5584_s10 = smul.u32 24, %s6033_s30  ;;  %vm3406_vm6 = vcmask 1041408  }
  0x5b   : > { %940 = vst [vmem:[#allocation2 + $0x48] sm:$0xff] %v5874_v0  ;;  %941 = vst [vmem:[#allocation2 + $0x30] sm:$0xff] %v5874_v0  ;;  %v306_v10 = vld [vmem:[#allocation3 + $0xc8] sm:$0xff]  ;;  %v305_v12 = vld [vmem:[#allocation3 + $0xc0] sm:$0xff]  ;;  %385 = vmatpush1.msra.mxu1 %v346_v7  ;;  %543 = vmatpush1.msra.mxu0 %v309_v8  ;;  %vm3797_vm7 = vcmask 1040384   ;;  %s270_s6 = sand.u32 1, %s5856_s19  }
  0x5c   : > { %942 = vst [vmem:[#allocation2 + $0x18] sm:$0xff] %v5874_v0  ;;  %943 = vst [vmem:[#allocation2 + $0x68] sm:$0xff] %v5874_v0  ;;  %v339_v13 = vld [vmem:[#allocation3 + $0x1c8] sm:$0xff]  ;;  %386 = vmatprep.subr.mxu1 %v343_v9  ;;  %544 = vmatprep.subr.mxu0 %v306_v10  ;;  %v338_v15 = vld [vmem:[#allocation3 + $0x1c0] sm:$0xff]  ;;  %s6039_s26 = scalar_lea.vmem %s6491_s0, %s5584_s10  ;;  %s4537_s7 = sshll.u32 %s270_s6, 4 }
  0x5d   : > { %944 = vst [vmem:[#allocation2 + $0x60] sm:$0xff] %v5874_v0  ;;  %v302_v14 = vld [vmem:[#allocation3 + $0xa8] sm:$0xff]  ;;  %v301_v16 = vld [vmem:[#allocation3 + $0xa0] sm:$0xff]  ;;  %387 = vmatpush1.msra.mxu1 %v342_v11  ;;  %545 = vmatpush1.msra.mxu0 %v305_v12  ;;  %v6042_v31 = vld [vmem:[%s6039_s26] sm:$0xff]  ;;  %s272_s8 = scalar_lea.vmem [#allocation11], %s4537_s7  ;;  %s4557_s13 = sshll.u32 %s5929_s22, 8 }
  0x5e   : > { %v335_v17 = vld [vmem:[#allocation3 + $0x1a8] sm:$0xff]  ;;  %388 = vmatprep.subr.mxu1 %v339_v13  ;;  %546 = vmatprep.subr.mxu0 %v302_v14  ;;  %v334_v19 = vld [vmem:[#allocation3 + $0x1a0] sm:$0xff]  ;;  %v6045_v32 = vld [vmem:[%s6039_s26 + $0x8] sm:$0xff]  ;;  %v358_v35 = vrot.slane %v6042_v31, 1  ;;  %s4422_s11 = sshll.u32 %s272_s8, 4  ;;  %s6445_s15 = scalar_lea.hbm %s6496_s5, %s4557_s13  ;;  %s6447_s11 = int_to_ptr.vmem [resolvable:$true] %s4422_s11 }
  0x5f   : > { %v298_v18 = vld [vmem:[#allocation3 + $0x88] sm:$0xff]  ;;  %v297_v20 = vld [vmem:[#allocation3 + $0x80] sm:$0xff]  ;;  %389 = vmatpush1.msra.mxu1 %v338_v15  ;;  %547 = vmatpush1.msra.mxu0 %v301_v16  ;;  %v359_v36 = vrot.slane %v6045_v32, 1  ;;  %v353_v42 = vld [vmem:[#allocation3 + $0x238] sm:$0xff]  ;;  %v718_v16 = vrot.slane %v6042_v31, 2  ;;  %s6451_s16 = scalar_lea.sflag [#allocation5], %s270_s6 }
  0x60   : > { %v331_v21 = vld [vmem:[#allocation3 + $0x188] sm:$0xff]  ;;  %390 = vmatprep.subr.mxu1 %v335_v17  ;;  %548 = vmatprep.subr.mxu0 %v298_v18  ;;  %v330_v23 = vld [vmem:[#allocation3 + $0x180] sm:$0xff]  ;;  %v352_v44 = vld [vmem:[#allocation3 + $0x230] sm:$0xff]  ;;  %v719_v17 = vrot.slane %v6045_v32, 2  ;;  %s5792_s17 = scalar_lea.vmem %s6447_s11, 256  ;;  %p6521_p11 = scmp.ne.s32.totalorder %s6500_s28, 0 }
  0x61   : > { %v294_v22 = vld [vmem:[#allocation3 + $0x68] sm:$0xff]  ;;  %v293_v24 = vld [vmem:[#allocation3 + $0x60] sm:$0xff]  ;;  %391 = vmatpush1.msra.mxu1 %v334_v19  ;;  %549 = vmatpush1.msra.mxu0 %v297_v20  ;;  %v6052_v41 = vsel %vm357_vm0, %v358_v35, %v359_v36  ;;  %v349_v46 = vld [vmem:[#allocation3 + $0x218] sm:$0xff]  ;;  %p5793_p8 = scmp.ne.s32.totalorder %s6447_s11, %s5792_s17  ;;  %s5875_s22 = smov [#allocation11]  }
  0x62   : > { %v327_v25 = vld [vmem:[#allocation3 + $0x168] sm:$0xff]  ;;  %392 = vmatprep.subr.mxu1 %v331_v21  ;;  %550 = vmatprep.subr.mxu0 %v294_v22  ;;  %v326_v27 = vld [vmem:[#allocation3 + $0x160] sm:$0xff]  ;;  %v348_v48 = vld [vmem:[#allocation3 + $0x210] sm:$0xff]  ;;  %v6074_v21 = vsel %vm717_vm2, %v718_v16, %v719_v17  ;;  %s5796_s23 = sshll.u32 %s5875_s22, 4  ;;  %s5797_s23 = int_to_ptr.vmem [resolvable:$false] %s5796_s23 }
  0x63   : > { %v290_v26 = vld [vmem:[#allocation3 + $0x48] sm:$0xff]  ;;  %v289_v28 = vld [vmem:[#allocation3 + $0x40] sm:$0xff]  ;;  %393 = vmatpush1.msra.mxu1 %v330_v23  ;;  %551 = vmatpush1.msra.mxu0 %v293_v24  ;;  %v345_v50 = vld [vmem:[#allocation3 + $0x1f8] sm:$0xff]  ;;  %p5794_p0 = pnand %p5793_p8, %p6521_p11  ;;  %s5798_s30 = scalar_lea.vmem %s5797_s23, 512 }
  0x64   : > { %v323_v29 = vld [vmem:[#allocation3 + $0x148] sm:$0xff]  ;;  %394 = vmatprep.subr.mxu1 %v327_v25  ;;  %552 = vmatprep.subr.mxu0 %v290_v26  ;;  %v322_v33 = vld [vmem:[#allocation3 + $0x140] sm:$0xff]  ;;  %v344_v52 = vld [vmem:[#allocation3 + $0x1f0] sm:$0xff]  ;;  %p5799_p2 = scmp.lt.s32.totalorder %s6447_s11, %s5797_s23  ;;  %p5800_p9 = scmp.lt.s32.totalorder %s5798_s30, %s5792_s17 }
  0x65   : > { %v286_v30 = vld [vmem:[#allocation3 + $0x28] sm:$0xff]  ;;  %v285_v34 = vld [vmem:[#allocation3 + $0x20] sm:$0xff]  ;;  %395 = vmatpush1.msra.mxu1 %v326_v27  ;;  %553 = vmatpush1.msra.mxu0 %v289_v28  ;;  %v341_v54 = vld [vmem:[#allocation3 + $0x1d8] sm:$0xff]  ;;  %p5795_p1 = pneg %p5794_p0 }
  0x66   : > { %v319_v37 = vld [vmem:[#allocation3 + $0x128] sm:$0xff]  ;;  %396 = vmatprep.subr.mxu1 %v323_v29  ;;  %554 = vmatprep.subr.mxu0 %v286_v30  ;;  %v318_v39 = vld [vmem:[#allocation3 + $0x120] sm:$0xff]  ;;  %v340_v56 = vld [vmem:[#allocation3 + $0x1d0] sm:$0xff]  ;;  %p5801_p3 = por %p5800_p9, %p5799_p2 }
  0x67   : > { %v282_v38 = vld [vmem:[#allocation3 + $0x8] sm:$0xff]  ;;  %v281_v40 = vld [vmem:[#allocation3] sm:$0xff]  ;;  %397 = vmatpush1.msra.mxu1 %v322_v33  ;;  %555 = vmatpush1.msra.mxu0 %v285_v34  ;;  %v337_v59 = vld [vmem:[#allocation3 + $0x1b8] sm:$0xff] }
  0x68   : > { %398 = vmatprep.subr.mxu1 %v319_v37  ;;  %556 = vmatprep.subr.mxu0 %v282_v38  ;;  %v714_v43 = vld [vmem:[#allocation3 + $0x348] sm:$0xff]  ;;  %v713_v45 = vld [vmem:[#allocation3 + $0x340] sm:$0xff]  ;;  %v336_v61 = vld [vmem:[#allocation3 + $0x1b0] sm:$0xff]  ;;  %p5802_p4 = pnand %p5801_p3, %p5795_p1 }
  0x69   : > { %399 = vmatpush1.msra.mxu1 %v318_v39  ;;  %557 = vmatpush1.msra.mxu0 %v281_v40  ;;  %v710_v47 = vld [vmem:[#allocation3 + $0x328] sm:$0xff]  ;;  %v709_v49 = vld [vmem:[#allocation3 + $0x320] sm:$0xff]  ;;  %v333_v63 = vld [vmem:[#allocation3 + $0x198] sm:$0xff] }
  0x6a   : > { %4539 = vmatmul.mubr.msk.f32.vlgmr.msra.gmra.mxu1 %vm363_vm1, %v6052_v41  ;;  %459 = vmatprep.subr.mxu1 %v353_v42  ;;  %v706_v51 = vld [vmem:[#allocation3 + $0x308] sm:$0xff]  ;;  %v705_v53 = vld [vmem:[#allocation3 + $0x300] sm:$0xff]  ;;  %v332_v3 = vld [vmem:[#allocation3 + $0x190] sm:$0xff] }
  0x6b   : > { %4543 = vmatmul.mubr.msk.f32.vlgmr.msra.gmra.mxu0 %vm363_vm1, %v6042_v31  ;;  %741 = vmatprep.subr.mxu0 %v714_v43  ;;  %v702_v55 = vld [vmem:[#allocation3 + $0x2e8] sm:$0xff]  ;;  %v701_v57 = vld [vmem:[#allocation3 + $0x2e0] sm:$0xff]  ;;  %v329_v5 = vld [vmem:[#allocation3 + $0x178] sm:$0xff] }
  0x6c   : > { %460 = vmatpush1.msra.mxu1 %v352_v44  ;;  %742 = vmatpush1.msra.mxu0 %v713_v45  ;;  %v6059_v58 = vld [vmem:[%s6039_s26 + $0x10] sm:$0x3]  ;;  %v698_v60 = vld [vmem:[#allocation3 + $0x2c8] sm:$0xff]  ;;  %v328_v8 = vld [vmem:[#allocation3 + $0x170] sm:$0xff] }
  0x6d   : > { %461 = vmatprep.subr.mxu1 %v349_v46  ;;  %743 = vmatprep.subr.mxu0 %v710_v47  ;;  %v697_v62 = vld [vmem:[#allocation3 + $0x2c0] sm:$0xff]  ;;  %v694_v1 = vld [vmem:[#allocation3 + $0x2a8] sm:$0xff]  ;;  %v361_v2 = vrot.slane %v6059_v58, 1  ;;  %v325_v10 = vld [vmem:[#allocation3 + $0x158] sm:$0xff]  ;;  %v721_v23 = vrot.slane %v6059_v58, 2 }
  0x6e   : > { %462 = vmatpush1.msra.mxu1 %v348_v48  ;;  %744 = vmatpush1.msra.mxu0 %v709_v49  ;;  %v693_v4 = vld [vmem:[#allocation3 + $0x2a0] sm:$0xff]  ;;  %v690_v6 = vld [vmem:[#allocation3 + $0x288] sm:$0xff]  ;;  %v324_v12 = vld [vmem:[#allocation3 + $0x150] sm:$0xff] }
  0x6f   : > { %463 = vmatprep.subr.mxu1 %v345_v50  ;;  %745 = vmatprep.subr.mxu0 %v706_v51  ;;  %v362_v7 = vsel %vm357_vm0, %v359_v36, %v361_v2  ;;  %v689_v9 = vld [vmem:[#allocation3 + $0x280] sm:$0xff]  ;;  %v686_v11 = vld [vmem:[#allocation3 + $0x268] sm:$0xff]  ;;  %v321_v14 = vld [vmem:[#allocation3 + $0x138] sm:$0xff]  ;;  %v6084_v27 = vsel %vm717_vm2, %v719_v17, %v721_v23 }
  0x70   : > { %464 = vmatpush1.msra.mxu1 %v344_v52  ;;  %746 = vmatpush1.msra.mxu0 %v705_v53  ;;  %v685_v13 = vld [vmem:[#allocation3 + $0x260] sm:$0xff]  ;;  %v682_v15 = vld [vmem:[#allocation3 + $0x248] sm:$0xff]  ;;  %v320_v18 = vld [vmem:[#allocation3 + $0x130] sm:$0xff] }
  0x71   : > { %465 = vmatprep.subr.mxu1 %v341_v54  ;;  %747 = vmatprep.subr.mxu0 %v702_v55  ;;  %v681_v19 = vld [vmem:[#allocation3 + $0x240] sm:$0xff]  ;;  %v316_v20 = vld [vmem:[#allocation3 + $0x118] sm:$0xff]  ;;  %v315_v22 = vld [vmem:[#allocation3 + $0x110] sm:$0xff] }
  0x72   : > { %466 = vmatpush1.msra.mxu1 %v340_v56  ;;  %748 = vmatpush1.msra.mxu0 %v701_v57  ;;  %v312_v24 = vld [vmem:[#allocation3 + $0xf8] sm:$0xff]  ;;  %v311_v25 = vld [vmem:[#allocation3 + $0xf0] sm:$0xff]  ;;  %v1145_v2 = vld [vmem:[#allocation8 + $0x3e0] sm:$0xff] }
  0x73   : > { %467 = vmatprep.subr.mxu1 %v337_v59  ;;  %749 = vmatprep.subr.mxu0 %v698_v60  ;;  %v308_v26 = vld [vmem:[#allocation3 + $0xd8] sm:$0xff]  ;;  %v307_v28 = vld [vmem:[#allocation3 + $0xd0] sm:$0xff] }
  0x74   : > { %468 = vmatpush1.msra.mxu1 %v336_v61  ;;  %750 = vmatpush1.msra.mxu0 %v697_v62  ;;  %v304_v29 = vld [vmem:[#allocation3 + $0xb8] sm:$0xff]  ;;  %v303_v30 = vld [vmem:[#allocation3 + $0xb0] sm:$0xff] }
  0x75   : > { %469 = vmatprep.subr.mxu1 %v333_v63  ;;  %751 = vmatprep.subr.mxu0 %v694_v1  ;;  %v300_v33 = vld [vmem:[#allocation3 + $0x98] sm:$0xff]  ;;  %v299_v34 = vld [vmem:[#allocation3 + $0x90] sm:$0xff] }
  0x76   : > { %470 = vmatpush1.msra.mxu1 %v332_v3  ;;  %752 = vmatpush1.msra.mxu0 %v693_v4  ;;  %v296_v35 = vld [vmem:[#allocation3 + $0x78] sm:$0xff]  ;;  %v295_v36 = vld [vmem:[#allocation3 + $0x70] sm:$0xff]  ;;  %v1129_v3 = vld [vmem:[#allocation8 + $0x360] sm:$0xff] }
  0x77   : > { %438 = vmatprep.mubr.f32.mxu1 %v5874_v0  ;;  %471 = vmatprep.subr.mxu1 %v329_v5  ;;  %v292_v37 = vld [vmem:[#allocation3 + $0x58] sm:$0xff]  ;;  %v291_v38 = vld [vmem:[#allocation3 + $0x50] sm:$0xff] }
  0x78   : > { %596 = vmatprep.mubr.f32.mxu0 %v5874_v0  ;;  %753 = vmatprep.subr.mxu0 %v690_v6  ;;  %v288_v39 = vld [vmem:[#allocation3 + $0x38] sm:$0xff]  ;;  %v287_v40 = vld [vmem:[#allocation3 + $0x30] sm:$0xff] }
  0x79   : > { %4540 = vmatmul.mubr.msk.f32.gmra.mxu1 %vm363_vm1, %v362_v7  ;;  %4544 = vmatmul.mubr.msk.f32.gmra.mxu0 %vm363_vm1, %v6045_v32  ;;  %v283_v42 = vld [vmem:[#allocation3 + $0x10] sm:$0xff]  ;;  %v716_v43 = vld [vmem:[#allocation3 + $0x358] sm:$0xff] }
  0x7a   : > { %472 = vmatpush1.msra.mxu1 %v328_v8  ;;  %754 = vmatpush1.msra.mxu0 %v689_v9  ;;  %v715_v44 = vld [vmem:[#allocation3 + $0x350] sm:$0xff]  ;;  %v712_v45 = vld [vmem:[#allocation3 + $0x338] sm:$0xff] }
  0x7b   : > { %473 = vmatprep.subr.mxu1 %v325_v10  ;;  %755 = vmatprep.subr.mxu0 %v686_v11  ;;  %v711_v46 = vld [vmem:[#allocation3 + $0x330] sm:$0xff]  ;;  %v708_v47 = vld [vmem:[#allocation3 + $0x318] sm:$0xff]  ;;  %v1141_v10 = vld [vmem:[#allocation8 + $0x3c0] sm:$0xff] }
  0x7c   : > { %474 = vmatpush1.msra.mxu1 %v324_v12  ;;  %756 = vmatpush1.msra.mxu0 %v685_v13  ;;  %v707_v48 = vld [vmem:[#allocation3 + $0x310] sm:$0xff]  ;;  %v704_v49 = vld [vmem:[#allocation3 + $0x2f8] sm:$0xff]  ;;  %v1125_v11 = vld [vmem:[#allocation8 + $0x340] sm:$0xff] }
  0x7d   : > { %475 = vmatprep.subr.mxu1 %v321_v14  ;;  %757 = vmatprep.subr.mxu0 %v682_v15  ;;  %v703_v50 = vld [vmem:[#allocation3 + $0x2f0] sm:$0xff]  ;;  %v700_v51 = vld [vmem:[#allocation3 + $0x2d8] sm:$0xff] }
  0x7e   : > { %476 = vmatpush1.msra.mxu1 %v320_v18  ;;  %509 = vmatprep.mubr.f32.mxu1 %v5874_v0  ;;  %v696_v52 = vld [vmem:[#allocation3 + $0x2b8] sm:$0xff]  ;;  %v695_v53 = vld [vmem:[#allocation3 + $0x2b0] sm:$0xff]  ;;  %v1137_v18 = vld [vmem:[#allocation8 + $0x3a0] sm:$0xff] }
  0x7f   : > { %758 = vmatpush1.msra.mxu0 %v681_v19  ;;  %791 = vmatprep.mubr.f32.mxu0 %v5874_v0  ;;  %v692_v54 = vld [vmem:[#allocation3 + $0x298] sm:$0xff]  ;;  %v691_v55 = vld [vmem:[#allocation3 + $0x290] sm:$0xff]  ;;  %v1121_v19 = vld [vmem:[#allocation8 + $0x320] sm:$0xff] }
  0x80   : > { %4541 = vmatmul.mubr.msk.f32.vlgmr.msra.gmra.mxu1 %vm363_vm1, %v6052_v41  ;;  %617 = vmatprep.subr.mxu1 %v316_v20  ;;  %v284_v41 = vld [vmem:[#allocation3 + $0x18] sm:$0xff]  ;;  %v683_v58 = vld [vmem:[#allocation3 + $0x250] sm:$0xff] }
  0x81   : > { %4547 = vmatmul.mubr.msk.f32.vlgmr.msra.gmra.mxu0 %vm363_vm1, %v6074_v21  ;;  %618 = vmatpush1.msra.mxu1 %v315_v22  ;;  %v688_v56 = vld [vmem:[#allocation3 + $0x278] sm:$0xff]  ;;  %v1146_v63 = vld [vmem:[#allocation8 + $0x3e8] sm:$0xff] }
  0x82   : > { %619 = vmatprep.subr.mxu1 %v312_v24  ;;  %797 = vmatprep.mubr.f32.mxu0 %v5874_v0  ;;  %v684_v57 = vld [vmem:[#allocation3 + $0x258] sm:$0xff]  ;;  %v1130_v1 = vld [vmem:[#allocation8 + $0x368] sm:$0xff] }
  0x83   : > { %620 = vmatpush1.msra.mxu1 %v311_v25  ;;  %515 = vmatprep.mubr.f32.mxu1 %v5874_v0  ;;  %v1148_v59 = vld [vmem:[#allocation8 + $0x3f8] sm:$0xff]  ;;  %v1147_v61 = vld [vmem:[#allocation8 + $0x3f0] sm:$0xff]  ;;  %v1142_v8 = vld [vmem:[#allocation8 + $0x3c8] sm:$0xff] }
  0x84   : > { %621 = vmatprep.subr.mxu1 %v308_v26  ;;  %4542 = vmatmul.mubr.msk.f32.gmra.mxu1 %vm363_vm1, %v362_v7  ;;  %v1132_v60 = vld [vmem:[#allocation8 + $0x378] sm:$0xff]  ;;  %v1131_v62 = vld [vmem:[#allocation8 + $0x370] sm:$0xff]  ;;  %v1126_v9 = vld [vmem:[#allocation8 + $0x348] sm:$0xff] }
  0x85   : > { %4548 = vmatmul.mubr.msk.f32.gmra.mxu0 %vm363_vm1, %v6084_v27  ;;  %622 = vmatpush1.msra.mxu1 %v307_v28  ;;  %v1144_v4 = vld [vmem:[#allocation8 + $0x3d8] sm:$0xff]  ;;  %v1143_v6 = vld [vmem:[#allocation8 + $0x3d0] sm:$0xff]  ;;  %v1138_v16 = vld [vmem:[#allocation8 + $0x3a8] sm:$0xff] }
  0x86   : > { %623 = vmatprep.subr.mxu1 %v304_v29  ;;  %667 = vmatprep.mubr.f32.mxu1 %v5874_v0  ;;  %v1128_v5 = vld [vmem:[#allocation8 + $0x358] sm:$0xff]  ;;  %v1127_v7 = vld [vmem:[#allocation8 + $0x350] sm:$0xff]  ;;  %v1122_v17 = vld [vmem:[#allocation8 + $0x328] sm:$0xff] }
  0x87   : > { %624 = vmatpush1.msra.mxu1 %v303_v30  ;;  %4558 = vmatprep.subr.mxu0 %v1148_v59  ;;  %v1140_v12 = vld [vmem:[#allocation8 + $0x3b8] sm:$0xff]  ;;  %v1139_v14 = vld [vmem:[#allocation8 + $0x3b0] sm:$0xff]  ;;  %v1134_v24 = vld [vmem:[#allocation8 + $0x388] sm:$0xff] }
  0x88   : > { %625 = vmatprep.subr.mxu1 %v300_v33  ;;  %4559 = vmatpush3.msra.mxu0 %v1132_v60  ;;  %v1124_v13 = vld [vmem:[#allocation8 + $0x338] sm:$0xff]  ;;  %v1123_v15 = vld [vmem:[#allocation8 + $0x330] sm:$0xff]  ;;  %v1118_v25 = vld [vmem:[#allocation8 + $0x308] sm:$0xff] }
  0x89   : > { %626 = vmatpush1.msra.mxu1 %v299_v34  ;;  %4560 = vmatprep.subr.mxu0 %v1147_v61  ;;  %v1136_v20 = vld [vmem:[#allocation8 + $0x398] sm:$0xff]  ;;  %v1135_v22 = vld [vmem:[#allocation8 + $0x390] sm:$0xff]  ;;  %v1133_v26 = vld [vmem:[#allocation8 + $0x380] sm:$0xff] }
  0x8a   : > { %627 = vmatprep.subr.mxu1 %v296_v35  ;;  %4561 = vmatpush3.msra.mxu0 %v1131_v62  ;;  %v1119_v23 = vld [vmem:[#allocation8 + $0x310] sm:$0xff]  ;;  %v1180_v28 = vld [vmem:[#allocation8 + $0x4f8] sm:$0xff]  ;;  %v1178_v35 = vld [vmem:[#allocation8 + $0x4e8] sm:$0xff] }
  0x8b   : > { %628 = vmatpush1.msra.mxu1 %v295_v36  ;;  %4562 = vmatprep.subr.mxu0 %v1146_v63  ;;  %v1164_v29 = vld [vmem:[#allocation8 + $0x478] sm:$0xff]  ;;  %v1179_v33 = vld [vmem:[#allocation8 + $0x4f0] sm:$0xff]  ;;  %v1162_v36 = vld [vmem:[#allocation8 + $0x468] sm:$0xff]  ;;  %v891_v63 = vlaneseq }
  0x8c   : > { %629 = vmatprep.subr.mxu1 %v292_v37  ;;  %4563 = vmatpush3.msra.mxu0 %v1130_v1  ;;  %v1212_v30 = vld [vmem:[#allocation8 + $0x5f8] sm:$0xff]  ;;  %v1163_v34 = vld [vmem:[#allocation8 + $0x470] sm:$0xff]  ;;  %v1177_v37 = vld [vmem:[#allocation8 + $0x4e0] sm:$0xff] }
  0x8d   : > { %630 = vmatpush1.msra.mxu1 %v291_v38  ;;  %4564 = vmatprep.subr.mxu0 %v1145_v2  ;;  %v1161_v38 = vld [vmem:[#allocation8 + $0x460] sm:$0xff]  ;;  %v1033_v61 = vld [vmem:[#allocation8 + $0xf8] sm:$0xff]  ;;  %v6102_v2 = vshrl.u32 %v891_v63, 7 }
  0x8e   : > { %631 = vmatprep.subr.mxu1 %v288_v39  ;;  %4565 = vmatpush3.msra.mxu0 %v1129_v3  ;;  %v1176_v39 = vld [vmem:[#allocation8 + $0x4d8] sm:$0xff]  ;;  %v1165_v59 = vld [vmem:[#allocation8 + $0x480] sm:$0xff] }
  0x8f   : > { %632 = vmatpush1.msra.mxu1 %v287_v40  ;;  %4566 = vmatprep.subr.mxu0 %v1144_v4  ;;  %v1160_v40 = vld [vmem:[#allocation8 + $0x458] sm:$0xff]  ;;  %v1149_v60 = vld [vmem:[#allocation8 + $0x400] sm:$0xff] }
  0x90   : > { %633 = vmatprep.subr.mxu1 %v284_v41  ;;  %4567 = vmatpush3.msra.mxu0 %v1128_v5  ;;  %v1175_v41 = vld [vmem:[#allocation8 + $0x4d0] sm:$0xff]  ;;  %v893_v5 = vsub.s32 0, %v6102_v2 }
  0x91   : > { %634 = vmatpush1.msra.mxu1 %v283_v42  ;;  %4568 = vmatprep.subr.mxu0 %v1143_v6  ;;  %v1159_v42 = vld [vmem:[#allocation8 + $0x450] sm:$0xff] }
  0x92   : > { %4545 = vmatmul.mubr.msk.f32.vlgmr.msra.gmra.mxu1 %vm363_vm1, %v6042_v31  ;;  %818 = vmatprep.subr.mxu1 %v716_v43  ;;  %v699_v31 = vld [vmem:[#allocation3 + $0x2d0] sm:$0xff] }
  0x93   : > { %819 = vmatpush1.msra.mxu1 %v715_v44  ;;  %673 = vmatprep.mubr.f32.mxu1 %v5874_v0  ;;  %v1174_v43 = vld [vmem:[#allocation8 + $0x4c8] sm:$0xff] }
  0x94   : > { %820 = vmatprep.subr.mxu1 %v712_v45  ;;  %4569 = vmatpush3.msra.mxu0 %v1127_v7  ;;  %v1158_v44 = vld [vmem:[#allocation8 + $0x448] sm:$0xff]  ;;  %v1173_v45 = vld [vmem:[#allocation8 + $0x4c0] sm:$0xff] }
  0x95   : > { %821 = vmatpush1.msra.mxu1 %v711_v46  ;;  %4570 = vmatprep.subr.mxu0 %v1142_v8  ;;  %v1157_v46 = vld [vmem:[#allocation8 + $0x440] sm:$0xff]  ;;  %v6105_v8 = vld [vmem:[#allocation6] sm:$0xf] }
  0x96   : > { %4546 = vmatmul.mubr.msk.f32.gmra.mxu1 %vm363_vm1, %v6045_v32  ;;  %822 = vmatprep.subr.mxu1 %v708_v47  ;;  %v687_v32 = vld [vmem:[#allocation3 + $0x270] sm:$0xff]  ;;  %v1172_v47 = vld [vmem:[#allocation8 + $0x4b8] sm:$0xff] }
  0x97   : > { %823 = vmatpush1.msra.mxu1 %v707_v48  ;;  %868 = vmatprep.mubr.f32.mxu1 %v5874_v0  ;;  %v1156_v48 = vld [vmem:[#allocation8 + $0x438] sm:$0xff] }
  0x98   : > { %824 = vmatprep.subr.mxu1 %v704_v49  ;;  %4571 = vmatpush3.msra.mxu0 %v1126_v9  ;;  %v1171_v49 = vld [vmem:[#allocation8 + $0x4b0] sm:$0xff]  ;;  %v897_v9 = vsub.s32 1, %v6102_v2 }
  0x99   : > { %825 = vmatpush1.msra.mxu1 %v703_v50  ;;  %4572 = vmatprep.subr.mxu0 %v1141_v10  ;;  %v1155_v50 = vld [vmem:[#allocation8 + $0x430] sm:$0xff] }
  0x9a   : > { %826 = vmatprep.subr.mxu1 %v700_v51  ;;  %4573 = vmatpush3.msra.mxu0 %v1125_v11  ;;  %v1170_v51 = vld [vmem:[#allocation8 + $0x4a8] sm:$0xff] }
  0x9b   : > { %827 = vmatpush1.msra.mxu1 %v699_v31  ;;  %4574 = vmatprep.subr.mxu0 %v1140_v12  ;;  %v1154_v31 = vld [vmem:[#allocation8 + $0x428] sm:$0xff]  ;;  %v894_v12 = vrot.slane %v6105_v8, %v893_v5 }
  0x9c   : > { %828 = vmatprep.subr.mxu1 %v696_v52  ;;  %4575 = vmatpush3.msra.mxu0 %v1124_v13  ;;  %v1169_v52 = vld [vmem:[#allocation8 + $0x4a0] sm:$0xff] }
  0x9d   : > { %829 = vmatpush1.msra.mxu1 %v695_v53  ;;  %4576 = vmatprep.subr.mxu0 %v1139_v14  ;;  %v1153_v53 = vld [vmem:[#allocation8 + $0x420] sm:$0xff] }
  0x9e   : > { %830 = vmatprep.subr.mxu1 %v692_v54  ;;  %4577 = vmatpush3.msra.mxu0 %v1123_v15  ;;  %v1168_v54 = vld [vmem:[#allocation8 + $0x498] sm:$0xff] }
  0x9f   : > { %831 = vmatpush1.msra.mxu1 %v691_v55  ;;  %4578 = vmatprep.subr.mxu0 %v1138_v16  ;;  %v1152_v55 = vld [vmem:[#allocation8 + $0x418] sm:$0xff]  ;;  %v898_v16 = vrot.slane %v6105_v8, %v897_v9 }
  0xa0   : > { %832 = vmatprep.subr.mxu1 %v688_v56  ;;  %4579 = vmatpush3.msra.mxu0 %v1122_v17  ;;  %v1167_v56 = vld [vmem:[#allocation8 + $0x490] sm:$0xff]  ;;  %v1192_v9 = vld [vmem:[#allocation8 + $0x558] sm:$0xff] }
  0xa1   : > { %833 = vmatpush1.msra.mxu1 %v687_v32  ;;  %4580 = vmatprep.subr.mxu0 %v1137_v18  ;;  %v1151_v32 = vld [vmem:[#allocation8 + $0x410] sm:$0xff] }
  0xa2   : > { %834 = vmatprep.subr.mxu1 %v684_v57  ;;  %4581 = vmatpush3.msra.mxu0 %v1121_v19  ;;  %v1166_v57 = vld [vmem:[#allocation8 + $0x488] sm:$0xff] }
  0xa3   : > { %835 = vmatpush1.msra.mxu1 %v683_v58  ;;  %4582 = vmatprep.subr.mxu0 %v1136_v20  ;;  %v1150_v58 = vld [vmem:[#allocation8 + $0x408] sm:$0xff] }
  0xa4   : > { %4549 = vmatmul.mubr.msk.f32.vlgmr.msra.gmra.mxu1 %vm363_vm1, %v6074_v21  ;;  %v1120_v21 = vld [vmem:[#allocation8 + $0x318] sm:$0xff]  ;;  %4596 = vmatprep.subr.mxu1 %v1180_v28 }
  0xa5   : > { %874 = vmatprep.mubr.f32.mxu1 %v5874_v0  ;;  %4583 = vmatpush3.msra.mxu0 %v1120_v21 }
  0xa6   : > { %4584 = vmatprep.subr.mxu0 %v1135_v22  ;;  %4597 = vmatpush3.msra.mxu1 %v1164_v29 }
  0xa7   : > { %4585 = vmatpush3.msra.mxu0 %v1119_v23  ;;  %4598 = vmatprep.subr.mxu1 %v1179_v33 }
  0xa8   : > { %4550 = vmatmul.mubr.msk.f32.gmra.mxu1 %vm363_vm1, %v6084_v27  ;;  %4586 = vmatprep.subr.mxu0 %v1134_v24  ;;  %v1117_v27 = vld [vmem:[#allocation8 + $0x300] sm:$0xff] }
  0xa9   : > { %4587 = vmatpush3.msra.mxu0 %v1118_v25  ;;  %4599 = vmatpush3.msra.mxu1 %v1163_v34 }
  0xaa   : > { %4588 = vmatprep.subr.mxu0 %v1133_v26  ;;  %4600 = vmatprep.subr.mxu1 %v1178_v35 }
  0xab   : > { %4589 = vmatpush3.msra.mxu0 %v1117_v27  ;;  %4601 = vmatpush3.msra.mxu1 %v1162_v36 }
  0xac   : > { %4634 = vmatprep.subr.mxu0 %v1212_v30  ;;  %4602 = vmatprep.subr.mxu1 %v1177_v37 }
  0xad   : > { %4603 = vmatpush3.msra.mxu1 %v1161_v38 }
  0xae   : > { %4604 = vmatprep.subr.mxu1 %v1176_v39 }
  0xaf   : > { %4605 = vmatpush3.msra.mxu1 %v1160_v40 }
  0xb0   : > { %4606 = vmatprep.subr.mxu1 %v1175_v41  ;;  %v1098_v41 = vld [vmem:[#allocation2] sm:$0xfe] }
  0xb1   : > { %4607 = vmatpush3.msra.mxu1 %v1159_v42 }
  0xb2   : > { %4608 = vmatprep.subr.mxu1 %v1174_v43 }
  0xb3   : > { %4609 = vmatpush3.msra.mxu1 %v1158_v44 }
  0xb4   : > { %4610 = vmatprep.subr.mxu1 %v1173_v45  ;;  %v1231_v45 = vrot.slane %v1098_v41, 1 }
  0xb5   : > { %4611 = vmatpush3.msra.mxu1 %v1157_v46  ;;  %v6121_v46 = vrot.slane %v5874_v0, 1 }
  0xb6   : > { %4612 = vmatprep.subr.mxu1 %v1172_v47 }
  0xb7   : > { %4613 = vmatpush3.msra.mxu1 %v1156_v48  ;;  %v1110_v48 = vld [vmem:[#allocation2 + $0x10] sm:$0x1] }
  0xb8   : > { %4614 = vmatprep.subr.mxu1 %v1171_v49 }
  0xb9   : > { %4615 = vmatpush3.msra.mxu1 %v1155_v50  ;;  %v1103_v50 = vld [vmem:[#allocation2 + $0x8] sm:$0xfe] }
  0xba   : > { %4616 = vmatprep.subr.mxu1 %v1170_v51 }
  0xbb   : > { %4617 = vmatpush3.msra.mxu1 %v1154_v31 }
  0xbc   : > { %4618 = vmatprep.subr.mxu1 %v1169_v52 }
  0xbd   : > { %4619 = vmatpush3.msra.mxu1 %v1153_v53  ;;  %v1233_v53 = vsel %vm357_vm0, %v1231_v45, %v6121_v46  ;;  %v1185_v45 = vld [vmem:[#allocation8 + $0x520] sm:$0xff] }
  0xbe   : > { %4620 = vmatprep.subr.mxu1 %v1168_v54  ;;  %v1249_v54 = vrot.slane %v1110_v48, 1 }
  0xbf   : > { %4621 = vmatpush3.msra.mxu1 %v1152_v55  ;;  %v1196_v55 = vld [vmem:[#allocation8 + $0x578] sm:$0xff] }
  0xc0   : > { %4622 = vmatprep.subr.mxu1 %v1167_v56  ;;  %v1246_v56 = vrot.slane %v1103_v50, 1 }
  0xc1   : > { %4623 = vmatpush3.msra.mxu1 %v1151_v32 }
  0xc2   : > { %4624 = vmatprep.subr.mxu1 %v1166_v57  ;;  %v1211_v57 = vld [vmem:[#allocation8 + $0x5f0] sm:$0xff] }
  0xc3   : > { %4625 = vmatpush3.msra.mxu1 %v1150_v58 }
  0xc4   : > { %4626 = vmatprep.subr.mxu1 %v1165_v59 }
  0xc5   : > { %4627 = vmatpush3.msra.mxu1 %v1149_v60  ;;  %v1195_v60 = vld [vmem:[#allocation8 + $0x570] sm:$0xff] }
  0xc6   : > { %4672 = vmatprep.subr.mxu1 %v1033_v61  ;;  %v1210_v61 = vld [vmem:[#allocation8 + $0x5e8] sm:$0xff] }
 0x12a   : > { %v434_v3 = vpop.f32.mrf.mxu1 }
 0x12b   : > { %v592_v62 = vpop.f32.mrf.mxu0 }
 0x12c   : > { %v436_v6 = vpop.f32.mrf.mxu1  ;;  %v593_v11 = vadd.f32 %v592_v62, %v434_v3  ;;  %v1250_v62 = vsel %vm357_vm0, %v6121_v46, %v1249_v54  ;;  %v1248_v3 = vsel %vm357_vm0, %v1246_v56, %v6121_v46 }
 0x12d   : > { %v594_v1 = vpop.f32.mrf.mxu0 }
 0x12e   : > { %v595_v14 = vadd.f32 %v594_v1, %v436_v6  ;;  %v1194_v1 = vld [vmem:[#allocation8 + $0x568] sm:$0xff]  ;;  %v1193_v6 = vld [vmem:[#allocation8 + $0x560] sm:$0xff] }
 0x139   : > { %v598_v4 = vpop.f32.mrf.mxu0  ;;  %v440_v10 = vpop.f32.mrf.mxu1 }
 0x13a   : > { %v599_v19 = vadd.f32 %v598_v4, %v440_v10  ;;  %v1209_v4 = vld [vmem:[#allocation8 + $0x5e0] sm:$0xff]  ;;  %v1207_v10 = vld [vmem:[#allocation8 + $0x5d0] sm:$0xff] }
 0x13b   : > { %v600_v7 = vpop.f32.mrf.mxu0  ;;  %v442_v17 = vpop.f32.mrf.mxu1 }
 0x13c   : > { %v601_v23 = vadd.f32 %v600_v7, %v442_v17  ;;  %v1208_v7 = vld [vmem:[#allocation8 + $0x5d8] sm:$0xff]  ;;  %v1205_v17 = vld [vmem:[#allocation8 + $0x5c0] sm:$0xff] }
 0x140   : > { %v6110_v28 = vpop.f32.mrf.mxu1 }
 0x141   : > { %v793_v13 = vpop.f32.mrf.mxu0 }
 0x142   : > { %v881_v15 = vadd.f32 %v793_v13, %v593_v11  ;;  %v6112_v38 = vpop.f32.mrf.mxu1  ;;  %v901_v13 = vsub.s32 2, %v6102_v2 }
 0x143   : > { %v795_v18 = vpop.f32.mrf.mxu0 }
 0x144   : > { %v911_v20 = vadd.f32 %v894_v12, %v881_v15  ;;  %v882_v21 = vadd.f32 %v795_v18, %v595_v14  ;;  %v6117_v44 = vpop.f32.mrf.mxu1  ;;  %v1206_v14 = vld [vmem:[#allocation8 + $0x5c8] sm:$0xff] }
 0x145   : > { %v799_v22 = vpop.f32.mrf.mxu0  ;;  %v1190_v15 = vld [vmem:[#allocation8 + $0x548] sm:$0xff] }
 0x146   : > { %v919_v24 = vmax.f32 %v911_v20, 0.0  ;;  %v912_v25 = vadd.f32 %v898_v16, %v882_v21  ;;  %v885_v26 = vadd.f32 %v799_v22, %v599_v19  ;;  %v6127_v51 = vpop.f32.mrf.mxu1  ;;  %v1189_v19 = vld [vmem:[#allocation8 + $0x540] sm:$0xff]  ;;  %v902_v21 = vrot.slane %v6105_v8, %v901_v13  ;;  %v1204_v22 = vld [vmem:[#allocation8 + $0x5b8] sm:$0xff] }
 0x147   : > { %v801_v27 = vpop.f32.mrf.mxu0 }
 0x148   : > { %v954_v29 = vrot.slane %v919_v24, 4  ;;  %v920_v30 = vmax.f32 %v912_v25, 0.0  ;;  %v915_v33 = vadd.f32 %v894_v12, %v885_v26  ;;  %v886_v34 = vadd.f32 %v801_v27, %v601_v23  ;;  %v1191_v12 = vld [vmem:[#allocation8 + $0x550] sm:$0xff]  ;;  %v1188_v24 = vld [vmem:[#allocation8 + $0x538] sm:$0xff] }
 0x14a   : > { %978 = vst [vmem:[#allocation2 + $0x38] sm:$0xf0] %v954_v29  ;;  %v955_v35 = vrot.slane %v920_v30, 4  ;;  %v923_v36 = vmax.f32 %v915_v33, 0.0  ;;  %v916_v37 = vadd.f32 %v898_v16, %v886_v34  ;;  %v905_v16 = vsub.s32 3, %v6102_v2  ;;  %v1203_v2 = vld [vmem:[#allocation8 + $0x5b0] sm:$0xff] }
 0x14b   : > { %v1187_v30 = vld [vmem:[#allocation8 + $0x530] sm:$0xff] }
 0x14c   : > { %979 = vst [vmem:[#allocation2 + $0x78] sm:$0xf0] %v955_v35  ;;  %v958_v39 = vrot.slane %v923_v36, 4  ;;  %v924_v40 = vmax.f32 %v916_v37, 0.0  ;;  %v906_v27 = vrot.slane %v6105_v8, %v905_v16  ;;  %v1186_v37 = vld [vmem:[#allocation8 + $0x528] sm:$0xff]  ;;  %v1201_v8 = vld [vmem:[#allocation8 + $0x5a0] sm:$0xff] }
 0x14e   : > { %v6115_v42 = vsel %vm953_vm3, %v954_v29, %v958_v39  ;;  %986 = vst [vmem:[#allocation2 + $0x48] sm:$0xf] %v958_v39  ;;  %v960_v43 = vrot.slane %v924_v40, 4 }
 0x14f   : > { %982 = vst [vmem:[#allocation2 + $0x80] sm:$0xff] %v6115_v42  ;;  %v1235_v52 = vrot.slane %v6115_v42, 1 }
 0x150   : > { %v6124_v47 = vsel %vm953_vm3, %v955_v35, %v960_v43  ;;  %987 = vst [vmem:[#allocation2 + $0x30] sm:$0xf] %v960_v43  ;;  %v1202_v35 = vld [vmem:[#allocation8 + $0x5a8] sm:$0xff] }
 0x151   : > { %983 = vst [vmem:[#allocation2 + $0x88] sm:$0xff] %v6124_v47  ;;  %v1099_v49 = vld [vmem:[#allocation2 + $0x38] sm:$0xfe] }
 0x152   : > { %v1234_v31 = vrot.slane %v1099_v49, 1  ;;  %v669_v58 = vpop.f32.mrf.mxu1 }
 0x153   : > { %v670_v20 = vadd.f32 %v669_v58, %v6110_v28  ;;  %v1182_v58 = vld [vmem:[#allocation8 + $0x508] sm:$0xff] }
 0x154   : > { %v1236_v0 = vsel %vm357_vm0, %v1234_v31, %v1235_v52  ;;  %v671_v5 = vpop.f32.mrf.mxu1  ;;  %v1200_v31 = vld [vmem:[#allocation8 + $0x598] sm:$0xff] }
 0x155   : > { %1337 = vmatprep.mubr.f32.mxu0 %v1236_v0  ;;  %v1111_v32 = vld [vmem:[#allocation2 + $0x48] sm:$0x1]  ;;  %v672_v25 = vadd.f32 %v671_v5, %v6112_v38 }
 0x156   : > { %1338 = vmatmul.mubr.f32.vlgmr.msra.gmra.mxu0 %v1233_v53  ;;  %v1251_v59 = vrot.slane %v1111_v32, 1  ;;  %v675_v11 = vpop.f32.mrf.mxu1  ;;  %v1199_v0 = vld [vmem:[#allocation8 + $0x590] sm:$0xff] }
 0x157   : > { %4635 = vmatpush3.msra.mxu0 %v1196_v55  ;;  %v676_v33 = vadd.f32 %v675_v11, %v6117_v44  ;;  %v1183_v55 = vld [vmem:[#allocation8 + $0x510] sm:$0xff] }
 0x158   : > { %v1252_v63 = vsel %vm357_vm0, %v1235_v52, %v1251_v59  ;;  %4636 = vmatprep.subr.mxu0 %v1211_v57  ;;  %v677_v18 = vpop.f32.mrf.mxu1  ;;  %v1184_v52 = vld [vmem:[#allocation8 + $0x518] sm:$0xff]  ;;  %v1198_v57 = vld [vmem:[#allocation8 + $0x588] sm:$0xff] }
 0x159   : > { %1342 = vmatprep.mubr.f32.mxu0 %v1252_v63  ;;  %4637 = vmatpush3.msra.mxu0 %v1195_v60  ;;  %v678_v39 = vadd.f32 %v677_v18, %v6127_v51  ;;  %v1181_v63 = vld [vmem:[#allocation8 + $0x500] sm:$0xff] }
 0x15a   : > { %4638 = vmatprep.subr.mxu0 %v1210_v61  ;;  %1343 = vmatmul.mubr.f32.gmra.mxu0 %v1250_v62  ;;  %v1197_v61 = vld [vmem:[#allocation8 + $0x580] sm:$0xff] }
 0x15b   : > { %4639 = vmatpush3.msra.mxu0 %v1194_v1  ;;  %1487 = vmatprep.mubr.f32.mxu0 %v1248_v3  ;;  %v1100_v62 = vld [vmem:[#allocation2 + $0x78] sm:$0xfe]  ;;  %v1065_v3 = vld [vmem:[#allocation8 + $0x1f8] sm:$0xff] }
 0x15c   : > { %4640 = vmatprep.subr.mxu0 %v1209_v4  ;;  %v1237_v5 = vrot.slane %v1100_v62, 1  ;;  %v1057_v62 = vld [vmem:[#allocation8 + $0x1b8] sm:$0xff] }
 0x15d   : > { %4641 = vmatpush3.msra.mxu0 %v1193_v6 }
 0x15e   : > { %4642 = vmatprep.subr.mxu0 %v1208_v7 }
 0x15f   : > { %4643 = vmatpush3.msra.mxu0 %v1192_v9  ;;  %v1115_v9 = vld [vmem:[#allocation2 + $0x60] sm:$0x1] }
 0x160   : > { %4644 = vmatprep.subr.mxu0 %v1207_v10  ;;  %v1238_v10 = vrot.slane %v6124_v47, 1 }
 0x161   : > { %4645 = vmatpush3.msra.mxu0 %v1191_v12  ;;  %v1112_v12 = vld [vmem:[#allocation2 + $0x30] sm:$0x1] }
 0x162   : > { %4646 = vmatprep.subr.mxu0 %v1206_v14  ;;  %v1017_v14 = vld [vmem:[#allocation8 + $0x78] sm:$0xff] }
 0x163   : > { %4647 = vmatpush3.msra.mxu0 %v1190_v15 }
 0x164   : > { %v870_v23 = vpop.f32.mrf.mxu1  ;;  %4648 = vmatprep.subr.mxu0 %v1205_v17  ;;  %v1239_v17 = vsel %vm357_vm0, %v1237_v5, %v1238_v10  ;;  %v1056_v5 = vld [vmem:[#allocation8 + $0x1b0] sm:$0xff] }
 0x165   : > { %v883_v26 = vadd.f32 %v870_v23, %v670_v20  ;;  %4649 = vmatpush3.msra.mxu0 %v1189_v19  ;;  %v1032_v19 = vld [vmem:[#allocation8 + $0xf0] sm:$0xff]  ;;  %v1049_v20 = vld [vmem:[#allocation8 + $0x178] sm:$0xff] }
 0x166   : > { %v872_v29 = vpop.f32.mrf.mxu1  ;;  %4650 = vmatprep.subr.mxu0 %v1204_v22 }
 0x167   : > { %v913_v28 = vadd.f32 %v902_v21, %v883_v26  ;;  %v884_v34 = vadd.f32 %v872_v29, %v672_v25  ;;  %4651 = vmatpush3.msra.mxu0 %v1188_v24  ;;  %v1016_v24 = vld [vmem:[#allocation8 + $0x70] sm:$0xff]  ;;  %v1253_v25 = vrot.slane %v1112_v12, 1  ;;  %v1039_v12 = vld [vmem:[#allocation8 + $0x128] sm:$0xff] }
 0x168   : > { %v876_v36 = vpop.f32.mrf.mxu1  ;;  %4652 = vmatprep.subr.mxu0 %v1203_v2  ;;  %v1064_v26 = vld [vmem:[#allocation8 + $0x1f0] sm:$0xff] }
 0x169   : > { %v921_v38 = vmax.f32 %v913_v28, 0.0  ;;  %v914_v40 = vadd.f32 %v906_v27, %v884_v34  ;;  %v887_v41 = vadd.f32 %v876_v36, %v676_v33  ;;  %4653 = vmatpush3.msra.mxu0 %v1187_v30  ;;  %v1048_v30 = vld [vmem:[#allocation8 + $0x170] sm:$0xff]  ;;  %v1015_v34 = vld [vmem:[#allocation8 + $0x68] sm:$0xff] }
 0x16a   : > { %v878_v43 = vpop.f32.mrf.mxu1  ;;  %4654 = vmatprep.subr.mxu0 %v1202_v35  ;;  %v1254_v35 = vsel %vm357_vm0, %v1238_v10, %v1253_v25  ;;  %v1063_v36 = vld [vmem:[#allocation8 + $0x1e8] sm:$0xff] }
 0x16b   : > { %v956_v48 = vrot.slane %v921_v38, 4  ;;  %v922_v49 = vmax.f32 %v914_v40, 0.0  ;;  %v917_v44 = vadd.f32 %v902_v21, %v887_v41  ;;  %v888_v50 = vadd.f32 %v878_v43, %v678_v39  ;;  %4655 = vmatpush3.msra.mxu0 %v1186_v37  ;;  %v1030_v39 = vld [vmem:[#allocation8 + $0xe0] sm:$0xff]  ;;  %v1047_v38 = vld [vmem:[#allocation8 + $0x168] sm:$0xff] }
 0x16c   : > { %4656 = vmatprep.subr.mxu0 %v1201_v8  ;;  %v1259_v21 = vrot.slane %v1115_v9, 1  ;;  %v1014_v40 = vld [vmem:[#allocation8 + $0x60] sm:$0xff]  ;;  %v1007_v9 = vld [vmem:[#allocation8 + $0x28] sm:$0xff] }
 0x16d   : > { %980 = vst [vmem:[#allocation2 + $0x58] sm:$0xf0] %v956_v48  ;;  %v957_v53 = vrot.slane %v922_v49, 4  ;;  %v925_v54 = vmax.f32 %v917_v44, 0.0  ;;  %v918_v51 = vadd.f32 %v906_v27, %v888_v50  ;;  %4657 = vmatpush3.msra.mxu0 %v1185_v45  ;;  %v1031_v27 = vld [vmem:[#allocation8 + $0xe8] sm:$0xff]  ;;  %v1062_v8 = vld [vmem:[#allocation8 + $0x1e0] sm:$0xff] }
 0x16e   : > { %4658 = vmatprep.subr.mxu0 %v1200_v31  ;;  %v1260_v28 = vsel %vm357_vm0, %v6121_v46, %v1259_v21  ;;  %v991_v41 = vld [vmem:[#allocation2 + $0x38] sm:$0xff]  ;;  %v1029_v46 = vld [vmem:[#allocation8 + $0xd8] sm:$0xff]  ;;  %v1028_v44 = vld [vmem:[#allocation8 + $0xd0] sm:$0xff] }
 0x16f   : > { %981 = vst [vmem:[#allocation2 + $0x20] sm:$0xf0] %v957_v53  ;;  %v962_v56 = vrot.slane %v925_v54, 4  ;;  %v926_v32 = vmax.f32 %v918_v51, 0.0  ;;  %4659 = vmatpush3.msra.mxu0 %v1184_v52  ;;  %v1046_v43 = vld [vmem:[#allocation8 + $0x160] sm:$0xff]  ;;  %v1061_v49 = vld [vmem:[#allocation8 + $0x1d8] sm:$0xff] }
 0x170   : > { %4660 = vmatprep.subr.mxu0 %v1199_v0  ;;  %v1045_v50 = vld [vmem:[#allocation8 + $0x158] sm:$0xff]  ;;  %v1012_v31 = vld [vmem:[#allocation8 + $0x50] sm:$0xff]  ;;  %v1011_v51 = vld [vmem:[#allocation8 + $0x48] sm:$0xff] }
 0x171   : > { %v6147_v59 = vsel %vm953_vm3, %v956_v48, %v962_v56  ;;  %988 = vst [vmem:[#allocation2 + $0x18] sm:$0xf] %v962_v56  ;;  %v964_v60 = vrot.slane %v926_v32, 4  ;;  %4661 = vmatpush3.msra.mxu0 %v1183_v55  ;;  %v1013_v48 = vld [vmem:[#allocation8 + $0x58] sm:$0xff]  ;;  %v1060_v52 = vld [vmem:[#allocation8 + $0x1d0] sm:$0xff]  ;;  %v1059_v0 = vld [vmem:[#allocation8 + $0x1c8] sm:$0xff] }
 0x172   : > { %984 = vst [vmem:[#allocation2 + $0x40] sm:$0xff] %v6147_v59  ;;  %4662 = vmatprep.subr.mxu0 %v1198_v57  ;;  %v1241_v7 = vrot.slane %v6147_v59, 1  ;;  %v1044_v54 = vld [vmem:[#allocation8 + $0x150] sm:$0xff]  ;;  %v1026_v55 = vld [vmem:[#allocation8 + $0xc0] sm:$0xff]  ;;  %v1043_v56 = vld [vmem:[#allocation8 + $0x148] sm:$0xff] }
 0x173   : > { %v6151_v1 = vsel %vm953_vm3, %v957_v53, %v964_v60  ;;  %989 = vst [vmem:[#allocation2 + $0x68] sm:$0xf] %v964_v60  ;;  %4663 = vmatpush3.msra.mxu0 %v1182_v58  ;;  %v1027_v53 = vld [vmem:[#allocation8 + $0xc8] sm:$0xff]  ;;  %v1010_v32 = vld [vmem:[#allocation8 + $0x40] sm:$0xff]  ;;  %v1025_v58 = vld [vmem:[#allocation8 + $0xb8] sm:$0xff] }
 0x174   : > { %985 = vst [vmem:[#allocation2 + $0x50] sm:$0xff] %v6151_v1  ;;  %4664 = vmatprep.subr.mxu0 %v1197_v61  ;;  %v1101_v4 = vld [vmem:[#allocation2 + $0x58] sm:$0xfe]  ;;  %v1244_v16 = vrot.slane %v6151_v1, 1  ;;  %v1009_v61 = vld [vmem:[#allocation8 + $0x38] sm:$0xff]  ;;  %v1004_v21 = vld [vmem:[#allocation8 + $0x10] sm:$0xff] }
 0x175   : > { %v1240_v6 = vrot.slane %v1101_v4, 1  ;;  %4665 = vmatpush3.msra.mxu0 %v1181_v63  ;;  %v993_v45 = vld [vmem:[#allocation2 + $0x58] sm:$0xff]  ;;  %v1024_v63 = vld [vmem:[#allocation8 + $0xb0] sm:$0xff] }
 0x176   : > { %4710 = vmatprep.subr.mxu0 %v1065_v3  ;;  %v1102_v11 = vld [vmem:[#allocation2 + $0x20] sm:$0xfe]  ;;  %v1058_v57 = vld [vmem:[#allocation8 + $0x1c0] sm:$0xff]  ;;  %v1041_v3 = vld [vmem:[#allocation8 + $0x138] sm:$0xff] }
 0x177   : > { %v1242_v13 = vsel %vm357_vm0, %v1240_v6, %v1241_v7  ;;  %v1243_v15 = vrot.slane %v1102_v11, 1  ;;  %v1042_v60 = vld [vmem:[#allocation8 + $0x140] sm:$0xff]  ;;  %v1008_v4 = vld [vmem:[#allocation8 + $0x30] sm:$0xff]  ;;  %v1023_v6 = vld [vmem:[#allocation8 + $0xa8] sm:$0xff] }
 0x178   : > { %1412 = vmatprep.mubr.f32.mxu1 %v1242_v13  ;;  %v1113_v18 = vld [vmem:[#allocation2 + $0x18] sm:$0x1]  ;;  %v1055_v10 = vld [vmem:[#allocation8 + $0x1a8] sm:$0xff] }
 0x179   : > { %1413 = vmatmul.mubr.f32.vlgmr.msra.gmra.mxu1 %v1239_v17  ;;  %v1255_v22 = vrot.slane %v1113_v18, 1  ;;  %v1245_v23 = vsel %vm357_vm0, %v1243_v15, %v1244_v16  ;;  %v1022_v11 = vld [vmem:[#allocation8 + $0xa0] sm:$0xff]  ;;  %v1021_v15 = vld [vmem:[#allocation8 + $0x98] sm:$0xff]  ;;  %v1003_v25 = vld [vmem:[#allocation8 + $0x8] sm:$0xff] }
 0x17a   : > { %4673 = vmatpush3.msra.mxu1 %v1017_v14  ;;  %1488 = vmatmul.mubr.f32.vlgmr.msra.gmra.mxu0 %v1245_v23  ;;  %v1114_v2 = vld [vmem:[#allocation2 + $0x68] sm:$0x1]  ;;  %v1006_v13 = vld [vmem:[#allocation8 + $0x20] sm:$0xff]  ;;  %v1005_v17 = vld [vmem:[#allocation8 + $0x18] sm:$0xff] }
 0x17b   : > { %v1256_v29 = vsel %vm357_vm0, %v1241_v7, %v1255_v22  ;;  %4674 = vmatprep.subr.mxu1 %v1032_v19  ;;  %4711 = vmatpush3.msra.mxu0 %v1049_v20  ;;  %v1257_v33 = vrot.slane %v1114_v2, 1  ;;  %v1040_v7 = vld [vmem:[#allocation8 + $0x130] sm:$0xff]  ;;  %v1054_v14 = vld [vmem:[#allocation8 + $0x1a0] sm:$0xff]  ;;  %v1053_v18 = vld [vmem:[#allocation8 + $0x198] sm:$0xff] }
 0x17c   : > { %1417 = vmatprep.mubr.f32.mxu1 %v1256_v29  ;;  %4675 = vmatpush3.msra.mxu1 %v1016_v24  ;;  %v1020_v19 = vld [vmem:[#allocation8 + $0x90] sm:$0xff]  ;;  %v1037_v20 = vld [vmem:[#allocation8 + $0x118] sm:$0xff]  ;;  %v1019_v23 = vld [vmem:[#allocation8 + $0x88] sm:$0xff] }
 0x17d   : > { %4712 = vmatprep.subr.mxu0 %v1064_v26  ;;  %4676 = vmatprep.subr.mxu1 %v1031_v27  ;;  %v1258_v37 = vsel %vm357_vm0, %v1244_v16, %v1257_v33  ;;  %v1038_v16 = vld [vmem:[#allocation8 + $0x120] sm:$0xff]  ;;  %v1052_v22 = vld [vmem:[#allocation8 + $0x190] sm:$0xff]  ;;  %v1051_v26 = vld [vmem:[#allocation8 + $0x188] sm:$0xff] }
 0x17e   : > { %4713 = vmatpush3.msra.mxu0 %v1048_v30  ;;  %1418 = vmatmul.mubr.f32.gmra.mxu1 %v1254_v35  ;;  %v1036_v24 = vld [vmem:[#allocation8 + $0x110] sm:$0xff]  ;;  %v1018_v27 = vld [vmem:[#allocation8 + $0x80] sm:$0xff]  ;;  %v1035_v2 = vld [vmem:[#allocation8 + $0x108] sm:$0xff] }
 0x17f   : > { %1492 = vmatprep.mubr.f32.mxu0 %v1260_v28  ;;  %4677 = vmatpush3.msra.mxu1 %v1015_v34  ;;  %v1002_v29 = vld [vmem:[#allocation8] sm:$0xff]  ;;  %v1097_v28 = vld [vmem:[#allocation8 + $0x2f8] sm:$0xff]  ;;  %v6165_v35 = vld [vmem:[#allocation2] sm:$0xff] }
 0x180   : > { %4714 = vmatprep.subr.mxu0 %v1063_v36  ;;  %1493 = vmatmul.mubr.f32.gmra.mxu0 %v1258_v37  ;;  %v1050_v30 = vld [vmem:[#allocation8 + $0x180] sm:$0xff]  ;;  %v1081_v34 = vld [vmem:[#allocation8 + $0x278] sm:$0xff] }
 0x181   : > { %4678 = vmatprep.subr.mxu1 %v1030_v39  ;;  %1562 = vmatprep.mubr.f32.mxu1 %v991_v41  ;;  %v1034_v33 = vld [vmem:[#allocation8 + $0x100] sm:$0xff]  ;;  %v1767_v36 = vld [vmem:[#allocation8 + $0x6f8] sm:$0xff]  ;;  %v1096_v39 = vld [vmem:[#allocation8 + $0x2f0] sm:$0xff] }
 0x182   : > { %4715 = vmatpush3.msra.mxu0 %v1047_v38  ;;  %4679 = vmatpush3.msra.mxu1 %v1014_v40  ;;  %v992_v37 = vld [vmem:[#allocation2 + $0x78] sm:$0xff]  ;;  %v1751_v38 = vld [vmem:[#allocation8 + $0x678] sm:$0xff]  ;;  %v1080_v40 = vld [vmem:[#allocation8 + $0x270] sm:$0xff] }
 0x183   : > { %4716 = vmatprep.subr.mxu0 %v1062_v8  ;;  %1637 = vmatprep.mubr.f32.mxu0 %v993_v45  ;;  %v1766_v41 = vld [vmem:[#allocation8 + $0x6f0] sm:$0xff]  ;;  %v1724_v8 = vld [vmem:[#allocation2 + $0x38] sm:$0xfc] }
 0x184   : > { %4680 = vmatprep.subr.mxu1 %v1029_v46  ;;  %4717 = vmatpush3.msra.mxu0 %v1046_v43  ;;  %v1095_v46 = vld [vmem:[#allocation8 + $0x2e8] sm:$0xff]  ;;  %v1750_v43 = vld [vmem:[#allocation8 + $0x670] sm:$0xff] }
 0x185   : > { %4681 = vmatpush3.msra.mxu1 %v1013_v48  ;;  %4718 = vmatprep.subr.mxu0 %v1061_v49  ;;  %v1079_v45 = vld [vmem:[#allocation8 + $0x268] sm:$0xff]  ;;  %v1847_v49 = vrot.slane %v1724_v8, 2 }
 0x186   : > { %4682 = vmatprep.subr.mxu1 %v1028_v44  ;;  %4719 = vmatpush3.msra.mxu0 %v1045_v50  ;;  %v1765_v48 = vld [vmem:[#allocation8 + $0x6e8] sm:$0xff]  ;;  %v1094_v44 = vld [vmem:[#allocation8 + $0x2e0] sm:$0xff] }
 0x187   : > { %4683 = vmatpush3.msra.mxu1 %v1012_v31  ;;  %4720 = vmatprep.subr.mxu0 %v1060_v52  ;;  %v1749_v50 = vld [vmem:[#allocation8 + $0x668] sm:$0xff]  ;;  %v1848_v31 = vrot.slane %v6115_v42, 2  ;;  %v1078_v52 = vld [vmem:[#allocation8 + $0x260] sm:$0xff] }
 0x188   : > { %4684 = vmatprep.subr.mxu1 %v1027_v53  ;;  %4721 = vmatpush3.msra.mxu0 %v1044_v54  ;;  %v1764_v53 = vld [vmem:[#allocation8 + $0x6e0] sm:$0xff]  ;;  %v1093_v54 = vld [vmem:[#allocation8 + $0x2d8] sm:$0xff]  ;;  %v1737_v8 = vld [vmem:[#allocation8 + $0x608] sm:$0xff] }
 0x189   : > { %4685 = vmatpush3.msra.mxu1 %v1011_v51  ;;  %4722 = vmatprep.subr.mxu0 %v1059_v0  ;;  %v1849_v51 = vsel %vm717_vm2, %v1847_v49, %v1848_v31  ;;  %v1748_v0 = vld [vmem:[#allocation8 + $0x660] sm:$0xff]  ;;  %v1799_v49 = vld [vmem:[#allocation8 + $0x7f8] sm:$0xff] }
 0x18a   : > { %4686 = vmatprep.subr.mxu1 %v1026_v55  ;;  %4723 = vmatpush3.msra.mxu0 %v1043_v56  ;;  %v1077_v55 = vld [vmem:[#allocation8 + $0x258] sm:$0xff] }
 0x18b   : > { %4687 = vmatpush3.msra.mxu1 %v1010_v32  ;;  %4724 = vmatprep.subr.mxu0 %v1058_v57  ;;  %v1763_v56 = vld [vmem:[#allocation8 + $0x6d8] sm:$0xff]  ;;  %v1092_v32 = vld [vmem:[#allocation8 + $0x2d0] sm:$0xff] }
 0x18c   : > { %4688 = vmatprep.subr.mxu1 %v1025_v58  ;;  %4725 = vmatpush3.msra.mxu0 %v1042_v60  ;;  %v1747_v57 = vld [vmem:[#allocation8 + $0x658] sm:$0xff]  ;;  %v1076_v58 = vld [vmem:[#allocation8 + $0x250] sm:$0xff]  ;;  %v1091_v60 = vld [vmem:[#allocation8 + $0x2c8] sm:$0xff] }
 0x18d   : > { %4689 = vmatpush3.msra.mxu1 %v1009_v61  ;;  %4726 = vmatprep.subr.mxu0 %v1057_v62  ;;  %v1746_v61 = vld [vmem:[#allocation8 + $0x650] sm:$0xff]  ;;  %v1075_v62 = vld [vmem:[#allocation8 + $0x248] sm:$0xff] }
 0x18e   : > { %4690 = vmatprep.subr.mxu1 %v1024_v63  ;;  %4727 = vmatpush3.msra.mxu0 %v1041_v3  ;;  %v1761_v63 = vld [vmem:[#allocation8 + $0x6c8] sm:$0xff]  ;;  %v1090_v3 = vld [vmem:[#allocation8 + $0x2c0] sm:$0xff] }
 0x18f   : > { %4691 = vmatpush3.msra.mxu1 %v1008_v4  ;;  %4728 = vmatprep.subr.mxu0 %v1056_v5  ;;  %v1745_v4 = vld [vmem:[#allocation8 + $0x648] sm:$0xff]  ;;  %v1074_v5 = vld [vmem:[#allocation8 + $0x240] sm:$0xff] }
 0x190   : > { %4692 = vmatprep.subr.mxu1 %v1023_v6  ;;  %4729 = vmatpush3.msra.mxu0 %v1040_v7  ;;  %v1760_v6 = vld [vmem:[#allocation8 + $0x6c0] sm:$0xff]  ;;  %v1089_v7 = vld [vmem:[#allocation8 + $0x2b8] sm:$0xff] }
 0x191   : > { %4693 = vmatpush3.msra.mxu1 %v1007_v9  ;;  %4730 = vmatprep.subr.mxu0 %v1055_v10  ;;  %v1744_v9 = vld [vmem:[#allocation8 + $0x640] sm:$0xff]  ;;  %v1073_v10 = vld [vmem:[#allocation8 + $0x238] sm:$0xff] }
 0x192   : > { %4694 = vmatprep.subr.mxu1 %v1022_v11  ;;  %4731 = vmatpush3.msra.mxu0 %v1039_v12  ;;  %v1759_v11 = vld [vmem:[#allocation8 + $0x6b8] sm:$0xff]  ;;  %v1088_v12 = vld [vmem:[#allocation8 + $0x2b0] sm:$0xff] }
 0x193   : > { %4695 = vmatpush3.msra.mxu1 %v1006_v13  ;;  %4732 = vmatprep.subr.mxu0 %v1054_v14  ;;  %v1743_v13 = vld [vmem:[#allocation8 + $0x638] sm:$0xff]  ;;  %v1072_v14 = vld [vmem:[#allocation8 + $0x230] sm:$0xff] }
 0x194   : > { %4696 = vmatprep.subr.mxu1 %v1021_v15  ;;  %4733 = vmatpush3.msra.mxu0 %v1038_v16  ;;  %v1758_v15 = vld [vmem:[#allocation8 + $0x6b0] sm:$0xff]  ;;  %v1087_v16 = vld [vmem:[#allocation8 + $0x2a8] sm:$0xff] }
 0x195   : > { %4697 = vmatpush3.msra.mxu1 %v1005_v17  ;;  %4734 = vmatprep.subr.mxu0 %v1053_v18  ;;  %v1742_v17 = vld [vmem:[#allocation8 + $0x630] sm:$0xff]  ;;  %v1071_v18 = vld [vmem:[#allocation8 + $0x228] sm:$0xff] }
 0x196   : > { %4698 = vmatprep.subr.mxu1 %v1020_v19  ;;  %4735 = vmatpush3.msra.mxu0 %v1037_v20  ;;  %v1757_v19 = vld [vmem:[#allocation8 + $0x6a8] sm:$0xff]  ;;  %v1086_v20 = vld [vmem:[#allocation8 + $0x2a0] sm:$0xff] }
 0x197   : > { %4699 = vmatpush3.msra.mxu1 %v1004_v21  ;;  %4736 = vmatprep.subr.mxu0 %v1052_v22  ;;  %v1741_v21 = vld [vmem:[#allocation8 + $0x628] sm:$0xff]  ;;  %v1070_v22 = vld [vmem:[#allocation8 + $0x220] sm:$0xff] }
 0x198   : > { %4700 = vmatprep.subr.mxu1 %v1019_v23  ;;  %4737 = vmatpush3.msra.mxu0 %v1036_v24  ;;  %v1756_v23 = vld [vmem:[#allocation8 + $0x6a0] sm:$0xff]  ;;  %v1085_v24 = vld [vmem:[#allocation8 + $0x298] sm:$0xff] }
 0x199   : > { %4701 = vmatpush3.msra.mxu1 %v1003_v25  ;;  %4738 = vmatprep.subr.mxu0 %v1051_v26  ;;  %v1740_v25 = vld [vmem:[#allocation8 + $0x620] sm:$0xff]  ;;  %v1069_v26 = vld [vmem:[#allocation8 + $0x218] sm:$0xff] }
 0x19a   : > { %4702 = vmatprep.subr.mxu1 %v1018_v27  ;;  %4739 = vmatpush3.msra.mxu0 %v1035_v2  ;;  %v1755_v27 = vld [vmem:[#allocation8 + $0x698] sm:$0xff]  ;;  %v1084_v2 = vld [vmem:[#allocation8 + $0x290] sm:$0xff] }
 0x19b   : > { %4703 = vmatpush3.msra.mxu1 %v1002_v29  ;;  %4740 = vmatprep.subr.mxu0 %v1050_v30  ;;  %v1739_v29 = vld [vmem:[#allocation8 + $0x618] sm:$0xff]  ;;  %v1068_v30 = vld [vmem:[#allocation8 + $0x210] sm:$0xff] }
 0x19c   : > { %1563 = vmatmul.mubr.f32.vlgmr.msra.gmra.mxu1 %v6165_v35  ;;  %4741 = vmatpush3.msra.mxu0 %v1034_v33  ;;  %v1723_v33 = vld [vmem:[#allocation2] sm:$0xfc] }
 0x19d   : > { %4748 = vmatprep.subr.mxu1 %v1097_v28  ;;  %1567 = vmatprep.mubr.f32.mxu1 %v6115_v42  ;;  %v1754_v28 = vld [vmem:[#allocation8 + $0x690] sm:$0xff]  ;;  %v1796_v42 = vld [vmem:[#allocation8 + $0x7e0] sm:$0xff] }
 0x19e   : > { %1638 = vmatmul.mubr.f32.vlgmr.msra.gmra.mxu0 %v992_v37  ;;  %4749 = vmatpush3.msra.mxu1 %v1081_v34  ;;  %v1083_v34 = vld [vmem:[#allocation8 + $0x288] sm:$0xff] }
 0x19f   : > { %4786 = vmatprep.subr.mxu0 %v1767_v36  ;;  %1642 = vmatprep.mubr.f32.mxu0 %v6147_v59  ;;  %v1738_v36 = vld [vmem:[#allocation8 + $0x610] sm:$0xff]  ;;  %v1067_v37 = vld [vmem:[#allocation8 + $0x208] sm:$0xff] }
 0x1a0   : > { %4750 = vmatprep.subr.mxu1 %v1096_v39  ;;  %4787 = vmatpush3.msra.mxu0 %v1751_v38  ;;  %v1753_v39 = vld [vmem:[#allocation8 + $0x688] sm:$0xff]  ;;  %v1082_v38 = vld [vmem:[#allocation8 + $0x280] sm:$0xff] }
 0x1a1   : > { %4751 = vmatpush3.msra.mxu1 %v1080_v40  ;;  %4788 = vmatprep.subr.mxu0 %v1766_v41  ;;  %v1844_v40 = vrot.slane %v1723_v33, 2  ;;  %v6177_v41 = vrot.slane %v6165_v35, 2  ;;  %v1789_v33 = vld [vmem:[#allocation8 + $0x7a8] sm:$0xff] }
 0x1a2   : > { %1568 = vmatmul.mubr.f32.gmra.mxu1 %v6165_v35  ;;  %4752 = vmatprep.subr.mxu1 %v1095_v46  ;;  %v1066_v46 = vld [vmem:[#allocation8 + $0x200] sm:$0xff] }
 0x1a3   : > { %4789 = vmatpush3.msra.mxu0 %v1750_v43  ;;  %4753 = vmatpush3.msra.mxu1 %v1079_v45  ;;  %v1730_v43 = vld [vmem:[#allocation2 + $0x48] sm:$0x3]  ;;  %v1752_v45 = vld [vmem:[#allocation8 + $0x680] sm:$0xff] }
 0x1a4   : > { %1643 = vmatmul.mubr.f32.gmra.mxu0 %v6124_v47  ;;  %4790 = vmatprep.subr.mxu0 %v1765_v48  ;;  %v1762_v47 = vld [vmem:[#allocation8 + $0x6d0] sm:$0xff]  ;;  %v1736_v48 = vld [vmem:[#allocation8 + $0x600] sm:$0xff] }
 0x1a5   : > { %4754 = vmatprep.subr.mxu1 %v1094_v44  ;;  %4791 = vmatpush3.msra.mxu0 %v1749_v50  ;;  %v1846_v44 = vsel %vm717_vm2, %v1844_v40, %v6177_v41  ;;  %v1864_v50 = vrot.slane %v1730_v43, 2  ;;  %v1772_v40 = vld [vmem:[#allocation8 + $0x720] sm:$0xff] }
 0x1a6   : > { %1950 = vmatprep.mubr.f32.mxu0 %v1849_v51  ;;  %4755 = vmatpush3.msra.mxu1 %v1078_v52  ;;  %v994_v52 = vld [vmem:[#allocation2 + $0x20] sm:$0xff]  ;;  %v1804_v43 = vld [vmem:[#allocation8 + $0x820] sm:$0xff] }
 0x1a7   : > { %4792 = vmatprep.subr.mxu0 %v1764_v53  ;;  %4756 = vmatprep.subr.mxu1 %v1093_v54  ;;  %v1783_v53 = vld [vmem:[#allocation8 + $0x778] sm:$0xff]  ;;  %v1798_v51 = vld [vmem:[#allocation8 + $0x7f0] sm:$0xff] }
 0x1a8   : > { %4793 = vmatpush3.msra.mxu0 %v1748_v0  ;;  %4757 = vmatpush3.msra.mxu1 %v1077_v55  ;;  %v1831_v54 = vld [vmem:[#allocation8 + $0x8f8] sm:$0xff]  ;;  %v1726_v0 = vld [vmem:[#allocation2 + $0x58] sm:$0xfc] }
 0x1a9   : > { %4794 = vmatprep.subr.mxu0 %v1763_v56  ;;  %4758 = vmatprep.subr.mxu1 %v1092_v32  ;;  %v1815_v55 = vld [vmem:[#allocation8 + $0x878] sm:$0xff]  ;;  %v1865_v56 = vsel %vm717_vm2, %v1848_v31, %v1864_v50  ;;  %v1782_v32 = vld [vmem:[#allocation8 + $0x770] sm:$0xff]  ;;  %v1813_v31 = vld [vmem:[#allocation8 + $0x868] sm:$0xff] }
 0x1aa   : > { %4795 = vmatpush3.msra.mxu0 %v1747_v57  ;;  %4759 = vmatpush3.msra.mxu1 %v1076_v58  ;;  %v1830_v57 = vld [vmem:[#allocation8 + $0x8f0] sm:$0xff]  ;;  %v1797_v58 = vld [vmem:[#allocation8 + $0x7e8] sm:$0xff]  ;;  %v1803_v50 = vld [vmem:[#allocation8 + $0x818] sm:$0xff] }
 0x1ab   : > { %4796 = vmatprep.subr.mxu0 %v1762_v47  ;;  %4760 = vmatprep.subr.mxu1 %v1091_v60  ;;  %v1853_v47 = vrot.slane %v1726_v0, 2  ;;  %v1814_v60 = vld [vmem:[#allocation8 + $0x870] sm:$0xff]  ;;  %v1785_v0 = vld [vmem:[#allocation8 + $0x788] sm:$0xff] }
 0x1ac   : > { %4797 = vmatpush3.msra.mxu0 %v1746_v61  ;;  %4761 = vmatpush3.msra.mxu1 %v1075_v62  ;;  %v1781_v61 = vld [vmem:[#allocation8 + $0x768] sm:$0xff]  ;;  %v1854_v62 = vrot.slane %v6147_v59, 2 }
 0x1ad   : > { %4798 = vmatprep.subr.mxu0 %v1761_v63  ;;  %4762 = vmatprep.subr.mxu1 %v1090_v3  ;;  %v1829_v63 = vld [vmem:[#allocation8 + $0x8e8] sm:$0xff] }
 0x1ae   : > { %4799 = vmatpush3.msra.mxu0 %v1745_v4  ;;  %4763 = vmatpush3.msra.mxu1 %v1074_v5  ;;  %v1855_v3 = vsel %vm717_vm2, %v1853_v47, %v1854_v62  ;;  %v1780_v4 = vld [vmem:[#allocation8 + $0x760] sm:$0xff]  ;;  %v1817_v47 = vld [vmem:[#allocation8 + $0x888] sm:$0xff] }
 0x1af   : > { %4800 = vmatprep.subr.mxu0 %v1760_v6  ;;  %4764 = vmatprep.subr.mxu1 %v1089_v7  ;;  %v1828_v5 = vld [vmem:[#allocation8 + $0x8e0] sm:$0xff]  ;;  %v1795_v6 = vld [vmem:[#allocation8 + $0x7d8] sm:$0xff] }
 0x1b0   : > { %4801 = vmatpush3.msra.mxu0 %v1744_v9  ;;  %4765 = vmatpush3.msra.mxu1 %v1073_v10  ;;  %v1812_v7 = vld [vmem:[#allocation8 + $0x860] sm:$0xff]  ;;  %v1779_v9 = vld [vmem:[#allocation8 + $0x758] sm:$0xff] }
 0x1b1   : > { %4802 = vmatprep.subr.mxu0 %v1759_v11  ;;  %4766 = vmatprep.subr.mxu1 %v1088_v12  ;;  %v1827_v10 = vld [vmem:[#allocation8 + $0x8d8] sm:$0xff]  ;;  %v1794_v11 = vld [vmem:[#allocation8 + $0x7d0] sm:$0xff] }
 0x1b2   : > { %4803 = vmatpush3.msra.mxu0 %v1743_v13  ;;  %4767 = vmatpush3.msra.mxu1 %v1072_v14  ;;  %v1811_v12 = vld [vmem:[#allocation8 + $0x858] sm:$0xff]  ;;  %v1778_v13 = vld [vmem:[#allocation8 + $0x750] sm:$0xff] }
 0x1b3   : > { %4804 = vmatprep.subr.mxu0 %v1758_v15  ;;  %4768 = vmatprep.subr.mxu1 %v1087_v16  ;;  %v1826_v14 = vld [vmem:[#allocation8 + $0x8d0] sm:$0xff]  ;;  %v1793_v15 = vld [vmem:[#allocation8 + $0x7c8] sm:$0xff] }
 0x1b4   : > { %4805 = vmatpush3.msra.mxu0 %v1742_v17  ;;  %4769 = vmatpush3.msra.mxu1 %v1071_v18  ;;  %v1810_v16 = vld [vmem:[#allocation8 + $0x850] sm:$0xff]  ;;  %v1777_v17 = vld [vmem:[#allocation8 + $0x748] sm:$0xff] }
 0x1b5   : > { %4806 = vmatprep.subr.mxu0 %v1757_v19  ;;  %4770 = vmatprep.subr.mxu1 %v1086_v20  ;;  %v1825_v18 = vld [vmem:[#allocation8 + $0x8c8] sm:$0xff]  ;;  %v1792_v19 = vld [vmem:[#allocation8 + $0x7c0] sm:$0xff] }
 0x1b6   : > { %4807 = vmatpush3.msra.mxu0 %v1741_v21  ;;  %4771 = vmatpush3.msra.mxu1 %v1070_v22  ;;  %v1809_v20 = vld [vmem:[#allocation8 + $0x848] sm:$0xff]  ;;  %v1776_v21 = vld [vmem:[#allocation8 + $0x740] sm:$0xff] }
 0x1b7   : > { %4808 = vmatprep.subr.mxu0 %v1756_v23  ;;  %4772 = vmatprep.subr.mxu1 %v1085_v24  ;;  %v1824_v22 = vld [vmem:[#allocation8 + $0x8c0] sm:$0xff]  ;;  %v1791_v23 = vld [vmem:[#allocation8 + $0x7b8] sm:$0xff] }
 0x1b8   : > { %4809 = vmatpush3.msra.mxu0 %v1740_v25  ;;  %4773 = vmatpush3.msra.mxu1 %v1069_v26  ;;  %v1808_v24 = vld [vmem:[#allocation8 + $0x840] sm:$0xff]  ;;  %v1775_v25 = vld [vmem:[#allocation8 + $0x738] sm:$0xff] }
 0x1b9   : > { %4810 = vmatprep.subr.mxu0 %v1755_v27  ;;  %4774 = vmatprep.subr.mxu1 %v1084_v2  ;;  %v1823_v26 = vld [vmem:[#allocation8 + $0x8b8] sm:$0xff]  ;;  %v1790_v27 = vld [vmem:[#allocation8 + $0x7b0] sm:$0xff] }
 0x1ba   : > { %4811 = vmatpush3.msra.mxu0 %v1739_v29  ;;  %4775 = vmatpush3.msra.mxu1 %v1068_v30  ;;  %v1807_v2 = vld [vmem:[#allocation8 + $0x838] sm:$0xff]  ;;  %v1774_v29 = vld [vmem:[#allocation8 + $0x730] sm:$0xff] }
 0x1bb   : > { %4812 = vmatprep.subr.mxu0 %v1754_v28  ;;  %4776 = vmatprep.subr.mxu1 %v1083_v34  ;;  %v1822_v30 = vld [vmem:[#allocation8 + $0x8b0] sm:$0xff]  ;;  %v1773_v34 = vld [vmem:[#allocation8 + $0x728] sm:$0xff] }
 0x1bc   : > { %4813 = vmatpush3.msra.mxu0 %v1738_v36  ;;  %4777 = vmatpush3.msra.mxu1 %v1067_v37  ;;  %v1806_v28 = vld [vmem:[#allocation8 + $0x830] sm:$0xff]  ;;  %v1821_v36 = vld [vmem:[#allocation8 + $0x8a8] sm:$0xff]  ;;  %v1788_v37 = vld [vmem:[#allocation8 + $0x7a0] sm:$0xff] }
 0x1bd   : > { %4814 = vmatprep.subr.mxu0 %v1753_v39  ;;  %4778 = vmatprep.subr.mxu1 %v1082_v38  ;;  %v1805_v39 = vld [vmem:[#allocation8 + $0x828] sm:$0xff]  ;;  %v1729_v38 = vld [vmem:[#allocation2 + $0x10] sm:$0x3] }
 0x1be   : > { %4815 = vmatpush3.msra.mxu0 %v1737_v8  ;;  %4779 = vmatpush3.msra.mxu1 %v1066_v46  ;;  %v1820_v8 = vld [vmem:[#allocation8 + $0x8a0] sm:$0xff]  ;;  %v1787_v46 = vld [vmem:[#allocation8 + $0x798] sm:$0xff] }
 0x1bf   : > { %1712 = vmatprep.mubr.f32.mxu1 %v6165_v35  ;;  %4816 = vmatprep.subr.mxu0 %v1752_v45  ;;  %v1771_v45 = vld [vmem:[#allocation8 + $0x718] sm:$0xff] }
 0x1c0   : > { %1713 = vmatmul.mubr.f32.vlgmr.msra.gmra.mxu1 %v994_v52  ;;  %4817 = vmatpush3.msra.mxu0 %v1736_v48  ;;  %v1819_v48 = vld [vmem:[#allocation8 + $0x898] sm:$0xff] }
 0x1c1   : > { %4824 = vmatprep.subr.mxu1 %v1799_v49  ;;  %1951 = vmatmul.mubr.f32.vlgmr.msra.gmra.mxu0 %v1846_v44  ;;  %v1862_v49 = vrot.slane %v1729_v38, 2  ;;  %v1786_v44 = vld [vmem:[#allocation8 + $0x790] sm:$0xff] }
 0x1c2   : > { %4825 = vmatpush3.msra.mxu1 %v1783_v53  ;;  %4862 = vmatprep.subr.mxu0 %v1831_v54  ;;  %v1728_v52 = vld [vmem:[#allocation2 + $0x8] sm:$0xfc] }
 0x1c3   : > { %1955 = vmatprep.mubr.f32.mxu0 %v1865_v56  ;;  %4826 = vmatprep.subr.mxu1 %v1798_v51  ;;  %v1770_v53 = vld [vmem:[#allocation8 + $0x710] sm:$0xff]  ;;  %v1725_v51 = vld [vmem:[#allocation2 + $0x78] sm:$0xfc]  ;;  %v1863_v56 = vsel %vm717_vm2, %v6177_v41, %v1862_v49 }
 0x1c4   : > { %4863 = vmatpush3.msra.mxu0 %v1815_v55  ;;  %1717 = vmatprep.mubr.f32.mxu1 %v6165_v35  ;;  %v1818_v54 = vld [vmem:[#allocation8 + $0x890] sm:$0xff] }
 0x1c5   : > { %4827 = vmatpush3.msra.mxu1 %v1782_v32  ;;  %4864 = vmatprep.subr.mxu0 %v1830_v57  ;;  %v1802_v55 = vld [vmem:[#allocation8 + $0x810] sm:$0xff]  ;;  %v1769_v32 = vld [vmem:[#allocation8 + $0x708] sm:$0xff]  ;;  %v1859_v57 = vrot.slane %v1728_v52, 2  ;;  %v2137_v52 = vld [vmem:[#allocation8 + $0x958] sm:$0xff] }
 0x1c6   : > { %1718 = vmatmul.mubr.f32.gmra.mxu1 %v6151_v1  ;;  %4828 = vmatprep.subr.mxu1 %v1797_v58  ;;  %v1732_v58 = vld [vmem:[#allocation2 + $0x18] sm:$0x3] }
 0x1c7   : > { %4865 = vmatpush3.msra.mxu0 %v1814_v60  ;;  %4829 = vmatpush3.msra.mxu1 %v1781_v61  ;;  %v1784_v60 = vld [vmem:[#allocation8 + $0x780] sm:$0xff]  ;;  %v1850_v61 = vrot.slane %v1725_v51, 2  ;;  %v2169_v51 = vld [vmem:[#allocation8 + $0xa58] sm:$0xff] }
 0x1c8   : > { %2025 = vmatprep.mubr.f32.mxu1 %v1855_v3  ;;  %4866 = vmatprep.subr.mxu0 %v1829_v63  ;;  %v1727_v63 = vld [vmem:[#allocation2 + $0x20] sm:$0xfc]  ;;  %v1816_v3 = vld [vmem:[#allocation8 + $0x880] sm:$0xff] }
 0x1c9   : > { %4830 = vmatprep.subr.mxu1 %v1796_v42  ;;  %4867 = vmatpush3.msra.mxu0 %v1813_v31  ;;  %v1801_v42 = vld [vmem:[#allocation8 + $0x808] sm:$0xff]  ;;  %v1768_v31 = vld [vmem:[#allocation8 + $0x700] sm:$0xff] }
 0x1ca   : > { %4831 = vmatpush3.msra.mxu1 %v1780_v4  ;;  %4868 = vmatprep.subr.mxu0 %v1828_v5  ;;  %v6193_v4 = vld [vmem:[#allocation2 + $0x88] sm:$0xff] }
 0x1cb   : > { %4832 = vmatprep.subr.mxu1 %v1795_v6  ;;  %4869 = vmatpush3.msra.mxu0 %v1812_v7  ;;  %v1851_v5 = vrot.slane %v6193_v4, 2  ;;  %v1868_v6 = vrot.slane %v1732_v58, 2  ;;  %v1734_v7 = vld [vmem:[#allocation2 + $0x60] sm:$0x3] }
 0x1cc   : > { %4833 = vmatpush3.msra.mxu1 %v1779_v9  ;;  %4870 = vmatprep.subr.mxu0 %v1827_v10  ;;  %v1800_v9 = vld [vmem:[#allocation8 + $0x800] sm:$0xff]  ;;  %v1861_v10 = vsel %vm717_vm2, %v1859_v57, %v6177_v41  ;;  %v2135_v57 = vld [vmem:[#allocation8 + $0x948] sm:$0xff] }
 0x1cd   : > { %4834 = vmatprep.subr.mxu1 %v1794_v11  ;;  %4871 = vmatpush3.msra.mxu0 %v1811_v12  ;;  %v1856_v11 = vrot.slane %v1727_v63, 2  ;;  %v1731_v12 = vld [vmem:[#allocation2 + $0x30] sm:$0x3]  ;;  %v2183_v58 = vld [vmem:[#allocation8 + $0xac8] sm:$0xff]  ;;  %v2182_v63 = vld [vmem:[#allocation8 + $0xac0] sm:$0xff] }
 0x1ce   : > { %4835 = vmatpush3.msra.mxu1 %v1778_v13  ;;  %4872 = vmatprep.subr.mxu0 %v1826_v14  ;;  %v1852_v13 = vsel %vm717_vm2, %v1850_v61, %v1851_v5  ;;  %v2157_v14 = vld [vmem:[#allocation8 + $0x9f8] sm:$0xff]  ;;  %v2134_v61 = vld [vmem:[#allocation8 + $0x940] sm:$0xff] }
 0x1cf   : > { %4836 = vmatprep.subr.mxu1 %v1793_v15  ;;  %4873 = vmatpush3.msra.mxu0 %v1810_v16  ;;  %v1857_v15 = vrot.slane %v6151_v1, 2  ;;  %v2141_v16 = vld [vmem:[#allocation8 + $0x978] sm:$0xff]  ;;  %v2188_v1 = vld [vmem:[#allocation8 + $0xaf0] sm:$0xff] }
 0x1d0   : > { %4837 = vmatpush3.msra.mxu1 %v1777_v17  ;;  %4874 = vmatprep.subr.mxu0 %v1825_v18  ;;  %v1872_v17 = vrot.slane %v1734_v7, 2  ;;  %v2114_v18 = vld [vmem:[#allocation2 + $0x38] sm:$0xf8]  ;;  %v2165_v7 = vld [vmem:[#allocation8 + $0xa38] sm:$0xff] }
 0x1d1   : > { %4838 = vmatprep.subr.mxu1 %v1792_v19  ;;  %4875 = vmatpush3.msra.mxu0 %v1809_v20  ;;  %v1869_v19 = vsel %vm717_vm2, %v1854_v62, %v1868_v6  ;;  %v2189_v20 = vld [vmem:[#allocation8 + $0xaf8] sm:$0xff]  ;;  %v2155_v62 = vld [vmem:[#allocation8 + $0x9e8] sm:$0xff]  ;;  %v2148_v6 = vld [vmem:[#allocation8 + $0x9b0] sm:$0xff] }
 0x1d2   : > { %4839 = vmatpush3.msra.mxu1 %v1776_v21  ;;  %4876 = vmatprep.subr.mxu0 %v1824_v22  ;;  %v2156_v21 = vld [vmem:[#allocation8 + $0x9f0] sm:$0xff]  ;;  %v1866_v22 = vrot.slane %v1731_v12, 2  ;;  %v1873_v59 = vsel %vm717_vm2, %v6177_v41, %v1872_v17  ;;  %v2187_v41 = vld [vmem:[#allocation8 + $0xae8] sm:$0xff]  ;;  %v2130_v17 = vld [vmem:[#allocation8 + $0x920] sm:$0xff] }
 0x1d3   : > { %4840 = vmatprep.subr.mxu1 %v1791_v23  ;;  %4877 = vmatpush3.msra.mxu0 %v1808_v24  ;;  %v1733_v23 = vld [vmem:[#allocation2 + $0x68] sm:$0x3]  ;;  %v1858_v24 = vsel %vm717_vm2, %v1856_v11, %v1857_v15  ;;  %v2147_v11 = vld [vmem:[#allocation8 + $0x9a8] sm:$0xff] }
 0x1d4   : > { %4841 = vmatpush3.msra.mxu1 %v1775_v25  ;;  %4878 = vmatprep.subr.mxu0 %v1823_v26  ;;  %v2173_v25 = vld [vmem:[#allocation8 + $0xa78] sm:$0xff]  ;;  %v2140_v26 = vld [vmem:[#allocation8 + $0x970] sm:$0xff] }
 0x1d5   : > { %4842 = vmatprep.subr.mxu1 %v1790_v27  ;;  %4879 = vmatpush3.msra.mxu0 %v1807_v2  ;;  %v2116_v27 = vld [vmem:[#allocation2 + $0x58] sm:$0xf8]  ;;  %v1870_v2 = vrot.slane %v1733_v23, 2  ;;  %v2164_v12 = vld [vmem:[#allocation8 + $0xa30] sm:$0xff] }
 0x1d6   : > { %4843 = vmatpush3.msra.mxu1 %v1774_v29  ;;  %4880 = vmatprep.subr.mxu0 %v1822_v30  ;;  %v2238_v29 = vrot.slane %v2114_v18, 3  ;;  %v1867_v30 = vsel %vm717_vm2, %v1851_v5, %v1866_v22  ;;  %v2181_v5 = vld [vmem:[#allocation8 + $0xab8] sm:$0xff]  ;;  %v2178_v18 = vld [vmem:[#allocation8 + $0xaa0] sm:$0xff]  ;;  %v2113_v23 = vld [vmem:[#allocation2] sm:$0xf8] }
 0x1d7   : > { %4844 = vmatprep.subr.mxu1 %v1789_v33  ;;  %4881 = vmatpush3.msra.mxu0 %v1806_v28  ;;  %v2172_v33 = vld [vmem:[#allocation8 + $0xa70] sm:$0xff]  ;;  %v2139_v28 = vld [vmem:[#allocation8 + $0x968] sm:$0xff]  ;;  %v1871_v38 = vsel %vm717_vm2, %v1857_v15, %v1870_v2  ;;  %v2146_v15 = vld [vmem:[#allocation8 + $0x9a0] sm:$0xff]  ;;  %v6221_v2 = vrot.slane %v6165_v35, 3 }
 0x1d8   : > { %4845 = vmatpush3.msra.mxu1 %v1773_v34  ;;  %4882 = vmatprep.subr.mxu0 %v1821_v36  ;;  %v6207_v34 = vld [vmem:[#allocation2 + $0x80] sm:$0xff]  ;;  %v2177_v22 = vld [vmem:[#allocation8 + $0xa98] sm:$0xff] }
 0x1d9   : > { %4846 = vmatprep.subr.mxu1 %v1788_v37  ;;  %4883 = vmatpush3.msra.mxu0 %v1805_v39  ;;  %v2239_v36 = vrot.slane %v6207_v34, 3  ;;  %v2244_v37 = vrot.slane %v2116_v27, 3  ;;  %v2154_v39 = vld [vmem:[#allocation8 + $0x9e0] sm:$0xff]  ;;  %v2143_v27 = vld [vmem:[#allocation8 + $0x988] sm:$0xff] }
 0x1da   : > { %4847 = vmatpush3.msra.mxu1 %v1772_v40  ;;  %4884 = vmatprep.subr.mxu0 %v1820_v8  ;;  %v2171_v8 = vld [vmem:[#allocation8 + $0xa68] sm:$0xff] }
 0x1db   : > { %4848 = vmatprep.subr.mxu1 %v1787_v46  ;;  %4885 = vmatpush3.msra.mxu0 %v1804_v43  ;;  %v2240_v40 = vsel %vm2234_vm4, %v2238_v29, %v2239_v36  ;;  %v6214_v46 = vld [vmem:[#allocation2 + $0x40] sm:$0xff]  ;;  %v2120_v29 = vld [vmem:[#allocation2 + $0x48] sm:$0x7] }
 0x1dc   : > { %4849 = vmatpush3.msra.mxu1 %v1771_v45  ;;  %4886 = vmatprep.subr.mxu0 %v1819_v48  ;;  %v2245_v43 = vrot.slane %v6214_v46, 3  ;;  %v2138_v45 = vld [vmem:[#allocation8 + $0x960] sm:$0xff] }
 0x1dd   : > { %4850 = vmatprep.subr.mxu1 %v1786_v44  ;;  %4887 = vmatpush3.msra.mxu0 %v1803_v50  ;;  %v2186_v48 = vld [vmem:[#allocation8 + $0xae0] sm:$0xff]  ;;  %v2153_v44 = vld [vmem:[#allocation8 + $0x9d8] sm:$0xff] }
 0x1de   : > { %4851 = vmatpush3.msra.mxu1 %v1770_v53  ;;  %4888 = vmatprep.subr.mxu0 %v1818_v54  ;;  %v2246_v49 = vsel %vm2234_vm4, %v2244_v37, %v2245_v43  ;;  %v2170_v50 = vld [vmem:[#allocation8 + $0xa60] sm:$0xff]  ;;  %v2185_v53 = vld [vmem:[#allocation8 + $0xad8] sm:$0xff]  ;;  %v2152_v54 = vld [vmem:[#allocation8 + $0x9d0] sm:$0xff] }
 0x1df   : > { %4852 = vmatprep.subr.mxu1 %v1785_v0  ;;  %4889 = vmatpush3.msra.mxu0 %v1802_v55  ;;  %v2136_v0 = vld [vmem:[#allocation8 + $0x950] sm:$0xff]  ;;  %v2142_v37 = vld [vmem:[#allocation8 + $0x980] sm:$0xff] }
 0x1e0   : > { %1956 = vmatmul.mubr.f32.gmra.mxu0 %v1863_v56  ;;  %4853 = vmatpush3.msra.mxu1 %v1769_v32  ;;  %v2184_v55 = vld [vmem:[#allocation8 + $0xad0] sm:$0xff]  ;;  %v2151_v56 = vld [vmem:[#allocation8 + $0x9c8] sm:$0xff] }
 0x1e1   : > { %4890 = vmatprep.subr.mxu0 %v1817_v47  ;;  %4854 = vmatprep.subr.mxu1 %v1784_v60  ;;  %v2168_v32 = vld [vmem:[#allocation8 + $0xa50] sm:$0xff]  ;;  %v2150_v47 = vld [vmem:[#allocation8 + $0x9c0] sm:$0xff]  ;;  %v2167_v60 = vld [vmem:[#allocation8 + $0xa48] sm:$0xff] }
 0x1e2   : > { %4891 = vmatpush3.msra.mxu0 %v1801_v42  ;;  %4855 = vmatpush3.msra.mxu1 %v1768_v31  ;;  %v2149_v42 = vld [vmem:[#allocation8 + $0x9b8] sm:$0xff]  ;;  %v2166_v31 = vld [vmem:[#allocation8 + $0xa40] sm:$0xff] }
 0x1e3   : > { %4892 = vmatprep.subr.mxu0 %v1816_v3  ;;  %2026 = vmatmul.mubr.f32.vlgmr.msra.gmra.mxu1 %v1852_v13  ;;  %v2133_v3 = vld [vmem:[#allocation8 + $0x938] sm:$0xff]  ;;  %v2131_v13 = vld [vmem:[#allocation8 + $0x928] sm:$0xff] }
 0x1e4   : > { %4893 = vmatpush3.msra.mxu0 %v1800_v9  ;;  %2100 = vmatprep.mubr.f32.mxu0 %v1861_v10  ;;  %v2132_v9 = vld [vmem:[#allocation8 + $0x930] sm:$0xff] }
 0x1e5   : > { %4900 = vmatprep.subr.mxu1 %v2157_v14  ;;  %2030 = vmatprep.mubr.f32.mxu1 %v1869_v19  ;;  %v2180_v10 = vld [vmem:[#allocation8 + $0xab0] sm:$0xff]  ;;  %v2179_v14 = vld [vmem:[#allocation8 + $0xaa8] sm:$0xff]  ;;  %v2145_v19 = vld [vmem:[#allocation8 + $0x998] sm:$0xff] }
 0x1e6   : > { %2101 = vmatmul.mubr.f32.vlgmr.msra.gmra.mxu0 %v1858_v24  ;;  %4901 = vmatpush3.msra.mxu1 %v2141_v16  ;;  %v2163_v16 = vld [vmem:[#allocation8 + $0xa28] sm:$0xff]  ;;  %v2144_v24 = vld [vmem:[#allocation8 + $0x990] sm:$0xff] }
 0x1e7   : > { %4938 = vmatprep.subr.mxu0 %v2189_v20  ;;  %4902 = vmatprep.subr.mxu1 %v2156_v21  ;;  %v2162_v20 = vld [vmem:[#allocation8 + $0xa20] sm:$0xff]  ;;  %v2129_v21 = vld [vmem:[#allocation8 + $0x918] sm:$0xff] }
 0x1e8   : > { %4939 = vmatpush3.msra.mxu0 %v2173_v25  ;;  %4903 = vmatpush3.msra.mxu1 %v2140_v26  ;;  %v2161_v25 = vld [vmem:[#allocation8 + $0xa18] sm:$0xff]  ;;  %v2128_v26 = vld [vmem:[#allocation8 + $0x910] sm:$0xff] }
 0x1e9   : > { %4940 = vmatprep.subr.mxu0 %v2188_v1  ;;  %2031 = vmatmul.mubr.f32.gmra.mxu1 %v1867_v30  ;;  %v2176_v1 = vld [vmem:[#allocation8 + $0xa90] sm:$0xff]  ;;  %v2127_v30 = vld [vmem:[#allocation8 + $0x908] sm:$0xff] }
 0x1ea   : > { %2105 = vmatprep.mubr.f32.mxu0 %v1873_v59  ;;  %4904 = vmatprep.subr.mxu1 %v2155_v62  ;;  %v2160_v59 = vld [vmem:[#allocation8 + $0xa10] sm:$0xff]  ;;  %v2235_v62 = vrot.slane %v2113_v23, 3  ;;  %v2199_v23 = vld [vmem:[#allocation8 + $0xb48] sm:$0xff] }
 0x1eb   : > { %4941 = vmatpush3.msra.mxu0 %v2172_v33  ;;  %4905 = vmatpush3.msra.mxu1 %v2139_v28  ;;  %v2175_v33 = vld [vmem:[#allocation8 + $0xa88] sm:$0xff] }
 0x1ec   : > { %2106 = vmatmul.mubr.f32.gmra.mxu0 %v1871_v38  ;;  %2341 = vmatprep.mubr.f32.mxu1 %v2240_v40  ;;  %v2115_v28 = vld [vmem:[#allocation2 + $0x78] sm:$0xf8]  ;;  %v2237_v35 = vsel %vm2234_vm4, %v2235_v62, %v6221_v2  ;;  %v2213_v62 = vld [vmem:[#allocation8 + $0xbb8] sm:$0xff] }
 0x1ed   : > { %4942 = vmatprep.subr.mxu0 %v2187_v41  ;;  %4906 = vmatprep.subr.mxu1 %v2154_v39  ;;  %v2159_v41 = vld [vmem:[#allocation8 + $0xa08] sm:$0xff]  ;;  %v2122_v39 = vld [vmem:[#allocation2 + $0x18] sm:$0x7] }
 0x1ee   : > { %4943 = vmatpush3.msra.mxu0 %v2171_v8  ;;  %2416 = vmatprep.mubr.f32.mxu0 %v2246_v49  ;;  %v2126_v38 = vld [vmem:[#allocation8 + $0x900] sm:$0xff]  ;;  %v2255_v8 = vrot.slane %v2120_v29, 3  ;;  %v2119_v49 = vld [vmem:[#allocation2 + $0x10] sm:$0x7] }
 0x1ef   : > { %4907 = vmatpush3.msra.mxu1 %v2138_v45  ;;  %4944 = vmatprep.subr.mxu0 %v2186_v48  ;;  %v2174_v40 = vld [vmem:[#allocation8 + $0xa80] sm:$0xff]  ;;  %v2241_v48 = vrot.slane %v2115_v28, 3 }
 0x1f0   : > { %4908 = vmatprep.subr.mxu1 %v2153_v44  ;;  %4945 = vmatpush3.msra.mxu0 %v2170_v50  ;;  %v2158_v45 = vld [vmem:[#allocation8 + $0xa00] sm:$0xff]  ;;  %v2221_v44 = vld [vmem:[#allocation8 + $0xbf8] sm:$0xff]  ;;  %v2259_v50 = vrot.slane %v2122_v39, 3 }
 0x1f1   : > { %4909 = vmatpush3.msra.mxu1 %v2137_v52  ;;  %4946 = vmatprep.subr.mxu0 %v2185_v53  ;;  %v2242_v52 = vrot.slane %v6193_v4, 3  ;;  %v2205_v53 = vld [vmem:[#allocation8 + $0xb78] sm:$0xff] }
 0x1f2   : > { %4910 = vmatprep.subr.mxu1 %v2152_v54  ;;  %4947 = vmatpush3.msra.mxu0 %v2169_v51  ;;  %v2121_v54 = vld [vmem:[#allocation2 + $0x30] sm:$0x7]  ;;  %v2256_v51 = vsel %vm2234_vm4, %v2239_v36, %v2255_v8  ;;  %v2260_v4 = vsel %vm2234_vm4, %v2245_v43, %v2259_v50  ;;  %v2219_v36 = vld [vmem:[#allocation8 + $0xbe8] sm:$0xff]  ;;  %v2539_v8 = vld [vmem:[#allocation8 + $0xcb0] sm:$0xff] }
 0x1f3   : > { %4911 = vmatpush3.msra.mxu1 %v2136_v0  ;;  %4948 = vmatprep.subr.mxu0 %v2184_v55  ;;  %v2548_v0 = vld [vmem:[#allocation8 + $0xcf8] sm:$0xff]  ;;  %v2253_v55 = vrot.slane %v2119_v49, 3  ;;  %v2195_v49 = vld [vmem:[#allocation8 + $0xb28] sm:$0xff] }
 0x1f4   : > { %4912 = vmatprep.subr.mxu1 %v2151_v56  ;;  %4949 = vmatpush3.msra.mxu0 %v2168_v32  ;;  %v2243_v56 = vsel %vm2234_vm4, %v2241_v48, %v2242_v52  ;;  %v2220_v32 = vld [vmem:[#allocation8 + $0xbf0] sm:$0xff]  ;;  %v2538_v50 = vld [vmem:[#allocation8 + $0xca8] sm:$0xff] }
 0x1f5   : > { %4913 = vmatpush3.msra.mxu1 %v2135_v57  ;;  %4950 = vmatprep.subr.mxu0 %v2183_v58  ;;  %v2532_v57 = vld [vmem:[#allocation8 + $0xc78] sm:$0xff]  ;;  %v2204_v58 = vld [vmem:[#allocation8 + $0xb70] sm:$0xff] }
 0x1f6   : > { %4914 = vmatprep.subr.mxu1 %v2150_v47  ;;  %4951 = vmatpush3.msra.mxu0 %v2167_v60  ;;  %v2547_v47 = vld [vmem:[#allocation8 + $0xcf0] sm:$0xff]  ;;  %v2257_v60 = vrot.slane %v2121_v54, 3  ;;  %v2194_v54 = vld [vmem:[#allocation8 + $0xb20] sm:$0xff] }
 0x1f7   : > { %4915 = vmatpush3.msra.mxu1 %v2134_v61  ;;  %4952 = vmatprep.subr.mxu0 %v2182_v63  ;;  %v2505_v61 = vld [vmem:[#allocation2 + $0x38] sm:$0xf0]  ;;  %v2531_v63 = vld [vmem:[#allocation8 + $0xc70] sm:$0xff] }
 0x1f8   : > { %4916 = vmatprep.subr.mxu1 %v2149_v42  ;;  %4953 = vmatpush3.msra.mxu0 %v2166_v31  ;;  %v2254_v42 = vsel %vm2234_vm4, %v6221_v2, %v2253_v55  ;;  %v2203_v31 = vld [vmem:[#allocation8 + $0xb68] sm:$0xff]  ;;  %v2258_v43 = vsel %vm2234_vm4, %v2242_v52, %v2257_v60  ;;  %v2523_v48 = vld [vmem:[#allocation8 + $0xc30] sm:$0xff]  ;;  %v2210_v52 = vld [vmem:[#allocation8 + $0xba0] sm:$0xff] }
 0x1f9   : > { %4917 = vmatpush3.msra.mxu1 %v2133_v3  ;;  %4954 = vmatprep.subr.mxu0 %v2181_v5  ;;  %v2546_v3 = vld [vmem:[#allocation8 + $0xce8] sm:$0xff]  ;;  %v2628_v5 = vrot.slane %v2505_v61, 4  ;;  %v2521_v55 = vld [vmem:[#allocation8 + $0xc20] sm:$0xff]  ;;  %v2504_v60 = vld [vmem:[#allocation2] sm:$0xf0] }
 0x1fa   : > { %4918 = vmatprep.subr.mxu1 %v2148_v6  ;;  %4955 = vmatpush3.msra.mxu0 %v2165_v7  ;;  %v2218_v6 = vld [vmem:[#allocation8 + $0xbe0] sm:$0xff]  ;;  %v2530_v7 = vld [vmem:[#allocation8 + $0xc68] sm:$0xff]  ;;  %v2535_v61 = vld [vmem:[#allocation8 + $0xc90] sm:$0xff] }
 0x1fb   : > { %4919 = vmatpush3.msra.mxu1 %v2132_v9  ;;  %4956 = vmatprep.subr.mxu0 %v2180_v10  ;;  %v2629_v9 = vrot.slane %v6207_v34, 4  ;;  %v2202_v10 = vld [vmem:[#allocation8 + $0xb60] sm:$0xff] }
 0x1fc   : > { %4920 = vmatprep.subr.mxu1 %v2147_v11  ;;  %4957 = vmatpush3.msra.mxu0 %v2164_v12  ;;  %v2545_v11 = vld [vmem:[#allocation8 + $0xce0] sm:$0xff]  ;;  %v2217_v12 = vld [vmem:[#allocation8 + $0xbd8] sm:$0xff] }
 0x1fd   : > { %4921 = vmatpush3.msra.mxu1 %v2131_v13  ;;  %4958 = vmatprep.subr.mxu0 %v2179_v14  ;;  %v2630_v13 = vsel %vm953_vm3, %v2628_v5, %v2629_v9  ;;  %v2529_v14 = vld [vmem:[#allocation8 + $0xc60] sm:$0xff]  ;;  %v2534_v5 = vld [vmem:[#allocation8 + $0xc88] sm:$0xff] }
 0x1fe   : > { %4922 = vmatprep.subr.mxu1 %v2146_v15  ;;  %4959 = vmatpush3.msra.mxu0 %v2163_v16  ;;  %v2201_v15 = vld [vmem:[#allocation8 + $0xb58] sm:$0xff]  ;;  %v2577_v34 = vld [vmem:[#allocation8 + $0xde0] sm:$0xff] }
 0x1ff   : > { %4923 = vmatpush3.msra.mxu1 %v2130_v17  ;;  %4960 = vmatprep.subr.mxu0 %v2178_v18  ;;  %v2544_v16 = vld [vmem:[#allocation8 + $0xcd8] sm:$0xff]  ;;  %v2216_v17 = vld [vmem:[#allocation8 + $0xbd0] sm:$0xff] }
 0x200   : > { %4924 = vmatprep.subr.mxu1 %v2145_v19  ;;  %4961 = vmatpush3.msra.mxu0 %v2162_v20  ;;  %v2528_v18 = vld [vmem:[#allocation8 + $0xc58] sm:$0xff]  ;;  %v2200_v19 = vld [vmem:[#allocation8 + $0xb50] sm:$0xff] }
 0x201   : > { %4925 = vmatpush3.msra.mxu1 %v2129_v21  ;;  %4962 = vmatprep.subr.mxu0 %v2177_v22  ;;  %v2543_v20 = vld [vmem:[#allocation8 + $0xcd0] sm:$0xff]  ;;  %v2215_v21 = vld [vmem:[#allocation8 + $0xbc8] sm:$0xff] }
 0x202   : > { %4926 = vmatprep.subr.mxu1 %v2144_v24  ;;  %4963 = vmatpush3.msra.mxu0 %v2161_v25  ;;  %v2527_v22 = vld [vmem:[#allocation8 + $0xc50] sm:$0xff]  ;;  %v2542_v24 = vld [vmem:[#allocation8 + $0xcc8] sm:$0xff]  ;;  %v2214_v25 = vld [vmem:[#allocation8 + $0xbc0] sm:$0xff] }
 0x203   : > { %4927 = vmatpush3.msra.mxu1 %v2128_v26  ;;  %4964 = vmatprep.subr.mxu0 %v2176_v1  ;;  %v2526_v1 = vld [vmem:[#allocation8 + $0xc48] sm:$0xff] }
 0x204   : > { %4928 = vmatprep.subr.mxu1 %v2143_v27  ;;  %4965 = vmatpush3.msra.mxu0 %v2160_v59  ;;  %v2198_v27 = vld [vmem:[#allocation8 + $0xb40] sm:$0xff] }
 0x205   : > { %4929 = vmatpush3.msra.mxu1 %v2127_v30  ;;  %4966 = vmatprep.subr.mxu0 %v2175_v33  ;;  %v2541_v59 = vld [vmem:[#allocation8 + $0xcc0] sm:$0xff]  ;;  %v2197_v33 = vld [vmem:[#allocation8 + $0xb38] sm:$0xff] }
 0x206   : > { %4930 = vmatprep.subr.mxu1 %v2142_v37  ;;  %4967 = vmatpush3.msra.mxu0 %v2159_v41  ;;  %v2525_v30 = vld [vmem:[#allocation8 + $0xc40] sm:$0xff]  ;;  %v2540_v37 = vld [vmem:[#allocation8 + $0xcb8] sm:$0xff]  ;;  %v2212_v41 = vld [vmem:[#allocation8 + $0xbb0] sm:$0xff] }
 0x207   : > { %4931 = vmatpush3.msra.mxu1 %v2126_v38  ;;  %4968 = vmatprep.subr.mxu0 %v2174_v40  ;;  %v2524_v38 = vld [vmem:[#allocation8 + $0xc38] sm:$0xff]  ;;  %v2196_v40 = vld [vmem:[#allocation8 + $0xb30] sm:$0xff] }
 0x208   : > { %2342 = vmatmul.mubr.f32.vlgmr.msra.gmra.mxu1 %v2237_v35  ;;  %4969 = vmatpush3.msra.mxu0 %v2158_v45  ;;  %v2211_v35 = vld [vmem:[#allocation8 + $0xba8] sm:$0xff] }
 0x209   : > { %4976 = vmatprep.subr.mxu1 %v2221_v44  ;;  %2346 = vmatprep.mubr.f32.mxu1 %v2256_v51  ;;  %v2537_v51 = vld [vmem:[#allocation8 + $0xca0] sm:$0xff] }
 0x20a   : > { %2417 = vmatmul.mubr.f32.vlgmr.msra.gmra.mxu0 %v2243_v56  ;;  %4977 = vmatpush3.msra.mxu1 %v2205_v53  ;;  %v2522_v53 = vld [vmem:[#allocation8 + $0xc28] sm:$0xff]  ;;  %v2193_v56 = vld [vmem:[#allocation8 + $0xb18] sm:$0xff] }
 0x20b   : > { %5014 = vmatprep.subr.mxu0 %v2548_v0  ;;  %2421 = vmatprep.mubr.f32.mxu0 %v2260_v4  ;;  %v2209_v0 = vld [vmem:[#allocation8 + $0xb98] sm:$0xff]  ;;  %v2208_v4 = vld [vmem:[#allocation8 + $0xb90] sm:$0xff] }
 0x20c   : > { %4978 = vmatprep.subr.mxu1 %v2220_v32  ;;  %5015 = vmatpush3.msra.mxu0 %v2532_v57  ;;  %v2118_v32 = vld [vmem:[#allocation2 + $0x8] sm:$0xf8] }
 0x20d   : > { %4979 = vmatpush3.msra.mxu1 %v2204_v58  ;;  %5016 = vmatprep.subr.mxu0 %v2547_v47  ;;  %v2536_v57 = vld [vmem:[#allocation8 + $0xc98] sm:$0xff]  ;;  %v2192_v47 = vld [vmem:[#allocation8 + $0xb10] sm:$0xff] }
 0x20e   : > { %4980 = vmatprep.subr.mxu1 %v2219_v36  ;;  %5017 = vmatpush3.msra.mxu0 %v2531_v63  ;;  %v2520_v58 = vld [vmem:[#allocation8 + $0xc18] sm:$0xff]  ;;  %v2207_v36 = vld [vmem:[#allocation8 + $0xb88] sm:$0xff]  ;;  %v2250_v63 = vrot.slane %v2118_v32, 3  ;;  %v2559_v32 = vld [vmem:[#allocation8 + $0xd50] sm:$0xff] }
 0x20f   : > { %2347 = vmatmul.mubr.f32.gmra.mxu1 %v2254_v42  ;;  %2422 = vmatmul.mubr.f32.gmra.mxu0 %v2258_v43  ;;  %v2117_v42 = vld [vmem:[#allocation2 + $0x20] sm:$0xf8]  ;;  %v2206_v43 = vld [vmem:[#allocation8 + $0xb80] sm:$0xff] }
 0x210   : > { %4981 = vmatpush3.msra.mxu1 %v2203_v31  ;;  %5018 = vmatprep.subr.mxu0 %v2546_v3  ;;  %v2519_v31 = vld [vmem:[#allocation8 + $0xc10] sm:$0xff]  ;;  %v2191_v3 = vld [vmem:[#allocation8 + $0xb08] sm:$0xff] }
 0x211   : > { %4982 = vmatprep.subr.mxu1 %v2218_v6  ;;  %5019 = vmatpush3.msra.mxu0 %v2530_v7  ;;  %v2625_v6 = vrot.slane %v2504_v60, 4  ;;  %v6244_v7 = vld [vmem:[#allocation2] sm:$0xff] }
 0x212   : > { %2731 = vmatprep.mubr.f32.mxu0 %v2630_v13  ;;  %4983 = vmatpush3.msra.mxu1 %v2202_v10  ;;  %v6247_v10 = vrot.slane %v6244_v7, 4  ;;  %v2190_v13 = vld [vmem:[#allocation8 + $0xb00] sm:$0xff]  ;;  %v2606_v60 = vld [vmem:[#allocation8 + $0xec8] sm:$0xff] }
 0x213   : > { %5020 = vmatprep.subr.mxu0 %v2545_v11  ;;  %4984 = vmatprep.subr.mxu1 %v2217_v12  ;;  %v2124_v11 = vld [vmem:[#allocation2 + $0x60] sm:$0x7] }
 0x214   : > { %5021 = vmatpush3.msra.mxu0 %v2529_v14  ;;  %4985 = vmatpush3.msra.mxu1 %v2201_v15  ;;  %v2518_v12 = vld [vmem:[#allocation8 + $0xc08] sm:$0xff]  ;;  %v2247_v14 = vrot.slane %v2117_v42, 3  ;;  %v2511_v15 = vld [vmem:[#allocation2 + $0x48] sm:$0xf] }
 0x215   : > { %5022 = vmatprep.subr.mxu0 %v2544_v16  ;;  %4986 = vmatprep.subr.mxu1 %v2216_v17  ;;  %v2252_v16 = vsel %vm2234_vm4, %v2250_v63, %v6221_v2  ;;  %v2533_v17 = vld [vmem:[#allocation8 + $0xc80] sm:$0xff]  ;;  %v2590_v63 = vld [vmem:[#allocation8 + $0xe48] sm:$0xff] }
 0x216   : > { %5023 = vmatpush3.msra.mxu0 %v2528_v18  ;;  %4987 = vmatpush3.msra.mxu1 %v2200_v19  ;;  %v4590_v26 = vpop.f32.mrf.mxu0  ;;  %v6251_v18 = vld [vmem:[#allocation2 + $0x50] sm:$0xff] }
 0x217   : > { %5024 = vmatprep.subr.mxu0 %v2543_v20  ;;  %4988 = vmatprep.subr.mxu1 %v2215_v21  ;;  %v2248_v19 = vrot.slane %v6251_v18, 3  ;;  %v2517_v20 = vld [vmem:[#allocation8 + $0xc00] sm:$0xff]  ;;  %v2263_v21 = vrot.slane %v2124_v11, 3 }
 0x218   : > { %5025 = vmatpush3.msra.mxu0 %v2527_v22  ;;  %4989 = vmatpush3.msra.mxu1 %v2199_v23  ;;  %v4591_v29 = vpop.f32.mrf.mxu0  ;;  %v2580_v22 = vld [vmem:[#allocation8 + $0xdf8] sm:$0xff]  ;;  %v2627_v23 = vsel %vm953_vm3, %v2625_v6, %v6247_v10  ;;  %v2589_v6 = vld [vmem:[#allocation8 + $0xe40] sm:$0xff] }
 0x219   : > { %5026 = vmatprep.subr.mxu0 %v2542_v24  ;;  %4990 = vmatprep.subr.mxu1 %v2214_v25  ;;  %v6240_v28 = vadd.f32 %v4591_v29, %v4590_v26  ;;  %v2645_v24 = vrot.slane %v2511_v15, 4  ;;  %v2123_v25 = vld [vmem:[#allocation2 + $0x68] sm:$0x7]  ;;  %v2249_v26 = vsel %vm2234_vm4, %v2247_v14, %v2248_v19  ;;  %v2596_v29 = vld [vmem:[#allocation8 + $0xe78] sm:$0xff] }
 0x21a   : > { %5027 = vmatpush3.msra.mxu0 %v2526_v1  ;;  %4991 = vmatpush3.msra.mxu1 %v2198_v27  ;;  %v4593_v39 = vpop.f32.mrf.mxu0  ;;  %v2564_v1 = vld [vmem:[#allocation8 + $0xd78] sm:$0xff] }
 0x21b   : > { %5028 = vmatprep.subr.mxu0 %v2541_v59  ;;  %4992 = vmatprep.subr.mxu1 %v2213_v62  ;;  %v2612_v27 = vld [vmem:[#allocation8 + $0xef8] sm:$0xff]  ;;  %v2579_v59 = vld [vmem:[#allocation8 + $0xdf0] sm:$0xff]  ;;  %v2507_v62 = vld [vmem:[#allocation2 + $0x58] sm:$0xf0] }
 0x21c   : > { %5029 = vmatpush3.msra.mxu0 %v2525_v30  ;;  %4993 = vmatpush3.msra.mxu1 %v2197_v33  ;;  %v4594_v45 = vpop.f32.mrf.mxu0  ;;  %v2264_v30 = vsel %vm2234_vm4, %v6221_v2, %v2263_v21  ;;  %v2261_v33 = vrot.slane %v2123_v25, 3  ;;  %v2604_v14 = vld [vmem:[#allocation8 + $0xeb8] sm:$0xff]  ;;  %v2555_v21 = vld [vmem:[#allocation8 + $0xd30] sm:$0xff] }
 0x21d   : > { %5030 = vmatprep.subr.mxu0 %v2540_v37  ;;  %4994 = vmatprep.subr.mxu1 %v2212_v41  ;;  %v6242_v44 = vadd.f32 %v4594_v45, %v4593_v39  ;;  %v2646_v37 = vsel %vm953_vm3, %v2629_v9, %v2645_v24  ;;  %v2563_v41 = vld [vmem:[#allocation8 + $0xd70] sm:$0xff]  ;;  %v2635_v45 = vrot.slane %v6214_v46, 4  ;;  %v2594_v9 = vld [vmem:[#allocation8 + $0xe68] sm:$0xff] }
 0x21e   : > { %5031 = vmatpush3.msra.mxu0 %v2524_v38  ;;  %4995 = vmatpush3.msra.mxu1 %v2196_v40  ;;  %v2611_v39 = vld [vmem:[#allocation8 + $0xef0] sm:$0xff]  ;;  %v2578_v38 = vld [vmem:[#allocation8 + $0xde8] sm:$0xff]  ;;  %v2634_v40 = vrot.slane %v2507_v62, 4  ;;  %v2262_v2 = vsel %vm2234_vm4, %v2248_v19, %v2261_v33 }
 0x21f   : > { %5032 = vmatprep.subr.mxu0 %v2539_v8  ;;  %4996 = vmatprep.subr.mxu1 %v2211_v35  ;;  %v2595_v8 = vld [vmem:[#allocation8 + $0xe70] sm:$0xff]  ;;  %v2562_v35 = vld [vmem:[#allocation8 + $0xd68] sm:$0xff] }
 0x220   : > { %5033 = vmatpush3.msra.mxu0 %v2523_v48  ;;  %4997 = vmatpush3.msra.mxu1 %v2195_v49  ;;  %v2610_v48 = vld [vmem:[#allocation8 + $0xee8] sm:$0xff]  ;;  %v2636_v49 = vsel %vm953_vm3, %v2634_v40, %v2635_v45  ;;  %v2587_v24 = vld [vmem:[#allocation8 + $0xe30] sm:$0xff]  ;;  %v2568_v40 = vld [vmem:[#allocation8 + $0xd98] sm:$0xff] }
 0x221   : > { %5034 = vmatprep.subr.mxu0 %v2538_v50  ;;  %4998 = vmatprep.subr.mxu1 %v2210_v52  ;;  %v2561_v50 = vld [vmem:[#allocation8 + $0xd60] sm:$0xff] }
 0x222   : > { %5035 = vmatpush3.msra.mxu0 %v2522_v53  ;;  %4999 = vmatpush3.msra.mxu1 %v2194_v54  ;;  %v2609_v52 = vld [vmem:[#allocation8 + $0xee0] sm:$0xff]  ;;  %v2576_v53 = vld [vmem:[#allocation8 + $0xdd8] sm:$0xff] }
 0x223   : > { %5036 = vmatprep.subr.mxu0 %v2537_v51  ;;  %5000 = vmatprep.subr.mxu1 %v2209_v0  ;;  %v2593_v54 = vld [vmem:[#allocation8 + $0xe60] sm:$0xff]  ;;  %v2560_v51 = vld [vmem:[#allocation8 + $0xd58] sm:$0xff] }
 0x224   : > { %5037 = vmatpush3.msra.mxu0 %v2521_v55  ;;  %5001 = vmatpush3.msra.mxu1 %v2193_v56  ;;  %v2608_v0 = vld [vmem:[#allocation8 + $0xed8] sm:$0xff]  ;;  %v2575_v55 = vld [vmem:[#allocation8 + $0xdd0] sm:$0xff] }
 0x225   : > { %5038 = vmatprep.subr.mxu0 %v2536_v57  ;;  %5002 = vmatprep.subr.mxu1 %v2208_v4  ;;  %v2592_v56 = vld [vmem:[#allocation8 + $0xe58] sm:$0xff]  ;;  %v2607_v57 = vld [vmem:[#allocation8 + $0xed0] sm:$0xff]  ;;  %v2574_v4 = vld [vmem:[#allocation8 + $0xdc8] sm:$0xff] }
 0x226   : > { %5039 = vmatpush3.msra.mxu0 %v2520_v58  ;;  %5003 = vmatpush3.msra.mxu1 %v2192_v47  ;;  %v2591_v58 = vld [vmem:[#allocation8 + $0xe50] sm:$0xff]  ;;  %v2558_v47 = vld [vmem:[#allocation8 + $0xd48] sm:$0xff] }
 0x227   : > { %5040 = vmatprep.subr.mxu0 %v2535_v61  ;;  %5004 = vmatprep.subr.mxu1 %v2207_v36  ;;  %v2573_v36 = vld [vmem:[#allocation8 + $0xdc0] sm:$0xff] }
 0x228   : > { %5041 = vmatpush3.msra.mxu0 %v2519_v31  ;;  %5005 = vmatpush3.msra.mxu1 %v2191_v3  ;;  %v2557_v31 = vld [vmem:[#allocation8 + $0xd40] sm:$0xff] }
 0x229   : > { %5042 = vmatprep.subr.mxu0 %v2534_v5  ;;  %5006 = vmatprep.subr.mxu1 %v2206_v43  ;;  %v2605_v3 = vld [vmem:[#allocation8 + $0xec0] sm:$0xff]  ;;  %v2572_v43 = vld [vmem:[#allocation8 + $0xdb8] sm:$0xff] }
 0x22a   : > { %5043 = vmatpush3.msra.mxu0 %v2518_v12  ;;  %5007 = vmatpush3.msra.mxu1 %v2190_v13  ;;  %v2556_v13 = vld [vmem:[#allocation8 + $0xd38] sm:$0xff] }
 0x22b   : > { %2491 = vmatprep.mubr.f32.mxu1 %v2252_v16  ;;  %5044 = vmatprep.subr.mxu0 %v2533_v17  ;;  %v2571_v16 = vld [vmem:[#allocation8 + $0xdb0] sm:$0xff]  ;;  %v2588_v17 = vld [vmem:[#allocation8 + $0xe38] sm:$0xff] }
 0x22c   : > { %2492 = vmatmul.mubr.f32.vlgmr.msra.gmra.mxu1 %v2249_v26  ;;  %5045 = vmatpush3.msra.mxu0 %v2517_v20 }
 0x22d   : > { %5052 = vmatprep.subr.mxu1 %v2580_v22  ;;  %2732 = vmatmul.mubr.f32.vlgmr.msra.gmra.mxu0 %v2627_v23  ;;  %v2603_v22 = vld [vmem:[#allocation8 + $0xeb0] sm:$0xff]  ;;  %v2570_v23 = vld [vmem:[#allocation8 + $0xda8] sm:$0xff] }
 0x22e   : > { %5053 = vmatpush3.msra.mxu1 %v2564_v1  ;;  %5090 = vmatprep.subr.mxu0 %v2612_v27  ;;  %v2554_v27 = vld [vmem:[#allocation8 + $0xd28] sm:$0xff] }
 0x22f   : > { %2736 = vmatprep.mubr.f32.mxu0 %v2646_v37  ;;  %5054 = vmatprep.subr.mxu1 %v2579_v59  ;;  %v2602_v59 = vld [vmem:[#allocation8 + $0xea8] sm:$0xff]  ;;  %v2553_v37 = vld [vmem:[#allocation8 + $0xd20] sm:$0xff] }
 0x230   : > { %5091 = vmatpush3.msra.mxu0 %v2596_v29  ;;  %2496 = vmatprep.mubr.f32.mxu1 %v2264_v30  ;;  %v2586_v29 = vld [vmem:[#allocation8 + $0xe28] sm:$0xff]  ;;  %v2510_v30 = vld [vmem:[#allocation2 + $0x10] sm:$0xf] }
 0x231   : > { %5055 = vmatpush3.msra.mxu1 %v2563_v41  ;;  %5092 = vmatprep.subr.mxu0 %v2611_v39  ;;  %v2601_v41 = vld [vmem:[#allocation8 + $0xea0] sm:$0xff] }
 0x232   : > { %2497 = vmatmul.mubr.f32.gmra.mxu1 %v2262_v2  ;;  %5056 = vmatprep.subr.mxu1 %v2578_v38  ;;  %v2600_v2 = vld [vmem:[#allocation8 + $0xe98] sm:$0xff] }
 0x233   : > { %5093 = vmatpush3.msra.mxu0 %v2595_v8  ;;  %5057 = vmatpush3.msra.mxu1 %v2562_v35  ;;  %v2585_v8 = vld [vmem:[#allocation8 + $0xe20] sm:$0xff]  ;;  %v2552_v35 = vld [vmem:[#allocation8 + $0xd18] sm:$0xff] }
 0x234   : > { %2806 = vmatprep.mubr.f32.mxu1 %v2636_v49  ;;  %5094 = vmatprep.subr.mxu0 %v2610_v48  ;;  %v2643_v48 = vrot.slane %v2510_v30, 4  ;;  %v2584_v49 = vld [vmem:[#allocation8 + $0xe18] sm:$0xff]  ;;  %v2920_v30 = vld [vmem:[#allocation8 + $0xf68] sm:$0xff] }
 0x235   : > { %5058 = vmatprep.subr.mxu1 %v2577_v34  ;;  %5095 = vmatpush3.msra.mxu0 %v2594_v9  ;;  %v2567_v9 = vld [vmem:[#allocation8 + $0xd90] sm:$0xff] }
 0x236   : > { %5059 = vmatpush3.msra.mxu1 %v2561_v50  ;;  %5096 = vmatprep.subr.mxu0 %v2609_v52  ;;  %v2509_v50 = vld [vmem:[#allocation2 + $0x8] sm:$0xf0]  ;;  %v2599_v52 = vld [vmem:[#allocation8 + $0xe90] sm:$0xff] }
 0x237   : > { %5060 = vmatprep.subr.mxu1 %v2576_v53  ;;  %5097 = vmatpush3.msra.mxu0 %v2593_v54  ;;  %v2506_v53 = vld [vmem:[#allocation2 + $0x78] sm:$0xf0] }
 0x238   : > { %5061 = vmatpush3.msra.mxu1 %v2560_v51  ;;  %5098 = vmatprep.subr.mxu0 %v2608_v0  ;;  %v2566_v54 = vld [vmem:[#allocation8 + $0xd88] sm:$0xff]  ;;  %v2583_v51 = vld [vmem:[#allocation8 + $0xe10] sm:$0xff]  ;;  %v2644_v0 = vsel %vm953_vm3, %v6247_v10, %v2643_v48  ;;  %v2919_v48 = vld [vmem:[#allocation8 + $0xf60] sm:$0xff] }
 0x239   : > { %5062 = vmatprep.subr.mxu1 %v2575_v55  ;;  %5099 = vmatpush3.msra.mxu0 %v2592_v56  ;;  %v4628_v61 = vpop.f32.mrf.mxu1  ;;  %v2550_v55 = vld [vmem:[#allocation8 + $0xd08] sm:$0xff]  ;;  %v2640_v56 = vrot.slane %v2509_v50, 4  ;;  %v2934_v50 = vld [vmem:[#allocation8 + $0xfd8] sm:$0xff] }
 0x23a   : > { %5063 = vmatpush3.msra.mxu1 %v2559_v32  ;;  %5100 = vmatprep.subr.mxu0 %v2607_v57  ;;  %v4666_v42 = vpop.f32.mrf.mxu0  ;;  %v2513_v32 = vld [vmem:[#allocation2 + $0x18] sm:$0xf]  ;;  %v2598_v57 = vld [vmem:[#allocation8 + $0xe88] sm:$0xff] }
 0x23b   : > { %5064 = vmatprep.subr.mxu1 %v2574_v4  ;;  %5101 = vmatpush3.msra.mxu0 %v2591_v58  ;;  %v4629_v5 = vpop.f32.mrf.mxu1  ;;  %v2565_v4 = vld [vmem:[#allocation8 + $0xd80] sm:$0xff]  ;;  %v2631_v58 = vrot.slane %v2506_v53, 4  ;;  %v2966_v53 = vld [vmem:[#allocation8 + $0x10d8] sm:$0xff] }
 0x23c   : > { %5065 = vmatpush3.msra.mxu1 %v2558_v47  ;;  %5102 = vmatprep.subr.mxu0 %v2606_v60  ;;  %v4630_v11 = vadd.f32 %v4629_v5, %v4628_v61  ;;  %v4667_v12 = vpop.f32.mrf.mxu0  ;;  %v2508_v47 = vld [vmem:[#allocation2 + $0x20] sm:$0xf0]  ;;  %v2582_v60 = vld [vmem:[#allocation8 + $0xe08] sm:$0xff]  ;;  %v2549_v61 = vld [vmem:[#allocation8 + $0xd00] sm:$0xff] }
 0x23d   : > { %5066 = vmatprep.subr.mxu1 %v2573_v36  ;;  %5103 = vmatpush3.msra.mxu0 %v2590_v63  ;;  %v4668_v15 = vadd.f32 %v4667_v12, %v4666_v42  ;;  %v2597_v36 = vld [vmem:[#allocation8 + $0xe80] sm:$0xff]  ;;  %v6275_v63 = vld [vmem:[#allocation2 + $0x88] sm:$0xff] }
 0x23e   : > { %5067 = vmatpush3.msra.mxu1 %v2557_v31  ;;  %5104 = vmatprep.subr.mxu0 %v2605_v3  ;;  %v1415_v19 = vadd.f32 %v4630_v11, %v6240_v28  ;;  %v4631_v20 = vpop.f32.mrf.mxu1  ;;  %v2569_v28 = vld [vmem:[#allocation8 + $0xda0] sm:$0xff]  ;;  %v2632_v42 = vrot.slane %v6275_v63, 4  ;;  %v2649_v31 = vrot.slane %v2513_v32, 4  ;;  %v2515_v3 = vld [vmem:[#allocation2 + $0x60] sm:$0xf] }
 0x23f   : > { %5068 = vmatprep.subr.mxu1 %v2572_v43  ;;  %5105 = vmatpush3.msra.mxu0 %v2589_v6  ;;  %v2581_v5 = vld [vmem:[#allocation8 + $0xe00] sm:$0xff]  ;;  %v2642_v43 = vsel %vm953_vm3, %v2640_v56, %v6247_v10  ;;  %v2637_v6 = vrot.slane %v2508_v47, 4  ;;  %v2512_v11 = vld [vmem:[#allocation2 + $0x30] sm:$0xf]  ;;  %v2932_v32 = vld [vmem:[#allocation8 + $0xfc8] sm:$0xff] }
 0x240   : > { %5069 = vmatpush3.msra.mxu1 %v2556_v13  ;;  %5106 = vmatprep.subr.mxu0 %v2604_v14  ;;  %v6268_v25 = vadd.f32 %v4668_v15, %v1415_v19  ;;  %v4669_v26 = vpop.f32.mrf.mxu0  ;;  %v4632_v1 = vpop.f32.mrf.mxu1  ;;  %v2633_v12 = vsel %vm953_vm3, %v2631_v58, %v2632_v42  ;;  %v2938_v13 = vld [vmem:[#allocation8 + $0xff8] sm:$0xff]  ;;  %v2638_v14 = vrot.slane %v6251_v18, 4  ;;  %v2650_v19 = vsel %vm953_vm3, %v2635_v45, %v2649_v31  ;;  %v2969_v18 = vld [vmem:[#allocation8 + $0x10f0] sm:$0xff]  ;;  %v2936_v45 = vld [vmem:[#allocation8 + $0xfe8] sm:$0xff] }
 0x241   : > { %5070 = vmatprep.subr.mxu1 %v2571_v16  ;;  %5107 = vmatpush3.msra.mxu0 %v2588_v17  ;;  %v4633_v62 = vadd.f32 %v4632_v1, %v4631_v20  ;;  %v2922_v15 = vld [vmem:[#allocation8 + $0xf78] sm:$0xff]  ;;  %v2653_v16 = vrot.slane %v2515_v3, 4  ;;  %v2895_v17 = vld [vmem:[#allocation2 + $0x38] sm:$0xe0]  ;;  %v2921_v1 = vld [vmem:[#allocation8 + $0xf70] sm:$0xff] }
 0x242   : > { %5071 = vmatpush3.msra.mxu1 %v2555_v21  ;;  %5108 = vmatprep.subr.mxu0 %v2603_v22  ;;  %v4670_v33 = vpop.f32.mrf.mxu0  ;;  %v2970_v20 = vld [vmem:[#allocation8 + $0x10f8] sm:$0xff]  ;;  %v2937_v21 = vld [vmem:[#allocation8 + $0xff0] sm:$0xff]  ;;  %v2647_v22 = vrot.slane %v2512_v11, 4  ;;  %v2964_v58 = vld [vmem:[#allocation8 + $0x10c8] sm:$0xff] }
 0x243   : > { %5072 = vmatprep.subr.mxu1 %v2570_v23  ;;  %5109 = vmatpush3.msra.mxu0 %v2587_v24  ;;  %v1420_v39 = vadd.f32 %v4633_v62, %v6242_v44  ;;  %v4671_v38 = vadd.f32 %v4670_v33, %v4669_v26  ;;  %v2551_v44 = vld [vmem:[#allocation8 + $0xd10] sm:$0xff]  ;;  %v2639_v24 = vsel %vm953_vm3, %v2637_v6, %v2638_v14  ;;  %v2954_v26 = vld [vmem:[#allocation8 + $0x1078] sm:$0xff]  ;;  %v3019_v62 = vrot.slane %v2895_v17, 5  ;;  %v2915_v31 = vld [vmem:[#allocation8 + $0xf40] sm:$0xff] }
 0x244   : > { %5073 = vmatpush3.msra.mxu1 %v2554_v27  ;;  %5110 = vmatprep.subr.mxu0 %v2602_v59  ;;  %v2514_v23 = vld [vmem:[#allocation2 + $0x68] sm:$0xf]  ;;  %v2897_v27 = vld [vmem:[#allocation2 + $0x58] sm:$0xe0]  ;;  %v2654_v46 = vsel %vm953_vm3, %v6247_v10, %v2653_v16  ;;  %v6289_v33 = vld [vmem:[#allocation2 + $0x80] sm:$0xff] }
 0x245   : > { %5074 = vmatprep.subr.mxu1 %v2569_v28  ;;  %5111 = vmatpush3.msra.mxu0 %v2586_v29  ;;  %v6271_v34 = vadd.f32 %v4671_v38, %v1420_v39  ;;  %v2651_v59 = vrot.slane %v2514_v23, 4  ;;  %v2648_v28 = vsel %vm953_vm3, %v2632_v42, %v2647_v22  ;;  %v2953_v29 = vld [vmem:[#allocation8 + $0x1070] sm:$0xff]  ;;  %v2968_v10 = vld [vmem:[#allocation8 + $0x10e8] sm:$0xff]  ;;  %v2935_v39 = vld [vmem:[#allocation8 + $0xfe0] sm:$0xff] }
 0x246   : > { %5075 = vmatpush3.msra.mxu1 %v2553_v37  ;;  %5112 = vmatprep.subr.mxu0 %v2601_v41  ;;  %v3020_v37 = vrot.slane %v6289_v33, 5  ;;  %v3025_v41 = vrot.slane %v2897_v27, 5  ;;  %v2963_v3 = vld [vmem:[#allocation8 + $0x10c0] sm:$0xff]  ;;  %v2929_v16 = vld [vmem:[#allocation8 + $0xfb0] sm:$0xff]  ;;  %v2946_v17 = vld [vmem:[#allocation8 + $0x1038] sm:$0xff] }
 0x247   : > { %5076 = vmatprep.subr.mxu1 %v2568_v40  ;;  %5113 = vmatpush3.msra.mxu0 %v2585_v8  ;;  %v2652_v38 = vsel %vm953_vm3, %v2638_v14, %v2651_v59  ;;  %v2952_v8 = vld [vmem:[#allocation8 + $0x1068] sm:$0xff]  ;;  %v2947_v6 = vld [vmem:[#allocation8 + $0x1040] sm:$0xff]  ;;  %v2962_v14 = vld [vmem:[#allocation8 + $0x10b8] sm:$0xff] }
 0x248   : > { %5077 = vmatpush3.msra.mxu1 %v2552_v35  ;;  %5114 = vmatprep.subr.mxu0 %v2600_v2  ;;  %v3021_v40 = vsel %vm3015_vm5, %v3019_v62, %v3020_v37  ;;  %v6296_v35 = vld [vmem:[#allocation2 + $0x40] sm:$0xff] }
 0x249   : > { %5078 = vmatprep.subr.mxu1 %v2567_v9  ;;  %5115 = vmatpush3.msra.mxu0 %v2584_v49  ;;  %v3026_v2 = vrot.slane %v6296_v35, 5  ;;  %v2967_v9 = vld [vmem:[#allocation8 + $0x10e0] sm:$0xff] }
 0x24a   : > { %5079 = vmatpush3.msra.mxu1 %v2551_v44  ;;  %5116 = vmatprep.subr.mxu0 %v2599_v52  ;;  %v2951_v44 = vld [vmem:[#allocation8 + $0x1060] sm:$0xff]  ;;  %v2918_v52 = vld [vmem:[#allocation8 + $0xf58] sm:$0xff] }
 0x24b   : > { %5080 = vmatprep.subr.mxu1 %v2566_v54  ;;  %5117 = vmatpush3.msra.mxu0 %v2583_v51  ;;  %v3027_v49 = vsel %vm3015_vm5, %v3025_v41, %v3026_v2  ;;  %v2933_v54 = vld [vmem:[#allocation8 + $0xfd0] sm:$0xff]  ;;  %v2950_v51 = vld [vmem:[#allocation8 + $0x1058] sm:$0xff]  ;;  %v2943_v41 = vld [vmem:[#allocation8 + $0x1020] sm:$0xff] }
 0x24c   : > { %2737 = vmatmul.mubr.f32.gmra.mxu0 %v2644_v0  ;;  %5081 = vmatpush3.msra.mxu1 %v2550_v55  ;;  %v2917_v0 = vld [vmem:[#allocation8 + $0xf50] sm:$0xff] }
 0x24d   : > { %5118 = vmatprep.subr.mxu0 %v2598_v57  ;;  %5082 = vmatprep.subr.mxu1 %v2565_v4  ;;  %v2965_v55 = vld [vmem:[#allocation8 + $0x10d0] sm:$0xff]  ;;  %v2916_v4 = vld [vmem:[#allocation8 + $0xf48] sm:$0xff] }
 0x24e   : > { %5119 = vmatpush3.msra.mxu0 %v2582_v60  ;;  %5083 = vmatpush3.msra.mxu1 %v2549_v61  ;;  %v2949_v57 = vld [vmem:[#allocation8 + $0x1050] sm:$0xff]  ;;  %v2931_v61 = vld [vmem:[#allocation8 + $0xfc0] sm:$0xff] }
 0x24f   : > { %5120 = vmatprep.subr.mxu0 %v2597_v36  ;;  %2807 = vmatmul.mubr.f32.vlgmr.msra.gmra.mxu1 %v2633_v12  ;;  %v2948_v36 = vld [vmem:[#allocation8 + $0x1048] sm:$0xff] }
 0x250   : > { %5121 = vmatpush3.msra.mxu0 %v2581_v5  ;;  %2881 = vmatprep.mubr.f32.mxu0 %v2642_v43  ;;  %v2930_v43 = vld [vmem:[#allocation8 + $0xfb8] sm:$0xff] }
 0x251   : > { %5128 = vmatprep.subr.mxu1 %v2938_v13  ;;  %2811 = vmatprep.mubr.f32.mxu1 %v2650_v19  ;;  %v2914_v13 = vld [vmem:[#allocation8 + $0xf38] sm:$0xff] }
 0x252   : > { %2882 = vmatmul.mubr.f32.vlgmr.msra.gmra.mxu0 %v2639_v24  ;;  %5129 = vmatpush3.msra.mxu1 %v2922_v15  ;;  %v2945_v24 = vld [vmem:[#allocation8 + $0x1030] sm:$0xff] }
 0x253   : > { %5166 = vmatprep.subr.mxu0 %v2970_v20  ;;  %5130 = vmatprep.subr.mxu1 %v2937_v21  ;;  %v2913_v20 = vld [vmem:[#allocation8 + $0xf30] sm:$0xff] }
 0x254   : > { %5167 = vmatpush3.msra.mxu0 %v2954_v26  ;;  %5131 = vmatpush3.msra.mxu1 %v2921_v1  ;;  %v2961_v21 = vld [vmem:[#allocation8 + $0x10b0] sm:$0xff]  ;;  %v2912_v1 = vld [vmem:[#allocation8 + $0xf28] sm:$0xff] }
 0x255   : > { %5168 = vmatprep.subr.mxu0 %v2969_v18  ;;  %2812 = vmatmul.mubr.f32.gmra.mxu1 %v2648_v28  ;;  %v2960_v18 = vld [vmem:[#allocation8 + $0x10a8] sm:$0xff]  ;;  %v2911_v28 = vld [vmem:[#allocation8 + $0xf20] sm:$0xff] }
 0x256   : > { %2886 = vmatprep.mubr.f32.mxu0 %v2654_v46  ;;  %5132 = vmatprep.subr.mxu1 %v2936_v45  ;;  %v2927_v46 = vld [vmem:[#allocation8 + $0xfa0] sm:$0xff]  ;;  %v2944_v45 = vld [vmem:[#allocation8 + $0x1028] sm:$0xff] }
 0x257   : > { %5169 = vmatpush3.msra.mxu0 %v2953_v29  ;;  %5133 = vmatpush3.msra.mxu1 %v2920_v30  ;;  %v2959_v29 = vld [vmem:[#allocation8 + $0x10a0] sm:$0xff]  ;;  %v2926_v30 = vld [vmem:[#allocation8 + $0xf98] sm:$0xff] }
 0x258   : > { %2887 = vmatmul.mubr.f32.gmra.mxu0 %v2652_v38  ;;  %3122 = vmatprep.mubr.f32.mxu1 %v3021_v40  ;;  %v2958_v38 = vld [vmem:[#allocation8 + $0x1098] sm:$0xff]  ;;  %v2894_v40 = vld [vmem:[#allocation2] sm:$0xe0] }
 0x259   : > { %5170 = vmatprep.subr.mxu0 %v2968_v10  ;;  %5134 = vmatprep.subr.mxu1 %v2935_v39  ;;  %v2910_v39 = vld [vmem:[#allocation8 + $0xf18] sm:$0xff] }
 0x25a   : > { %5171 = vmatpush3.msra.mxu0 %v2952_v8  ;;  %3197 = vmatprep.mubr.f32.mxu0 %v3027_v49  ;;  %v2925_v8 = vld [vmem:[#allocation8 + $0xf90] sm:$0xff]  ;;  %v2924_v49 = vld [vmem:[#allocation8 + $0xf88] sm:$0xff] }
 0x25b   : > { %5135 = vmatpush3.msra.mxu1 %v2919_v48  ;;  %5172 = vmatprep.subr.mxu0 %v2967_v9  ;;  %v2909_v48 = vld [vmem:[#allocation8 + $0xf10] sm:$0xff] }
 0x25c   : > { %5136 = vmatprep.subr.mxu1 %v2934_v50  ;;  %5173 = vmatpush3.msra.mxu0 %v2951_v44  ;;  %v4704_v56 = vpop.f32.mrf.mxu1  ;;  %v2957_v9 = vld [vmem:[#allocation8 + $0x1090] sm:$0xff]  ;;  %v3016_v44 = vrot.slane %v2894_v40, 5  ;;  %v2996_v40 = vld [vmem:[#allocation8 + $0x11c8] sm:$0xff] }
 0x25d   : > { %5137 = vmatpush3.msra.mxu1 %v2918_v52  ;;  %5174 = vmatprep.subr.mxu0 %v2966_v53  ;;  %v2941_v50 = vld [vmem:[#allocation8 + $0x1010] sm:$0xff]  ;;  %v6309_v52 = vrot.slane %v6244_v7, 5 }
 0x25e   : > { %5138 = vmatprep.subr.mxu1 %v2933_v54  ;;  %5175 = vmatpush3.msra.mxu0 %v2950_v51  ;;  %v4742_v47 = vpop.f32.mrf.mxu0  ;;  %v4705_v60 = vpop.f32.mrf.mxu1  ;;  %v2901_v53 = vld [vmem:[#allocation2 + $0x48] sm:$0x1f]  ;;  %v2908_v54 = vld [vmem:[#allocation8 + $0xf08] sm:$0xff] }
 0x25f   : > { %5139 = vmatpush3.msra.mxu1 %v2917_v0  ;;  %5176 = vmatprep.subr.mxu0 %v2965_v55  ;;  %v4706_v42 = vadd.f32 %v4705_v60, %v4704_v56  ;;  %v2956_v51 = vld [vmem:[#allocation8 + $0x1088] sm:$0xff]  ;;  %v2923_v55 = vld [vmem:[#allocation8 + $0xf80] sm:$0xff]  ;;  %v3018_v7 = vsel %vm3015_vm5, %v3016_v44, %v6309_v52 }
 0x260   : > { %5140 = vmatprep.subr.mxu1 %v2932_v32  ;;  %5177 = vmatpush3.msra.mxu0 %v2949_v57  ;;  %v4743_v5 = vpop.f32.mrf.mxu0  ;;  %v2896_v0 = vld [vmem:[#allocation2 + $0x78] sm:$0xe0]  ;;  %v2903_v32 = vld [vmem:[#allocation2 + $0x18] sm:$0x1f] }
 0x261   : > { %5141 = vmatpush3.msra.mxu1 %v2916_v4  ;;  %5178 = vmatprep.subr.mxu0 %v2964_v58  ;;  %v1565_v11 = vadd.f32 %v4706_v42, %v6268_v25  ;;  %v4744_v12 = vadd.f32 %v4743_v5, %v4742_v47  ;;  %v2928_v25 = vld [vmem:[#allocation8 + $0xfa8] sm:$0xff]  ;;  %v2907_v57 = vld [vmem:[#allocation8 + $0xf00] sm:$0xff]  ;;  %v3036_v58 = vrot.slane %v2901_v53, 5  ;;  %v3022_v60 = vrot.slane %v2896_v0, 5 }
 0x262   : > { %5142 = vmatprep.subr.mxu1 %v2931_v61  ;;  %5179 = vmatpush3.msra.mxu0 %v2948_v36  ;;  %v4707_v15 = vpop.f32.mrf.mxu1  ;;  %v2940_v56 = vld [vmem:[#allocation8 + $0x1008] sm:$0xff]  ;;  %v2955_v4 = vld [vmem:[#allocation8 + $0x1080] sm:$0xff]  ;;  %v3002_v36 = vld [vmem:[#allocation8 + $0x11f8] sm:$0xff]  ;;  %v3040_v42 = vrot.slane %v2903_v32, 5 }
 0x263   : > { %5143 = vmatpush3.msra.mxu1 %v2915_v31  ;;  %5180 = vmatprep.subr.mxu0 %v2963_v3  ;;  %v6303_v19 = vadd.f32 %v4744_v12, %v1565_v11  ;;  %v2939_v47 = vld [vmem:[#allocation8 + $0x1000] sm:$0xff]  ;;  %v3023_v31 = vrot.slane %v6275_v63, 5  ;;  %v2986_v3 = vld [vmem:[#allocation8 + $0x1178] sm:$0xff]  ;;  %v3307_v53 = vld [vmem:[#allocation8 + $0x1248] sm:$0xff] }
 0x264   : > { %5144 = vmatprep.subr.mxu1 %v2930_v43  ;;  %5181 = vmatpush3.msra.mxu0 %v2947_v6  ;;  %v4745_v22 = vpop.f32.mrf.mxu0  ;;  %v4708_v23 = vpop.f32.mrf.mxu1  ;;  %v2900_v61 = vld [vmem:[#allocation2 + $0x10] sm:$0x1f]  ;;  %v3037_v43 = vsel %vm3015_vm5, %v3020_v37, %v3036_v58  ;;  %v3041_v63 = vsel %vm3015_vm5, %v3026_v2, %v3040_v42  ;;  %v3000_v37 = vld [vmem:[#allocation8 + $0x11e8] sm:$0xff]  ;;  %v3320_v42 = vld [vmem:[#allocation8 + $0x12b0] sm:$0xff] }
 0x265   : > { %5145 = vmatpush3.msra.mxu1 %v2914_v13  ;;  %5182 = vmatprep.subr.mxu0 %v2962_v14  ;;  %v4709_v26 = vadd.f32 %v4708_v23, %v4707_v15  ;;  %v2902_v5 = vld [vmem:[#allocation2 + $0x30] sm:$0x1f]  ;;  %v3034_v11 = vrot.slane %v2900_v61, 5  ;;  %v3024_v12 = vsel %vm3015_vm5, %v3022_v60, %v3023_v31  ;;  %v3001_v13 = vld [vmem:[#allocation8 + $0x11f0] sm:$0xff]  ;;  %v2984_v23 = vld [vmem:[#allocation8 + $0x1168] sm:$0xff] }
 0x266   : > { %5146 = vmatprep.subr.mxu1 %v2929_v16  ;;  %5183 = vmatpush3.msra.mxu0 %v2946_v17  ;;  %v4746_v27 = vpop.f32.mrf.mxu0  ;;  %v3329_v6 = vld [vmem:[#allocation8 + $0x12f8] sm:$0xff]  ;;  %v2985_v15 = vld [vmem:[#allocation8 + $0x1170] sm:$0xff]  ;;  %v3038_v17 = vrot.slane %v2902_v5, 5 }
 0x267   : > { %5147 = vmatpush3.msra.mxu1 %v2913_v20  ;;  %5184 = vmatprep.subr.mxu0 %v2961_v21  ;;  %v1570_v59 = vadd.f32 %v4709_v26, %v6271_v34  ;;  %v4747_v62 = vadd.f32 %v4746_v27, %v4745_v22  ;;  %v2942_v34 = vld [vmem:[#allocation8 + $0x1018] sm:$0xff]  ;;  %v3328_v16 = vld [vmem:[#allocation8 + $0x12f0] sm:$0xff]  ;;  %v3286_v20 = vld [vmem:[#allocation2 + $0x38] sm:$0xc0]  ;;  %v3035_v22 = vsel %vm3015_vm5, %v6309_v52, %v3034_v11 }
 0x268   : > { %5148 = vmatprep.subr.mxu1 %v2928_v25  ;;  %5185 = vmatpush3.msra.mxu0 %v2945_v24  ;;  %v3313_v14 = vld [vmem:[#allocation8 + $0x1278] sm:$0xff]  ;;  %v3312_v21 = vld [vmem:[#allocation8 + $0x1270] sm:$0xff]  ;;  %v3327_v25 = vld [vmem:[#allocation8 + $0x12e8] sm:$0xff]  ;;  %v3410_v24 = vrot.slane %v3286_v20, 6  ;;  %v3039_v2 = vsel %vm3015_vm5, %v3023_v31, %v3038_v17 }
 0x269   : > { %5149 = vmatpush3.msra.mxu1 %v2912_v1  ;;  %5186 = vmatprep.subr.mxu0 %v2960_v18  ;;  %v6306_v10 = vadd.f32 %v4747_v62, %v1570_v59  ;;  %v2999_v26 = vld [vmem:[#allocation8 + $0x11e0] sm:$0xff]  ;;  %v3311_v1 = vld [vmem:[#allocation8 + $0x1268] sm:$0xff]  ;;  %v3411_v18 = vrot.slane %v6289_v33, 6  ;;  %v3305_v61 = vld [vmem:[#allocation8 + $0x1238] sm:$0xff] }
 0x26a   : > { %5150 = vmatprep.subr.mxu1 %v2927_v46  ;;  %5187 = vmatpush3.msra.mxu0 %v2944_v45  ;;  %v2983_v27 = vld [vmem:[#allocation8 + $0x1160] sm:$0xff]  ;;  %v2998_v45 = vld [vmem:[#allocation8 + $0x11d8] sm:$0xff]  ;;  %v2992_v31 = vld [vmem:[#allocation8 + $0x11a8] sm:$0xff] }
 0x26b   : > { %5151 = vmatpush3.msra.mxu1 %v2911_v28  ;;  %5188 = vmatprep.subr.mxu0 %v2959_v29  ;;  %v3326_v46 = vld [vmem:[#allocation8 + $0x12e0] sm:$0xff]  ;;  %v3412_v59 = vsel %vm3406_vm6, %v3410_v24, %v3411_v18  ;;  %v2982_v28 = vld [vmem:[#allocation8 + $0x1158] sm:$0xff]  ;;  %v3304_v5 = vld [vmem:[#allocation8 + $0x1230] sm:$0xff] }
 0x26c   : > { %5152 = vmatprep.subr.mxu1 %v2926_v30  ;;  %5189 = vmatpush3.msra.mxu0 %v2943_v41  ;;  %v3310_v62 = vld [vmem:[#allocation8 + $0x1260] sm:$0xff]  ;;  %v3325_v29 = vld [vmem:[#allocation8 + $0x12d8] sm:$0xff]  ;;  %v2997_v30 = vld [vmem:[#allocation8 + $0x11d0] sm:$0xff] }
 0x26d   : > { %5153 = vmatpush3.msra.mxu1 %v2910_v39  ;;  %5190 = vmatprep.subr.mxu0 %v2958_v38  ;;  %v3309_v41 = vld [vmem:[#allocation8 + $0x1258] sm:$0xff]  ;;  %v2981_v39 = vld [vmem:[#allocation8 + $0x1150] sm:$0xff]  ;;  %v2991_v11 = vld [vmem:[#allocation8 + $0x11a0] sm:$0xff] }
 0x26e   : > { %5154 = vmatprep.subr.mxu1 %v2925_v8  ;;  %5191 = vmatpush3.msra.mxu0 %v2942_v34  ;;  %v3324_v38 = vld [vmem:[#allocation8 + $0x12d0] sm:$0xff]  ;;  %v2974_v17 = vld [vmem:[#allocation8 + $0x1118] sm:$0xff]  ;;  %v2988_v24 = vld [vmem:[#allocation8 + $0x1188] sm:$0xff] }
 0x26f   : > { %5155 = vmatpush3.msra.mxu1 %v2909_v48  ;;  %5192 = vmatprep.subr.mxu0 %v2957_v9  ;;  %v3308_v34 = vld [vmem:[#allocation8 + $0x1250] sm:$0xff]  ;;  %v2980_v48 = vld [vmem:[#allocation8 + $0x1148] sm:$0xff]  ;;  %v2899_v20 = vld [vmem:[#allocation2 + $0x8] sm:$0xe0] }
 0x270   : > { %5156 = vmatprep.subr.mxu1 %v2924_v49  ;;  %5193 = vmatpush3.msra.mxu0 %v2941_v50  ;;  %v3323_v49 = vld [vmem:[#allocation8 + $0x12c8] sm:$0xff]  ;;  %v2995_v50 = vld [vmem:[#allocation8 + $0x11c0] sm:$0xff] }
 0x271   : > { %5157 = vmatpush3.msra.mxu1 %v2908_v54  ;;  %5194 = vmatprep.subr.mxu0 %v2956_v51  ;;  %v2979_v54 = vld [vmem:[#allocation8 + $0x1140] sm:$0xff] }
 0x272   : > { %5158 = vmatprep.subr.mxu1 %v2923_v55  ;;  %5195 = vmatpush3.msra.mxu0 %v2940_v56  ;;  %v3322_v55 = vld [vmem:[#allocation8 + $0x12c0] sm:$0xff]  ;;  %v2994_v56 = vld [vmem:[#allocation8 + $0x11b8] sm:$0xff] }
 0x273   : > { %5159 = vmatpush3.msra.mxu1 %v2907_v57  ;;  %5196 = vmatprep.subr.mxu0 %v2955_v4  ;;  %v3306_v57 = vld [vmem:[#allocation8 + $0x1240] sm:$0xff]  ;;  %v2978_v4 = vld [vmem:[#allocation8 + $0x1138] sm:$0xff] }
 0x274   : > { %3123 = vmatmul.mubr.f32.vlgmr.msra.gmra.mxu1 %v3018_v7  ;;  %5197 = vmatpush3.msra.mxu0 %v2939_v47  ;;  %v3321_v7 = vld [vmem:[#allocation8 + $0x12b8] sm:$0xff]  ;;  %v2993_v47 = vld [vmem:[#allocation8 + $0x11b0] sm:$0xff]  ;;  %v3358_v33 = vld [vmem:[#allocation8 + $0x13e0] sm:$0xff] }
 0x275   : > { %5204 = vmatprep.subr.mxu1 %v3002_v36  ;;  %3127 = vmatprep.mubr.f32.mxu1 %v3037_v43  ;;  %v2977_v36 = vld [vmem:[#allocation8 + $0x1130] sm:$0xff]  ;;  %v2976_v43 = vld [vmem:[#allocation8 + $0x1128] sm:$0xff] }
 0x276   : > { %3198 = vmatmul.mubr.f32.vlgmr.msra.gmra.mxu0 %v3024_v12  ;;  %5205 = vmatpush3.msra.mxu1 %v2986_v3  ;;  %v3303_v12 = vld [vmem:[#allocation8 + $0x1228] sm:$0xff] }
 0x277   : > { %5242 = vmatprep.subr.mxu0 %v3329_v6  ;;  %3202 = vmatprep.mubr.f32.mxu0 %v3041_v63  ;;  %v3319_v6 = vld [vmem:[#allocation8 + $0x12a8] sm:$0xff]  ;;  %v3318_v63 = vld [vmem:[#allocation8 + $0x12a0] sm:$0xff] }
 0x278   : > { %5206 = vmatprep.subr.mxu1 %v3001_v13  ;;  %5243 = vmatpush3.msra.mxu0 %v3313_v14  ;;  %v2975_v13 = vld [vmem:[#allocation8 + $0x1120] sm:$0xff] }
 0x279   : > { %5207 = vmatpush3.msra.mxu1 %v2985_v15  ;;  %5244 = vmatprep.subr.mxu0 %v3328_v16  ;;  %v2990_v15 = vld [vmem:[#allocation8 + $0x1198] sm:$0xff]  ;;  %v3302_v16 = vld [vmem:[#allocation8 + $0x1220] sm:$0xff] }
 0x27a   : > { %5208 = vmatprep.subr.mxu1 %v3000_v37  ;;  %5245 = vmatpush3.msra.mxu0 %v3312_v21  ;;  %v3317_v37 = vld [vmem:[#allocation8 + $0x1298] sm:$0xff]  ;;  %v2989_v21 = vld [vmem:[#allocation8 + $0x1190] sm:$0xff] }
 0x27b   : > { %3128 = vmatmul.mubr.f32.gmra.mxu1 %v3035_v22  ;;  %3203 = vmatmul.mubr.f32.gmra.mxu0 %v3039_v2  ;;  %v3301_v22 = vld [vmem:[#allocation8 + $0x1218] sm:$0xff]  ;;  %v3031_v2 = vrot.slane %v2899_v20, 5  ;;  %v3356_v20 = vld [vmem:[#allocation8 + $0x13d0] sm:$0xff] }
 0x27c   : > { %5209 = vmatpush3.msra.mxu1 %v2984_v23  ;;  %5246 = vmatprep.subr.mxu0 %v3327_v25  ;;  %v2973_v23 = vld [vmem:[#allocation8 + $0x1110] sm:$0xff] }
 0x27d   : > { %5210 = vmatprep.subr.mxu1 %v2999_v26  ;;  %5247 = vmatpush3.msra.mxu0 %v3311_v1  ;;  %v3285_v25 = vld [vmem:[#allocation2] sm:$0xc0] }
 0x27e   : > { %3513 = vmatprep.mubr.f32.mxu0 %v3412_v59  ;;  %5211 = vmatpush3.msra.mxu1 %v2983_v27  ;;  %v2898_v26 = vld [vmem:[#allocation2 + $0x20] sm:$0xe0]  ;;  %v2972_v27 = vld [vmem:[#allocation8 + $0x1108] sm:$0xff]  ;;  %v3407_v59 = vrot.slane %v3285_v25, 6 }
 0x27f   : > { %5248 = vmatprep.subr.mxu0 %v3326_v46  ;;  %5212 = vmatprep.subr.mxu1 %v2998_v45  ;;  %v3300_v1 = vld [vmem:[#allocation8 + $0x1210] sm:$0xff]  ;;  %v3315_v46 = vld [vmem:[#allocation8 + $0x1288] sm:$0xff]  ;;  %v2987_v45 = vld [vmem:[#allocation8 + $0x1180] sm:$0xff] }
 0x280   : > { %5249 = vmatpush3.msra.mxu0 %v3310_v62  ;;  %5213 = vmatpush3.msra.mxu1 %v2982_v28  ;;  %v4780_v8 = vpop.f32.mrf.mxu1  ;;  %v6336_v62 = vld [vmem:[#allocation2] sm:$0xff] }
 0x281   : > { %5250 = vmatprep.subr.mxu0 %v3325_v29  ;;  %5214 = vmatprep.subr.mxu1 %v2997_v30  ;;  %v4818_v9 = vpop.f32.mrf.mxu0  ;;  %v6339_v28 = vrot.slane %v6336_v62, 6  ;;  %v2905_v29 = vld [vmem:[#allocation2 + $0x60] sm:$0x1f] }
 0x282   : > { %5251 = vmatpush3.msra.mxu0 %v3309_v41  ;;  %5215 = vmatpush3.msra.mxu1 %v2981_v39  ;;  %v4781_v44 = vpop.f32.mrf.mxu1  ;;  %v3299_v30 = vld [vmem:[#allocation8 + $0x1208] sm:$0xff]  ;;  %v2971_v41 = vld [vmem:[#allocation8 + $0x1100] sm:$0xff]  ;;  %v3028_v39 = vrot.slane %v2898_v26, 5 }
 0x283   : > { %5252 = vmatprep.subr.mxu0 %v3324_v38  ;;  %5216 = vmatprep.subr.mxu1 %v2996_v40  ;;  %v4782_v51 = vadd.f32 %v4781_v44, %v4780_v8  ;;  %v4819_v0 = vpop.f32.mrf.mxu0  ;;  %v3292_v38 = vld [vmem:[#allocation2 + $0x48] sm:$0x3f]  ;;  %v3033_v40 = vsel %vm3015_vm5, %v3031_v2, %v6309_v52  ;;  %v3314_v8 = vld [vmem:[#allocation8 + $0x1280] sm:$0xff]  ;;  %v3409_v44 = vsel %vm3406_vm6, %v3407_v59, %v6339_v28  ;;  %v3339_v26 = vld [vmem:[#allocation8 + $0x1348] sm:$0xff] }
 0x284   : > { %5253 = vmatpush3.msra.mxu0 %v3308_v34  ;;  %5217 = vmatpush3.msra.mxu1 %v2980_v48  ;;  %v6328_v32 = vadd.f32 %v4819_v0, %v4818_v9  ;;  %v6343_v34 = vld [vmem:[#allocation2 + $0x50] sm:$0xff]  ;;  %v3372_v2 = vld [vmem:[#allocation8 + $0x1450] sm:$0xff] }
 0x285   : > { %5254 = vmatprep.subr.mxu0 %v3323_v49  ;;  %5218 = vmatprep.subr.mxu1 %v2995_v50  ;;  %v6331_v58 = vadd.f32 %v4782_v51, %v6303_v19  ;;  %v3029_v48 = vrot.slane %v6343_v34, 5  ;;  %v3298_v9 = vld [vmem:[#allocation8 + $0x1200] sm:$0xff]  ;;  %v3044_v49 = vrot.slane %v2905_v29, 5  ;;  %v3361_v50 = vld [vmem:[#allocation8 + $0x13f8] sm:$0xff] }
 0x286   : > { %5255 = vmatpush3.msra.mxu0 %v3307_v53  ;;  %5219 = vmatpush3.msra.mxu1 %v2979_v54  ;;  %v4783_v60 = vpop.f32.mrf.mxu1  ;;  %v3427_v53 = vrot.slane %v3292_v38, 6  ;;  %v2904_v54 = vld [vmem:[#allocation2 + $0x68] sm:$0x1f]  ;;  %v3370_v38 = vld [vmem:[#allocation8 + $0x1440] sm:$0xff] }
 0x287   : > { %5256 = vmatprep.subr.mxu0 %v3322_v55  ;;  %5220 = vmatprep.subr.mxu1 %v2994_v56  ;;  %v3030_v51 = vsel %vm3015_vm5, %v3028_v39, %v3029_v48  ;;  %v3345_v0 = vld [vmem:[#allocation8 + $0x1378] sm:$0xff]  ;;  %v3360_v56 = vld [vmem:[#allocation8 + $0x13f0] sm:$0xff] }
 0x288   : > { %5257 = vmatpush3.msra.mxu0 %v3306_v57  ;;  %5221 = vmatpush3.msra.mxu1 %v2978_v4  ;;  %v4784_v3 = vpop.f32.mrf.mxu1  ;;  %v3393_v55 = vld [vmem:[#allocation8 + $0x14f8] sm:$0xff]  ;;  %v3288_v57 = vld [vmem:[#allocation2 + $0x58] sm:$0xc0] }
 0x289   : > { %5258 = vmatprep.subr.mxu0 %v3321_v7  ;;  %5222 = vmatprep.subr.mxu1 %v2993_v47  ;;  %v4785_v19 = vadd.f32 %v4784_v3, %v4783_v60  ;;  %v3377_v4 = vld [vmem:[#allocation8 + $0x1478] sm:$0xff]  ;;  %v3045_v7 = vsel %vm3015_vm5, %v6309_v52, %v3044_v49  ;;  %v3042_v47 = vrot.slane %v2904_v54, 5  ;;  %v3428_v60 = vsel %vm3406_vm6, %v3411_v18, %v3427_v53  ;;  %v3376_v3 = vld [vmem:[#allocation8 + $0x1470] sm:$0xff]  ;;  %v3375_v18 = vld [vmem:[#allocation8 + $0x1468] sm:$0xff] }
 0x28a   : > { %5259 = vmatpush3.msra.mxu0 %v3305_v61  ;;  %5223 = vmatpush3.msra.mxu1 %v2977_v36  ;;  %v3344_v61 = vld [vmem:[#allocation8 + $0x1370] sm:$0xff]  ;;  %v3353_v39 = vld [vmem:[#allocation8 + $0x13b8] sm:$0xff] }
 0x28b   : > { %5260 = vmatprep.subr.mxu0 %v3320_v42  ;;  %5224 = vmatprep.subr.mxu1 %v2992_v31  ;;  %v6334_v14 = vadd.f32 %v4785_v19, %v6306_v10  ;;  %v3316_v10 = vld [vmem:[#allocation8 + $0x1290] sm:$0xff]  ;;  %v3359_v42 = vld [vmem:[#allocation8 + $0x13e8] sm:$0xff]  ;;  %v3416_v31 = vrot.slane %v3288_v57, 6  ;;  %v3043_v52 = vsel %vm3015_vm5, %v3029_v48, %v3042_v47  ;;  %v3337_v48 = vld [vmem:[#allocation8 + $0x1338] sm:$0xff] }
 0x28c   : > { %5261 = vmatpush3.msra.mxu0 %v3304_v5  ;;  %5225 = vmatpush3.msra.mxu1 %v2976_v43  ;;  %v3392_v36 = vld [vmem:[#allocation8 + $0x14f0] sm:$0xff]  ;;  %v3343_v5 = vld [vmem:[#allocation8 + $0x1368] sm:$0xff]  ;;  %v3417_v43 = vrot.slane %v6296_v35, 6  ;;  %v3369_v53 = vld [vmem:[#allocation8 + $0x1438] sm:$0xff] }
 0x28d   : > { %5262 = vmatprep.subr.mxu0 %v3319_v6  ;;  %5226 = vmatprep.subr.mxu1 %v2991_v11  ;;  %v3391_v19 = vld [vmem:[#allocation8 + $0x14e8] sm:$0xff]  ;;  %v3342_v11 = vld [vmem:[#allocation8 + $0x1360] sm:$0xff]  ;;  %v3336_v54 = vld [vmem:[#allocation8 + $0x1330] sm:$0xff] }
 0x28e   : > { %5263 = vmatpush3.msra.mxu0 %v3303_v12  ;;  %5227 = vmatpush3.msra.mxu1 %v2975_v13  ;;  %v3418_v6 = vsel %vm3406_vm6, %v3416_v31, %v3417_v43  ;;  %v3390_v12 = vld [vmem:[#allocation8 + $0x14e0] sm:$0xff]  ;;  %v3357_v13 = vld [vmem:[#allocation8 + $0x13d8] sm:$0xff]  ;;  %v3383_v47 = vld [vmem:[#allocation8 + $0x14a8] sm:$0xff] }
 0x28f   : > { %5264 = vmatprep.subr.mxu0 %v3318_v63  ;;  %5228 = vmatprep.subr.mxu1 %v2990_v15  ;;  %v3374_v63 = vld [vmem:[#allocation8 + $0x1460] sm:$0xff] }
 0x290   : > { %5265 = vmatpush3.msra.mxu0 %v3302_v16  ;;  %5229 = vmatpush3.msra.mxu1 %v2974_v17  ;;  %v3341_v16 = vld [vmem:[#allocation8 + $0x1358] sm:$0xff] }
 0x291   : > { %5266 = vmatprep.subr.mxu0 %v3317_v37  ;;  %5230 = vmatprep.subr.mxu1 %v2989_v21  ;;  %v3389_v17 = vld [vmem:[#allocation8 + $0x14d8] sm:$0xff] }
 0x292   : > { %5267 = vmatpush3.msra.mxu0 %v3301_v22  ;;  %5231 = vmatpush3.msra.mxu1 %v2973_v23  ;;  %v3373_v37 = vld [vmem:[#allocation8 + $0x1458] sm:$0xff]  ;;  %v3340_v22 = vld [vmem:[#allocation8 + $0x1350] sm:$0xff] }
 0x293   : > { %5268 = vmatprep.subr.mxu0 %v3316_v10  ;;  %5232 = vmatprep.subr.mxu1 %v2988_v24  ;;  %v3388_v23 = vld [vmem:[#allocation8 + $0x14d0] sm:$0xff]  ;;  %v3355_v24 = vld [vmem:[#allocation8 + $0x13c8] sm:$0xff] }
 0x294   : > { %5269 = vmatpush3.msra.mxu0 %v3300_v1  ;;  %5233 = vmatpush3.msra.mxu1 %v2972_v27  ;;  %v3387_v1 = vld [vmem:[#allocation8 + $0x14c8] sm:$0xff] }
 0x295   : > { %5270 = vmatprep.subr.mxu0 %v3315_v46  ;;  %5234 = vmatprep.subr.mxu1 %v2987_v45  ;;  %v3354_v46 = vld [vmem:[#allocation8 + $0x13c0] sm:$0xff]  ;;  %v3371_v45 = vld [vmem:[#allocation8 + $0x1448] sm:$0xff] }
 0x296   : > { %5271 = vmatpush3.msra.mxu0 %v3299_v30  ;;  %5235 = vmatpush3.msra.mxu1 %v2971_v41  ;;  %v3338_v30 = vld [vmem:[#allocation8 + $0x1340] sm:$0xff] }
 0x297   : > { %3272 = vmatprep.mubr.f32.mxu1 %v3033_v40  ;;  %5272 = vmatprep.subr.mxu0 %v3314_v8  ;;  %v3386_v41 = vld [vmem:[#allocation8 + $0x14c0] sm:$0xff] }
 0x298   : > { %3273 = vmatmul.mubr.f32.vlgmr.msra.gmra.mxu1 %v3030_v51  ;;  %5273 = vmatpush3.msra.mxu0 %v3298_v9  ;;  %v3385_v9 = vld [vmem:[#allocation8 + $0x14b8] sm:$0xff]  ;;  %v3384_v51 = vld [vmem:[#allocation8 + $0x14b0] sm:$0xff] }
 0x299   : > { %5280 = vmatprep.subr.mxu1 %v3361_v50  ;;  %3514 = vmatmul.mubr.f32.vlgmr.msra.gmra.mxu0 %v3409_v44  ;;  %v3352_v44 = vld [vmem:[#allocation8 + $0x13b0] sm:$0xff] }
 0x29a   : > { %5281 = vmatpush3.msra.mxu1 %v3345_v0  ;;  %5318 = vmatprep.subr.mxu0 %v3393_v55 }
 0x29b   : > { %3518 = vmatprep.mubr.f32.mxu0 %v3428_v60  ;;  %5282 = vmatprep.subr.mxu1 %v3360_v56  ;;  %v3368_v56 = vld [vmem:[#allocation8 + $0x1430] sm:$0xff] }
 0x29c   : > { %5319 = vmatpush3.msra.mxu0 %v3377_v4  ;;  %3277 = vmatprep.mubr.f32.mxu1 %v3045_v7  ;;  %v3335_v7 = vld [vmem:[#allocation8 + $0x1328] sm:$0xff] }
 0x29d   : > { %5283 = vmatpush3.msra.mxu1 %v3344_v61  ;;  %5320 = vmatprep.subr.mxu0 %v3392_v36  ;;  %v3350_v61 = vld [vmem:[#allocation8 + $0x13a0] sm:$0xff]  ;;  %v3367_v36 = vld [vmem:[#allocation8 + $0x1428] sm:$0xff] }
 0x29e   : > { %3278 = vmatmul.mubr.f32.gmra.mxu1 %v3043_v52  ;;  %5284 = vmatprep.subr.mxu1 %v3359_v42  ;;  %v3291_v42 = vld [vmem:[#allocation2 + $0x10] sm:$0x3f] }
 0x29f   : > { %5321 = vmatpush3.msra.mxu0 %v3376_v3  ;;  %5285 = vmatpush3.msra.mxu1 %v3343_v5  ;;  %v3334_v5 = vld [vmem:[#allocation8 + $0x1320] sm:$0xff] }
 0x2a0   : > { %3588 = vmatprep.mubr.f32.mxu1 %v3418_v6  ;;  %5322 = vmatprep.subr.mxu0 %v3391_v19  ;;  %v4821_v15 = vpop.f32.mrf.mxu0  ;;  %v3382_v52 = vld [vmem:[#allocation8 + $0x14a0] sm:$0xff]  ;;  %v3381_v6 = vld [vmem:[#allocation8 + $0x1498] sm:$0xff] }
 0x2a1   : > { %5286 = vmatprep.subr.mxu1 %v3358_v33  ;;  %5323 = vmatpush3.msra.mxu0 %v3375_v18  ;;  %v3349_v33 = vld [vmem:[#allocation8 + $0x1398] sm:$0xff]  ;;  %v3366_v18 = vld [vmem:[#allocation8 + $0x1420] sm:$0xff] }
 0x2a2   : > { %5287 = vmatpush3.msra.mxu1 %v3342_v11  ;;  %5324 = vmatprep.subr.mxu0 %v3390_v12  ;;  %v4822_v21 = vpop.f32.mrf.mxu0  ;;  %v3425_v11 = vrot.slane %v3291_v42, 6 }
 0x2a3   : > { %5288 = vmatprep.subr.mxu1 %v3357_v13  ;;  %5325 = vmatpush3.msra.mxu0 %v3374_v63  ;;  %v4823_v25 = vadd.f32 %v4822_v21, %v4821_v15  ;;  %v4856_v10 = vpop.f32.mrf.mxu1  ;;  %v3348_v13 = vld [vmem:[#allocation8 + $0x1390] sm:$0xff]  ;;  %v3365_v63 = vld [vmem:[#allocation8 + $0x1418] sm:$0xff]  ;;  %v3347_v21 = vld [vmem:[#allocation8 + $0x1388] sm:$0xff] }
 0x2a4   : > { %5289 = vmatpush3.msra.mxu1 %v3341_v16  ;;  %5326 = vmatprep.subr.mxu0 %v3389_v17  ;;  %v3290_v15 = vld [vmem:[#allocation2 + $0x8] sm:$0xc0]  ;;  %v3332_v16 = vld [vmem:[#allocation8 + $0x1310] sm:$0xff] }
 0x2a5   : > { %5290 = vmatprep.subr.mxu1 %v3356_v20  ;;  %5327 = vmatpush3.msra.mxu0 %v3373_v37  ;;  %v4857_v27 = vpop.f32.mrf.mxu1  ;;  %v3380_v17 = vld [vmem:[#allocation8 + $0x1490] sm:$0xff]  ;;  %v3287_v20 = vld [vmem:[#allocation2 + $0x78] sm:$0xc0] }
 0x2a6   : > { %5291 = vmatpush3.msra.mxu1 %v3340_v22  ;;  %5328 = vmatprep.subr.mxu0 %v3388_v23  ;;  %v4894_v59 = vpop.f32.mrf.mxu0  ;;  %v4858_v29 = vadd.f32 %v4857_v27, %v4856_v10  ;;  %v3364_v22 = vld [vmem:[#allocation8 + $0x1410] sm:$0xff]  ;;  %v3426_v23 = vsel %vm3406_vm6, %v6339_v28, %v3425_v11  ;;  %v3422_v10 = vrot.slane %v3290_v15, 6 }
 0x2a7   : > { %5292 = vmatprep.subr.mxu1 %v3355_v24  ;;  %5329 = vmatpush3.msra.mxu0 %v3372_v2  ;;  %v3294_v24 = vld [vmem:[#allocation2 + $0x18] sm:$0x3f]  ;;  %v3289_v27 = vld [vmem:[#allocation2 + $0x20] sm:$0xc0] }
 0x2a8   : > { %5293 = vmatpush3.msra.mxu1 %v3339_v26  ;;  %5330 = vmatprep.subr.mxu0 %v3387_v1  ;;  %v2028_v40 = vadd.f32 %v4858_v29, %v6328_v32  ;;  %v4895_v8 = vpop.f32.mrf.mxu0  ;;  %v3351_v32 = vld [vmem:[#allocation8 + $0x13a8] sm:$0xff]  ;;  %v3346_v26 = vld [vmem:[#allocation8 + $0x1380] sm:$0xff]  ;;  %v3413_v1 = vrot.slane %v3287_v20, 6  ;;  %v3700_v20 = vld [vmem:[#allocation8 + $0x1558] sm:$0xff] }
 0x2a9   : > { %5294 = vmatprep.subr.mxu1 %v3354_v46  ;;  %5331 = vmatpush3.msra.mxu0 %v3371_v45  ;;  %v4896_v49 = vadd.f32 %v4895_v8, %v4894_v59  ;;  %v4859_v50 = vpop.f32.mrf.mxu1  ;;  %v3379_v2 = vld [vmem:[#allocation8 + $0x1488] sm:$0xff]  ;;  %v3330_v46 = vld [vmem:[#allocation8 + $0x1300] sm:$0xff]  ;;  %v6368_v59 = vld [vmem:[#allocation2 + $0x88] sm:$0xff] }
 0x2aa   : > { %5295 = vmatpush3.msra.mxu1 %v3338_v30  ;;  %5332 = vmatprep.subr.mxu0 %v3386_v41  ;;  %v3378_v45 = vld [vmem:[#allocation8 + $0x1480] sm:$0xff]  ;;  %v3414_v29 = vrot.slane %v6368_v59, 6  ;;  %v3431_v30 = vrot.slane %v3294_v24, 6  ;;  %v3296_v41 = vld [vmem:[#allocation2 + $0x60] sm:$0x3f] }
 0x2ab   : > { %5296 = vmatprep.subr.mxu1 %v3353_v39  ;;  %5333 = vmatpush3.msra.mxu0 %v3370_v38  ;;  %v2103_v0 = vadd.f32 %v4896_v49, %v2028_v40  ;;  %v4860_v55 = vpop.f32.mrf.mxu1  ;;  %v3362_v39 = vld [vmem:[#allocation8 + $0x1400] sm:$0xff]  ;;  %v3424_v38 = vsel %vm3406_vm6, %v3422_v10, %v6339_v28  ;;  %v3419_v40 = vrot.slane %v3289_v27, 6  ;;  %v3420_v49 = vrot.slane %v6343_v34, 6  ;;  %v6389_v11 = vld [vmem:[#allocation2 + $0x40] sm:$0xff] }
 0x2ac   : > { %5297 = vmatpush3.msra.mxu1 %v3337_v48  ;;  %5334 = vmatprep.subr.mxu0 %v3385_v9  ;;  %v4897_v57 = vpop.f32.mrf.mxu0  ;;  %v4861_v4 = vadd.f32 %v4860_v55, %v4859_v50  ;;  %v3293_v8 = vld [vmem:[#allocation2 + $0x30] sm:$0x3f]  ;;  %v3415_v48 = vsel %vm3406_vm6, %v3413_v1, %v3414_v29  ;;  %v3747_v10 = vld [vmem:[#allocation8 + $0x16d0] sm:$0xff]  ;;  %v3714_v24 = vld [vmem:[#allocation8 + $0x15c8] sm:$0xff] }
 0x2ad   : > { %5298 = vmatprep.subr.mxu1 %v3352_v44  ;;  %5335 = vmatpush3.msra.mxu0 %v3369_v53  ;;  %v6361_v60 = vadd.f32 %v2103_v0, %v6331_v58  ;;  %v3333_v58 = vld [vmem:[#allocation8 + $0x1318] sm:$0xff]  ;;  %v3435_v44 = vrot.slane %v3296_v41, 6  ;;  %v3677_v53 = vld [vmem:[#allocation2 + $0x38] sm:$0x80]  ;;  %v3719_v0 = vld [vmem:[#allocation8 + $0x15f0] sm:$0xff]  ;;  %v3429_v55 = vrot.slane %v3293_v8, 6 }
 0x2ae   : > { %5299 = vmatpush3.msra.mxu1 %v3336_v54  ;;  %5336 = vmatprep.subr.mxu0 %v3384_v51  ;;  %v2033_v31 = vadd.f32 %v4861_v4, %v4823_v25  ;;  %v4898_v3 = vpop.f32.mrf.mxu0  ;;  %v3331_v25 = vld [vmem:[#allocation8 + $0x1308] sm:$0xff]  ;;  %v3720_v9 = vld [vmem:[#allocation8 + $0x15f8] sm:$0xff]  ;;  %v3432_v54 = vsel %vm3406_vm6, %v3417_v43, %v3431_v30  ;;  %v3703_v4 = vld [vmem:[#allocation8 + $0x1570] sm:$0xff] }
 0x2af   : > { %6511 = vst [vmem:[#allocation16_spill] sm:$0xff] %v6361_v60  ;;  %5300 = vmatprep.subr.mxu1 %v3351_v32  ;;  %5337 = vmatpush3.msra.mxu0 %v3368_v56  ;;  %v4899_v19 = vadd.f32 %v4898_v3, %v4897_v57  ;;  %v3704_v50 = vld [vmem:[#allocation8 + $0x1578] sm:$0xff]  ;;  %v3421_v56 = vsel %vm3406_vm6, %v3419_v40, %v3420_v49  ;;  %v3718_v43 = vld [vmem:[#allocation8 + $0x15e8] sm:$0xff]  ;;  %v3713_v27 = vld [vmem:[#allocation8 + $0x15c0] sm:$0xff] }
 0x2b0   : > { %5301 = vmatpush3.msra.mxu1 %v3335_v7  ;;  %5338 = vmatprep.subr.mxu0 %v3383_v47  ;;  %v3752_v51 = vld [vmem:[#allocation8 + $0x16f8] sm:$0xff]  ;;  %v3751_v7 = vld [vmem:[#allocation8 + $0x16f0] sm:$0xff]  ;;  %v3679_v47 = vld [vmem:[#allocation2 + $0x58] sm:$0x80]  ;;  %v3436_v35 = vsel %vm3406_vm6, %v6339_v28, %v3435_v44  ;;  %v3430_v42 = vsel %vm3406_vm6, %v3414_v29, %v3429_v55 }
 0x2b1   : > { %5302 = vmatprep.subr.mxu1 %v3350_v61  ;;  %5339 = vmatpush3.msra.mxu0 %v3367_v36  ;;  %v2108_v12 = vadd.f32 %v4899_v19, %v2033_v31  ;;  %v3295_v32 = vld [vmem:[#allocation2 + $0x68] sm:$0x3f]  ;;  %v3801_v36 = vrot.slane %v3677_v53, 7  ;;  %v3702_v3 = vld [vmem:[#allocation8 + $0x1568] sm:$0xff]  ;;  %v3807_v19 = vrot.slane %v3679_v47, 7  ;;  %v3729_v30 = vld [vmem:[#allocation8 + $0x1640] sm:$0xff] }
 0x2b2   : > { %5303 = vmatpush3.msra.mxu1 %v3334_v5  ;;  %5340 = vmatprep.subr.mxu0 %v3382_v52  ;;  %v3736_v57 = vld [vmem:[#allocation8 + $0x1678] sm:$0xff]  ;;  %v3433_v61 = vrot.slane %v3295_v32, 6  ;;  %v3735_v31 = vld [vmem:[#allocation8 + $0x1670] sm:$0xff]  ;;  %v3750_v28 = vld [vmem:[#allocation8 + $0x16e8] sm:$0xff] }
 0x2b3   : > { %5304 = vmatprep.subr.mxu1 %v3349_v33  ;;  %5341 = vmatpush3.msra.mxu0 %v3366_v18  ;;  %v6364_v37 = vadd.f32 %v2108_v12, %v6334_v14  ;;  %v3363_v14 = vld [vmem:[#allocation8 + $0x1408] sm:$0xff]  ;;  %v3717_v33 = vld [vmem:[#allocation8 + $0x15e0] sm:$0xff]  ;;  %v3808_v12 = vrot.slane %v6389_v11, 7  ;;  %v3712_v29 = vld [vmem:[#allocation8 + $0x15b8] sm:$0xff] }
 0x2b4   : > { %5305 = vmatpush3.msra.mxu1 %v3333_v58  ;;  %5342 = vmatprep.subr.mxu0 %v3381_v6  ;;  %v6382_v5 = vld [vmem:[#allocation2 + $0x80] sm:$0xff]  ;;  %v3434_v18 = vsel %vm3406_vm6, %v3420_v49, %v3433_v61  ;;  %v3696_v41 = vld [vmem:[#allocation8 + $0x1538] sm:$0xff]  ;;  %v3709_v53 = vld [vmem:[#allocation8 + $0x15a0] sm:$0xff] }
 0x2b5   : > { %6512 = vst [vmem:[#allocation17_spill] sm:$0xff] %v6364_v37  ;;  %5306 = vmatprep.subr.mxu1 %v3348_v13  ;;  %5343 = vmatpush3.msra.mxu0 %v3365_v63  ;;  %v3802_v52 = vrot.slane %v6382_v5, 7  ;;  %v3734_v6 = vld [vmem:[#allocation8 + $0x1668] sm:$0xff]  ;;  %v3701_v13 = vld [vmem:[#allocation8 + $0x1560] sm:$0xff]  ;;  %v3809_v15 = vsel %vm3797_vm7, %v3807_v19, %v3808_v12  ;;  %v3728_v40 = vld [vmem:[#allocation8 + $0x1638] sm:$0xff] }
 0x2b6   : > { %5307 = vmatpush3.msra.mxu1 %v3332_v16  ;;  %5344 = vmatprep.subr.mxu0 %v3380_v17  ;;  %v3749_v63 = vld [vmem:[#allocation8 + $0x16e0] sm:$0xff]  ;;  %v3716_v16 = vld [vmem:[#allocation8 + $0x15d8] sm:$0xff]  ;;  %v3746_v1 = vld [vmem:[#allocation8 + $0x16c8] sm:$0xff] }
 0x2b7   : > { %5308 = vmatprep.subr.mxu1 %v3347_v21  ;;  %5345 = vmatpush3.msra.mxu0 %v3364_v22  ;;  %v3803_v58 = vsel %vm3797_vm7, %v3801_v36, %v3802_v52  ;;  %v3733_v17 = vld [vmem:[#allocation8 + $0x1660] sm:$0xff]  ;;  %v3748_v21 = vld [vmem:[#allocation8 + $0x16d8] sm:$0xff]  ;;  %v3715_v22 = vld [vmem:[#allocation8 + $0x15d0] sm:$0xff] }
 0x2b8   : > { %3519 = vmatmul.mubr.f32.gmra.mxu0 %v3426_v23  ;;  %5309 = vmatpush3.msra.mxu1 %v3331_v25  ;;  %v3732_v23 = vld [vmem:[#allocation8 + $0x1658] sm:$0xff]  ;;  %v3699_v25 = vld [vmem:[#allocation8 + $0x1550] sm:$0xff]  ;;  %v3742_v44 = vld [vmem:[#allocation8 + $0x16a8] sm:$0xff] }
 0x2b9   : > { %5346 = vmatprep.subr.mxu0 %v3379_v2  ;;  %5310 = vmatprep.subr.mxu1 %v3346_v26  ;;  %v3731_v2 = vld [vmem:[#allocation8 + $0x1650] sm:$0xff]  ;;  %v3698_v26 = vld [vmem:[#allocation8 + $0x1548] sm:$0xff]  ;;  %v3708_v55 = vld [vmem:[#allocation8 + $0x1598] sm:$0xff] }
 0x2ba   : > { %5347 = vmatpush3.msra.mxu0 %v3363_v14  ;;  %5311 = vmatpush3.msra.mxu1 %v3330_v46  ;;  %v3730_v14 = vld [vmem:[#allocation8 + $0x1648] sm:$0xff]  ;;  %v3697_v46 = vld [vmem:[#allocation8 + $0x1540] sm:$0xff]  ;;  %v3695_v8 = vld [vmem:[#allocation8 + $0x1530] sm:$0xff] }
 0x2bb   : > { %5348 = vmatprep.subr.mxu0 %v3378_v45  ;;  %3589 = vmatmul.mubr.f32.vlgmr.msra.gmra.mxu1 %v3415_v48  ;;  %v3745_v45 = vld [vmem:[#allocation8 + $0x16c0] sm:$0xff]  ;;  %v3743_v48 = vld [vmem:[#allocation8 + $0x16b0] sm:$0xff]  ;;  %v3724_v47 = vld [vmem:[#allocation8 + $0x1618] sm:$0xff] }
 0x2bc   : > { %5349 = vmatpush3.msra.mxu0 %v3362_v39  ;;  %3663 = vmatprep.mubr.f32.mxu0 %v3424_v38  ;;  %v3744_v39 = vld [vmem:[#allocation8 + $0x16b8] sm:$0xff]  ;;  %v3711_v38 = vld [vmem:[#allocation8 + $0x15b0] sm:$0xff]  ;;  %v3725_v32 = vld [vmem:[#allocation8 + $0x1620] sm:$0xff] }
 0x2bd   : > { %5356 = vmatprep.subr.mxu1 %v3720_v9  ;;  %3593 = vmatprep.mubr.f32.mxu1 %v3432_v54  ;;  %v3710_v9 = vld [vmem:[#allocation8 + $0x15a8] sm:$0xff]  ;;  %v3727_v49 = vld [vmem:[#allocation8 + $0x1630] sm:$0xff] }
 0x2be   : > { %3664 = vmatmul.mubr.f32.vlgmr.msra.gmra.mxu0 %v3421_v56  ;;  %5357 = vmatpush3.msra.mxu1 %v3704_v50  ;;  %v3694_v50 = vld [vmem:[#allocation8 + $0x1528] sm:$0xff]  ;;  %v3692_v56 = vld [vmem:[#allocation8 + $0x1518] sm:$0xff]  ;;  %v3723_v36 = vld [vmem:[#allocation8 + $0x1610] sm:$0xff] }
 0x2bf   : > { %5394 = vmatprep.subr.mxu0 %v3752_v51  ;;  %5358 = vmatprep.subr.mxu1 %v3719_v0  ;;  %v3726_v54 = vld [vmem:[#allocation8 + $0x1628] sm:$0xff]  ;;  %v3693_v51 = vld [vmem:[#allocation8 + $0x1520] sm:$0xff] }
 0x2c0   : > { %5395 = vmatpush3.msra.mxu0 %v3736_v57  ;;  %5359 = vmatpush3.msra.mxu1 %v3703_v4  ;;  %v3741_v0 = vld [vmem:[#allocation8 + $0x16a0] sm:$0xff]  ;;  %v3740_v57 = vld [vmem:[#allocation8 + $0x1698] sm:$0xff]  ;;  %v3676_v4 = vld [vmem:[#allocation2] sm:$0x80] }
 0x2c1   : > { %5396 = vmatprep.subr.mxu0 %v3751_v7  ;;  %3594 = vmatmul.mubr.f32.gmra.mxu1 %v3430_v42  ;;  %v3707_v7 = vld [vmem:[#allocation8 + $0x1590] sm:$0xff]  ;;  %v3706_v61 = vld [vmem:[#allocation8 + $0x1588] sm:$0xff]  ;;  %v3798_v42 = vrot.slane %v3676_v4, 7 }
 0x2c2   : > { %3668 = vmatprep.mubr.f32.mxu0 %v3436_v35  ;;  %5360 = vmatprep.subr.mxu1 %v3718_v43  ;;  %v3691_v35 = vld [vmem:[#allocation8 + $0x1510] sm:$0xff]  ;;  %v3690_v19 = vld [vmem:[#allocation8 + $0x1508] sm:$0xff] }
 0x2c3   : > { %5397 = vmatpush3.msra.mxu0 %v3735_v31  ;;  %5361 = vmatpush3.msra.mxu1 %v3702_v3  ;;  %v3739_v43 = vld [vmem:[#allocation8 + $0x1690] sm:$0xff]  ;;  %v6396_v31 = vrot.slane %v6336_v62, 7  ;;  %v3762_v4 = vld [vmem:[#allocation8 + $0x1748] sm:$0xff] }
 0x2c4   : > { %3669 = vmatmul.mubr.f32.gmra.mxu0 %v3434_v18  ;;  %3904 = vmatprep.mubr.f32.mxu1 %v3803_v58  ;;  %v3683_v3 = vld [vmem:[#allocation2 + $0x48] sm:$0x7f]  ;;  %v3705_v18 = vld [vmem:[#allocation8 + $0x1580] sm:$0xff]  ;;  %v3722_v58 = vld [vmem:[#allocation8 + $0x1608] sm:$0xff] }
 0x2c5   : > { %5398 = vmatprep.subr.mxu0 %v3750_v28  ;;  %5362 = vmatprep.subr.mxu1 %v3717_v33  ;;  %v3738_v28 = vld [vmem:[#allocation8 + $0x1688] sm:$0xff]  ;;  %v3800_v62 = vsel %vm3797_vm7, %v3798_v42, %v6396_v31  ;;  %v3760_v42 = vld [vmem:[#allocation8 + $0x1738] sm:$0xff] }
 0x2c6   : > { %5399 = vmatpush3.msra.mxu0 %v3734_v6  ;;  %3979 = vmatprep.mubr.f32.mxu0 %v3809_v15  ;;  %v3678_v33 = vld [vmem:[#allocation2 + $0x78] sm:$0x80]  ;;  %v3685_v6 = vld [vmem:[#allocation2 + $0x18] sm:$0x7f]  ;;  %v3818_v15 = vrot.slane %v3683_v3, 7  ;;  %v4097_v3 = vld [vmem:[#allocation8 + $0x18b8] sm:$0xff] }
 0x2c7   : > { %5363 = vmatpush3.msra.mxu1 %v3701_v13  ;;  %5400 = vmatprep.subr.mxu0 %v3749_v63  ;;  %v3689_v13 = vld [vmem:[#allocation8 + $0x1500] sm:$0xff] }
 0x2c8   : > { %5364 = vmatprep.subr.mxu1 %v3716_v16  ;;  %5401 = vmatpush3.msra.mxu0 %v3733_v17  ;;  %v3737_v63 = vld [vmem:[#allocation8 + $0x1680] sm:$0xff]  ;;  %v3804_v17 = vrot.slane %v3678_v33, 7  ;;  %v3759_v33 = vld [vmem:[#allocation8 + $0x1730] sm:$0xff] }
 0x2c9   : > { %5365 = vmatpush3.msra.mxu1 %v3700_v20  ;;  %5402 = vmatprep.subr.mxu0 %v3748_v21  ;;  %v3721_v16 = vld [vmem:[#allocation8 + $0x1600] sm:$0xff]  ;;  %v3784_v21 = vld [vmem:[#allocation8 + $0x17f8] sm:$0xff] }
 0x2ca   : > { %5366 = vmatprep.subr.mxu1 %v3715_v22  ;;  %5403 = vmatpush3.msra.mxu0 %v3732_v23  ;;  %v3682_v20 = vld [vmem:[#allocation2 + $0x10] sm:$0x7f]  ;;  %v3822_v22 = vrot.slane %v3685_v6, 7  ;;  %v3805_v23 = vrot.slane %v6368_v59, 7  ;;  %v4080_v6 = vld [vmem:[#allocation8 + $0x1830] sm:$0xff] }
 0x2cb   : > { %5367 = vmatpush3.msra.mxu1 %v3699_v25  ;;  %5404 = vmatprep.subr.mxu0 %v3747_v10  ;;  %v3768_v25 = vld [vmem:[#allocation8 + $0x1778] sm:$0xff] }
 0x2cc   : > { %5368 = vmatprep.subr.mxu1 %v3714_v24  ;;  %5405 = vmatpush3.msra.mxu0 %v3731_v2  ;;  %v3684_v10 = vld [vmem:[#allocation2 + $0x30] sm:$0x7f]  ;;  %v3819_v24 = vsel %vm3797_vm7, %v3802_v52, %v3818_v15  ;;  %v3782_v52 = vld [vmem:[#allocation8 + $0x17e8] sm:$0xff] }
 0x2cd   : > { %5369 = vmatpush3.msra.mxu1 %v3698_v26  ;;  %5406 = vmatprep.subr.mxu0 %v3746_v1  ;;  %v4105_v2 = vld [vmem:[#allocation8 + $0x18f8] sm:$0xff]  ;;  %v3816_v26 = vrot.slane %v3682_v20, 7  ;;  %v3806_v1 = vsel %vm3797_vm7, %v3804_v17, %v3805_v23  ;;  %v3773_v15 = vld [vmem:[#allocation8 + $0x17a0] sm:$0xff] }
 0x2ce   : > { %5370 = vmatprep.subr.mxu1 %v3713_v27  ;;  %5407 = vmatpush3.msra.mxu0 %v3730_v14  ;;  %v3783_v27 = vld [vmem:[#allocation8 + $0x17f0] sm:$0xff]  ;;  %v4089_v14 = vld [vmem:[#allocation8 + $0x1878] sm:$0xff]  ;;  %v4094_v17 = vld [vmem:[#allocation8 + $0x18a0] sm:$0xff] }
 0x2cf   : > { %5371 = vmatpush3.msra.mxu1 %v3697_v46  ;;  %5408 = vmatprep.subr.mxu0 %v3745_v45  ;;  %v3823_v46 = vsel %vm3797_vm7, %v3808_v12, %v3822_v22  ;;  %v3767_v45 = vld [vmem:[#allocation8 + $0x1770] sm:$0xff]  ;;  %v3772_v20 = vld [vmem:[#allocation8 + $0x1798] sm:$0xff] }
 0x2d0   : > { %5372 = vmatprep.subr.mxu1 %v3712_v29  ;;  %5409 = vmatpush3.msra.mxu0 %v3729_v30  ;;  %v4104_v29 = vld [vmem:[#allocation8 + $0x18f0] sm:$0xff]  ;;  %v3820_v30 = vrot.slane %v3684_v10, 7  ;;  %v3756_v22 = vld [vmem:[#allocation8 + $0x1718] sm:$0xff] }
 0x2d1   : > { %5373 = vmatpush3.msra.mxu1 %v3696_v41  ;;  %5410 = vmatprep.subr.mxu0 %v3744_v39  ;;  %v4088_v41 = vld [vmem:[#allocation8 + $0x1870] sm:$0xff]  ;;  %v3817_v39 = vsel %vm3797_vm7, %v6396_v31, %v3816_v26 }
 0x2d2   : > { %5374 = vmatprep.subr.mxu1 %v3711_v38  ;;  %5411 = vmatpush3.msra.mxu0 %v3728_v40  ;;  %v3766_v38 = vld [vmem:[#allocation8 + $0x1768] sm:$0xff]  ;;  %v3821_v12 = vsel %vm3797_vm7, %v3805_v23, %v3820_v30  ;;  %v3681_v23 = vld [vmem:[#allocation2 + $0x8] sm:$0x80]  ;;  %v3771_v10 = vld [vmem:[#allocation8 + $0x1790] sm:$0xff] }
 0x2d3   : > { %5375 = vmatpush3.msra.mxu1 %v3695_v8  ;;  %5412 = vmatprep.subr.mxu0 %v3743_v48  ;;  %v4103_v40 = vld [vmem:[#allocation8 + $0x18e8] sm:$0xff]  ;;  %v3781_v8 = vld [vmem:[#allocation8 + $0x17e0] sm:$0xff]  ;;  %v4092_v26 = vld [vmem:[#allocation8 + $0x1890] sm:$0xff] }
 0x2d4   : > { %5376 = vmatprep.subr.mxu1 %v3710_v9  ;;  %5413 = vmatpush3.msra.mxu0 %v3727_v49  ;;  %v4087_v48 = vld [vmem:[#allocation8 + $0x1868] sm:$0xff]  ;;  %v3765_v9 = vld [vmem:[#allocation8 + $0x1760] sm:$0xff] }
 0x2d5   : > { %5377 = vmatpush3.msra.mxu1 %v3694_v50  ;;  %5414 = vmatprep.subr.mxu0 %v3742_v44  ;;  %v4102_v49 = vld [vmem:[#allocation8 + $0x18e0] sm:$0xff]  ;;  %v3780_v50 = vld [vmem:[#allocation8 + $0x17d8] sm:$0xff] }
 0x2d6   : > { %5378 = vmatprep.subr.mxu1 %v3709_v53  ;;  %5415 = vmatpush3.msra.mxu0 %v3726_v54  ;;  %v4086_v44 = vld [vmem:[#allocation8 + $0x1860] sm:$0xff]  ;;  %v3764_v53 = vld [vmem:[#allocation8 + $0x1758] sm:$0xff] }
 0x2d7   : > { %5379 = vmatpush3.msra.mxu1 %v3693_v51  ;;  %5416 = vmatprep.subr.mxu0 %v3741_v0  ;;  %v4101_v54 = vld [vmem:[#allocation8 + $0x18d8] sm:$0xff]  ;;  %v3779_v51 = vld [vmem:[#allocation8 + $0x17d0] sm:$0xff]  ;;  %v3769_v30 = vld [vmem:[#allocation8 + $0x1780] sm:$0xff] }
 0x2d8   : > { %5380 = vmatprep.subr.mxu1 %v3708_v55  ;;  %5417 = vmatpush3.msra.mxu0 %v3725_v32  ;;  %v4085_v0 = vld [vmem:[#allocation8 + $0x1858] sm:$0xff]  ;;  %v3763_v55 = vld [vmem:[#allocation8 + $0x1750] sm:$0xff] }
 0x2d9   : > { %5381 = vmatpush3.msra.mxu1 %v3692_v56  ;;  %5418 = vmatprep.subr.mxu0 %v3740_v57  ;;  %v4100_v32 = vld [vmem:[#allocation8 + $0x18d0] sm:$0xff]  ;;  %v3778_v56 = vld [vmem:[#allocation8 + $0x17c8] sm:$0xff] }
 0x2da   : > { %5382 = vmatprep.subr.mxu1 %v3707_v7  ;;  %5419 = vmatpush3.msra.mxu0 %v3724_v47  ;;  %v4084_v57 = vld [vmem:[#allocation8 + $0x1850] sm:$0xff]  ;;  %v4099_v7 = vld [vmem:[#allocation8 + $0x18c8] sm:$0xff]  ;;  %v3777_v47 = vld [vmem:[#allocation8 + $0x17c0] sm:$0xff] }
 0x2db   : > { %5383 = vmatpush3.msra.mxu1 %v3691_v35  ;;  %5420 = vmatprep.subr.mxu0 %v3739_v43  ;;  %v3761_v35 = vld [vmem:[#allocation8 + $0x1740] sm:$0xff] }
 0x2dc   : > { %5384 = vmatprep.subr.mxu1 %v3706_v61  ;;  %5421 = vmatpush3.msra.mxu0 %v3723_v36  ;;  %v4098_v43 = vld [vmem:[#allocation8 + $0x18c0] sm:$0xff]  ;;  %v3776_v61 = vld [vmem:[#allocation8 + $0x17b8] sm:$0xff] }
 0x2dd   : > { %5385 = vmatpush3.msra.mxu1 %v3690_v19  ;;  %5422 = vmatprep.subr.mxu0 %v3738_v28  ;;  %v4082_v36 = vld [vmem:[#allocation8 + $0x1840] sm:$0xff]  ;;  %v3775_v19 = vld [vmem:[#allocation8 + $0x17b0] sm:$0xff]  ;;  %v4081_v28 = vld [vmem:[#allocation8 + $0x1838] sm:$0xff] }
 0x2de   : > { %5386 = vmatprep.subr.mxu1 %v3705_v18  ;;  %5423 = vmatpush3.msra.mxu0 %v3722_v58  ;;  %v4096_v18 = vld [vmem:[#allocation8 + $0x18b0] sm:$0xff]  ;;  %v3774_v58 = vld [vmem:[#allocation8 + $0x17a8] sm:$0xff] }
 0x2df   : > { %5387 = vmatpush3.msra.mxu1 %v3689_v13  ;;  %5424 = vmatprep.subr.mxu0 %v3737_v63  ;;  %v3758_v13 = vld [vmem:[#allocation8 + $0x1728] sm:$0xff] }
 0x2e0   : > { %3905 = vmatmul.mubr.f32.vlgmr.msra.gmra.mxu1 %v3800_v62  ;;  %5425 = vmatpush3.msra.mxu0 %v3721_v16  ;;  %v4095_v63 = vld [vmem:[#allocation8 + $0x18a8] sm:$0xff]  ;;  %v3757_v16 = vld [vmem:[#allocation8 + $0x1720] sm:$0xff] }
 0x2e1   : > { %5432 = vmatprep.subr.mxu1 %v3784_v21  ;;  %3909 = vmatprep.mubr.f32.mxu1 %v3819_v24  ;;  %v4079_v62 = vld [vmem:[#allocation8 + $0x1828] sm:$0xff]  ;;  %v4078_v21 = vld [vmem:[#allocation8 + $0x1820] sm:$0xff]  ;;  %v4077_v24 = vld [vmem:[#allocation8 + $0x1818] sm:$0xff] }
 0x2e2   : > { %3980 = vmatmul.mubr.f32.vlgmr.msra.gmra.mxu0 %v3806_v1  ;;  %5433 = vmatpush3.msra.mxu1 %v3768_v25  ;;  %v4093_v25 = vld [vmem:[#allocation8 + $0x1898] sm:$0xff]  ;;  %v3770_v1 = vld [vmem:[#allocation8 + $0x1788] sm:$0xff] }
 0x2e3   : > { %5470 = vmatprep.subr.mxu0 %v4105_v2  ;;  %3984 = vmatprep.mubr.f32.mxu0 %v3823_v46  ;;  %v3755_v2 = vld [vmem:[#allocation8 + $0x1710] sm:$0xff] }
 0x2e4   : > { %5434 = vmatprep.subr.mxu1 %v3783_v27  ;;  %5471 = vmatpush3.msra.mxu0 %v4089_v14  ;;  %v3813_v27 = vrot.slane %v3681_v23, 7  ;;  %v3680_v14 = vld [vmem:[#allocation2 + $0x20] sm:$0x80]  ;;  %v4146_v23 = vld [vmem:[#allocation8 + $0x1a40] sm:$0xff] }
 0x2e5   : > { %5435 = vmatpush3.msra.mxu1 %v3767_v45  ;;  %5472 = vmatprep.subr.mxu0 %v4104_v29  ;;  %v4076_v46 = vld [vmem:[#allocation8 + $0x1810] sm:$0xff]  ;;  %v3754_v45 = vld [vmem:[#allocation8 + $0x1708] sm:$0xff] }
 0x2e6   : > { %5436 = vmatprep.subr.mxu1 %v3782_v52  ;;  %5473 = vmatpush3.msra.mxu0 %v4088_v41  ;;  %v4091_v29 = vld [vmem:[#allocation8 + $0x1888] sm:$0xff] }
 0x2e7   : > { %3910 = vmatmul.mubr.f32.gmra.mxu1 %v3817_v39  ;;  %3985 = vmatmul.mubr.f32.gmra.mxu0 %v3821_v12  ;;  %v3687_v52 = vld [vmem:[#allocation2 + $0x60] sm:$0x7f]  ;;  %v3753_v39 = vld [vmem:[#allocation8 + $0x1700] sm:$0xff] }
 0x2e8   : > { %5437 = vmatpush3.msra.mxu1 %v3766_v38  ;;  %5474 = vmatprep.subr.mxu0 %v4103_v40  ;;  %v4075_v41 = vld [vmem:[#allocation8 + $0x1808] sm:$0xff]  ;;  %v3810_v38 = vrot.slane %v3680_v14, 7  ;;  %v3815_v40 = vsel %vm3797_vm7, %v3813_v27, %v6396_v31  ;;  %v4090_v12 = vld [vmem:[#allocation8 + $0x1880] sm:$0xff]  ;;  %v4144_v14 = vld [vmem:[#allocation8 + $0x1a30] sm:$0xff] }
 0x2e9   : > { %5438 = vmatprep.subr.mxu1 %v3781_v8  ;;  %5475 = vmatpush3.msra.mxu0 %v4087_v48  ;;  %v3811_v8 = vrot.slane %v6343_v34, 7  ;;  %v4074_v48 = vld [vmem:[#allocation8 + $0x1800] sm:$0xff]  ;;  %v4153_v34 = vld [vmem:[#allocation8 + $0x1a78] sm:$0xff]  ;;  %v4127_v27 = vld [vmem:[#allocation8 + $0x19a8] sm:$0xff] }
 0x2ea   : > { %4234 = vmatprep.mubr.f32.mxu0 %v6382_v5  ;;  %5439 = vmatpush3.msra.mxu1 %v3765_v9  ;;  %v4083_v5 = vld [vmem:[#allocation8 + $0x1848] sm:$0xff]  ;;  %v3826_v9 = vrot.slane %v3687_v52, 7  ;;  %v4110_v52 = vld [vmem:[#allocation8 + $0x1920] sm:$0xff] }
 0x2eb   : > { %5476 = vmatprep.subr.mxu0 %v4102_v49  ;;  %5440 = vmatprep.subr.mxu1 %v3780_v50  ;;  %v4137_v49 = vld [vmem:[#allocation8 + $0x19f8] sm:$0xff] }
 0x2ec   : > { %5477 = vmatpush3.msra.mxu0 %v4086_v44  ;;  %5441 = vmatpush3.msra.mxu1 %v3764_v53  ;;  %v3686_v50 = vld [vmem:[#allocation2 + $0x68] sm:$0x7f]  ;;  %v3812_v44 = vsel %vm3797_vm7, %v3810_v38, %v3811_v8  ;;  %v4142_v38 = vld [vmem:[#allocation8 + $0x1a20] sm:$0xff] }
 0x2ed   : > { %5478 = vmatprep.subr.mxu0 %v4101_v54  ;;  %5442 = vmatprep.subr.mxu1 %v3779_v51  ;;  %v4121_v53 = vld [vmem:[#allocation8 + $0x1978] sm:$0xff]  ;;  %v4136_v51 = vld [vmem:[#allocation8 + $0x19f0] sm:$0xff] }
 0x2ee   : > { %5479 = vmatpush3.msra.mxu0 %v4085_v0  ;;  %5443 = vmatpush3.msra.mxu1 %v3763_v55  ;;  %v4169_v54 = vld [vmem:[#allocation8 + $0x1af8] sm:$0xff]  ;;  %v6416_v0 = vld [vmem:[#allocation2] sm:$0xff]  ;;  %v3827_v55 = vsel %vm3797_vm7, %v6396_v31, %v3826_v9  ;;  %v4134_v31 = vld [vmem:[#allocation8 + $0x19e0] sm:$0xff] }
 0x2ef   : > { %5480 = vmatprep.subr.mxu0 %v4100_v32  ;;  %5444 = vmatprep.subr.mxu1 %v3778_v56  ;;  %v3824_v32 = vrot.slane %v3686_v50, 7  ;;  %v4068_v56 = vld [vmem:[#allocation2 + $0x48] sm:$0xff]  ;;  %v4123_v50 = vld [vmem:[#allocation8 + $0x1988] sm:$0xff] }
 0x2f0   : > { %5481 = vmatpush3.msra.mxu0 %v4084_v57  ;;  %5445 = vmatpush3.msra.mxu1 %v3762_v4  ;;  %v4120_v57 = vld [vmem:[#allocation8 + $0x1970] sm:$0xff] }
 0x2f1   : > { %5482 = vmatprep.subr.mxu0 %v4099_v7  ;;  %5446 = vmatprep.subr.mxu1 %v3777_v47  ;;  %v4168_v4 = vld [vmem:[#allocation8 + $0x1af0] sm:$0xff]  ;;  %v4135_v7 = vld [vmem:[#allocation8 + $0x19e8] sm:$0xff] }
 0x2f2   : > { %5483 = vmatpush3.msra.mxu0 %v4083_v5  ;;  %5447 = vmatpush3.msra.mxu1 %v3761_v35  ;;  %v4152_v47 = vld [vmem:[#allocation8 + $0x1a70] sm:$0xff]  ;;  %v4119_v5 = vld [vmem:[#allocation8 + $0x1968] sm:$0xff]  ;;  %v3825_v35 = vsel %vm3797_vm7, %v3811_v8, %v3824_v32  ;;  %v4154_v32 = vld [vmem:[#allocation8 + $0x1a80] sm:$0xff] }
 0x2f3   : > { %5484 = vmatprep.subr.mxu0 %v4098_v43  ;;  %5448 = vmatprep.subr.mxu1 %v3776_v61  ;;  %v4167_v43 = vld [vmem:[#allocation8 + $0x1ae8] sm:$0xff]  ;;  %v4124_v8 = vld [vmem:[#allocation8 + $0x1990] sm:$0xff] }
 0x2f4   : > { %5485 = vmatpush3.msra.mxu0 %v4082_v36  ;;  %5449 = vmatpush3.msra.mxu1 %v3760_v42  ;;  %v4151_v61 = vld [vmem:[#allocation8 + $0x1a68] sm:$0xff]  ;;  %v4118_v36 = vld [vmem:[#allocation8 + $0x1960] sm:$0xff]  ;;  %v4108_v9 = vld [vmem:[#allocation8 + $0x1910] sm:$0xff] }
 0x2f5   : > { %5486 = vmatprep.subr.mxu0 %v4097_v3  ;;  %5450 = vmatprep.subr.mxu1 %v3775_v19  ;;  %v4166_v42 = vld [vmem:[#allocation8 + $0x1ae0] sm:$0xff]  ;;  %v4133_v3 = vld [vmem:[#allocation8 + $0x19d8] sm:$0xff] }
 0x2f6   : > { %5487 = vmatpush3.msra.mxu0 %v4081_v28  ;;  %5451 = vmatpush3.msra.mxu1 %v3759_v33  ;;  %v4150_v19 = vld [vmem:[#allocation8 + $0x1a60] sm:$0xff]  ;;  %v4117_v28 = vld [vmem:[#allocation8 + $0x1958] sm:$0xff] }
 0x2f7   : > { %5488 = vmatprep.subr.mxu0 %v4096_v18  ;;  %5452 = vmatprep.subr.mxu1 %v3774_v58  ;;  %v4165_v33 = vld [vmem:[#allocation8 + $0x1ad8] sm:$0xff]  ;;  %v4132_v18 = vld [vmem:[#allocation8 + $0x19d0] sm:$0xff] }
 0x2f8   : > { %5489 = vmatpush3.msra.mxu0 %v4080_v6  ;;  %5453 = vmatpush3.msra.mxu1 %v3758_v13  ;;  %v4149_v58 = vld [vmem:[#allocation8 + $0x1a58] sm:$0xff]  ;;  %v4116_v6 = vld [vmem:[#allocation8 + $0x1950] sm:$0xff] }
 0x2f9   : > { %5490 = vmatprep.subr.mxu0 %v4095_v63  ;;  %5454 = vmatprep.subr.mxu1 %v3773_v15  ;;  %v4164_v13 = vld [vmem:[#allocation8 + $0x1ad0] sm:$0xff]  ;;  %v4131_v63 = vld [vmem:[#allocation8 + $0x19c8] sm:$0xff] }
 0x2fa   : > { %5491 = vmatpush3.msra.mxu0 %v4079_v62  ;;  %5455 = vmatpush3.msra.mxu1 %v3757_v16  ;;  %v4148_v15 = vld [vmem:[#allocation8 + $0x1a50] sm:$0xff]  ;;  %v4163_v62 = vld [vmem:[#allocation8 + $0x1ac8] sm:$0xff]  ;;  %v4130_v16 = vld [vmem:[#allocation8 + $0x19c0] sm:$0xff] }
 0x2fb   : > { %5492 = vmatprep.subr.mxu0 %v4094_v17  ;;  %5456 = vmatprep.subr.mxu1 %v3772_v20  ;;  %v4147_v17 = vld [vmem:[#allocation8 + $0x1a48] sm:$0xff]  ;;  %v4114_v20 = vld [vmem:[#allocation8 + $0x1940] sm:$0xff] }
 0x2fc   : > { %5493 = vmatpush3.msra.mxu0 %v4078_v21  ;;  %5457 = vmatpush3.msra.mxu1 %v3756_v22  ;;  %v4162_v21 = vld [vmem:[#allocation8 + $0x1ac0] sm:$0xff]  ;;  %v4129_v22 = vld [vmem:[#allocation8 + $0x19b8] sm:$0xff] }
 0x2fd   : > { %5494 = vmatprep.subr.mxu0 %v4093_v25  ;;  %5458 = vmatprep.subr.mxu1 %v3771_v10  ;;  %v4113_v25 = vld [vmem:[#allocation8 + $0x1938] sm:$0xff] }
 0x2fe   : > { %5495 = vmatpush3.msra.mxu0 %v4077_v24  ;;  %5459 = vmatpush3.msra.mxu1 %v3755_v2  ;;  %v4161_v10 = vld [vmem:[#allocation8 + $0x1ab8] sm:$0xff]  ;;  %v4128_v24 = vld [vmem:[#allocation8 + $0x19b0] sm:$0xff] }
 0x2ff   : > { %5496 = vmatprep.subr.mxu0 %v4092_v26  ;;  %5460 = vmatprep.subr.mxu1 %v3770_v1  ;;  %v4145_v2 = vld [vmem:[#allocation8 + $0x1a38] sm:$0xff]  ;;  %v4112_v26 = vld [vmem:[#allocation8 + $0x1930] sm:$0xff] }
 0x300   : > { %5497 = vmatpush3.msra.mxu0 %v4076_v46  ;;  %5461 = vmatpush3.msra.mxu1 %v3754_v45  ;;  %v4160_v1 = vld [vmem:[#allocation8 + $0x1ab0] sm:$0xff]  ;;  %v4111_v46 = vld [vmem:[#allocation8 + $0x1928] sm:$0xff] }
 0x301   : > { %5498 = vmatprep.subr.mxu0 %v4091_v29  ;;  %5462 = vmatprep.subr.mxu1 %v3769_v30  ;;  %v4159_v45 = vld [vmem:[#allocation8 + $0x1aa8] sm:$0xff]  ;;  %v4126_v29 = vld [vmem:[#allocation8 + $0x19a0] sm:$0xff] }
 0x302   : > { %5499 = vmatpush3.msra.mxu0 %v4075_v41  ;;  %5463 = vmatpush3.msra.mxu1 %v3753_v39  ;;  %v4143_v30 = vld [vmem:[#allocation8 + $0x1a28] sm:$0xff]  ;;  %v4158_v41 = vld [vmem:[#allocation8 + $0x1aa0] sm:$0xff]  ;;  %v4125_v39 = vld [vmem:[#allocation8 + $0x1998] sm:$0xff] }
 0x303   : > { %4054 = vmatprep.mubr.f32.mxu1 %v3815_v40  ;;  %5500 = vmatprep.subr.mxu0 %v4090_v12  ;;  %v4109_v40 = vld [vmem:[#allocation8 + $0x1918] sm:$0xff] }
 0x304   : > { %4055 = vmatmul.mubr.f32.vlgmr.msra.gmra.mxu1 %v3812_v44  ;;  %5501 = vmatpush3.msra.mxu0 %v4074_v48  ;;  %v4157_v12 = vld [vmem:[#allocation8 + $0x1a98] sm:$0xff]  ;;  %v4140_v44 = vld [vmem:[#allocation8 + $0x1a10] sm:$0xff] }
 0x305   : > { %5508 = vmatprep.subr.mxu1 %v4137_v49  ;;  %4235 = vmatmul.mubr.f32.vlgmr.msra.gmra.mxu0 %v6416_v0  ;;  %v4141_v48 = vld [vmem:[#allocation8 + $0x1a18] sm:$0xff]  ;;  %v4156_v49 = vld [vmem:[#allocation8 + $0x1a90] sm:$0xff] }
 0x306   : > { %5509 = vmatpush3.msra.mxu1 %v4121_v53  ;;  %5546 = vmatprep.subr.mxu0 %v4169_v54  ;;  %v4107_v53 = vld [vmem:[#allocation8 + $0x1908] sm:$0xff] }
 0x307   : > { %4239 = vmatprep.mubr.f32.mxu0 %v4068_v56  ;;  %5510 = vmatprep.subr.mxu1 %v4136_v51  ;;  %v4155_v54 = vld [vmem:[#allocation8 + $0x1a88] sm:$0xff]  ;;  %v4122_v51 = vld [vmem:[#allocation8 + $0x1980] sm:$0xff] }
 0x308   : > { %5547 = vmatpush3.msra.mxu0 %v4153_v34  ;;  %4059 = vmatprep.mubr.f32.mxu1 %v3827_v55  ;;  %v4139_v34 = vld [vmem:[#allocation8 + $0x1a08] sm:$0xff]  ;;  %v4106_v55 = vld [vmem:[#allocation8 + $0x1900] sm:$0xff] }
 0x309   : > { %5511 = vmatpush3.msra.mxu1 %v4120_v57  ;;  %5548 = vmatprep.subr.mxu0 %v4168_v4  ;;  %v4138_v56 = vld [vmem:[#allocation8 + $0x1a00] sm:$0xff] }
 0x30a   : > { %4060 = vmatmul.mubr.f32.gmra.mxu1 %v3825_v35  ;;  %5512 = vmatprep.subr.mxu1 %v4135_v7  ;;  %v4070_v57 = vld [vmem:[#allocation2 + $0x18] sm:$0xff]  ;;  %v5687_v4 = vld [vmem:[#allocation2 + $0x50] sm:$0xff]  ;;  %v4970_v35 = vpop.f32.mrf.mxu0 }
 0x30b   : > { %5549 = vmatpush3.msra.mxu0 %v4152_v47  ;;  %5513 = vmatpush3.msra.mxu1 %v4119_v5  ;;  %v4069_v7 = vld [vmem:[#allocation2 + $0x30] sm:$0xff]  ;;  %v4071_v47 = vld [vmem:[#allocation2 + $0x68] sm:$0xff]  ;;  %v4932_v5 = vpop.f32.mrf.mxu1 }
 0x30c   : > { %4309 = vmatprep.mubr.f32.mxu1 %v6389_v11  ;;  %5550 = vmatprep.subr.mxu0 %v4167_v43  ;;  %v4115_v11 = vld [vmem:[#allocation8 + $0x1948] sm:$0xff] }
 0x30d   : > { %5514 = vmatprep.subr.mxu1 %v4134_v31  ;;  %5551 = vmatpush3.msra.mxu0 %v4151_v61  ;;  %v4933_v43 = vpop.f32.mrf.mxu1  ;;  %v4971_v31 = vpop.f32.mrf.mxu0 }
 0x30e   : > { %5515 = vmatpush3.msra.mxu1 %v4118_v36  ;;  %5552 = vmatprep.subr.mxu0 %v4166_v42 }
 0x30f   : > { %5516 = vmatprep.subr.mxu1 %v4133_v3  ;;  %5553 = vmatpush3.msra.mxu0 %v4150_v19  ;;  %v4935_v61 = vpop.f32.mrf.mxu1  ;;  %v4973_v36 = vpop.f32.mrf.mxu0 }
 0x310   : > { %5517 = vmatpush3.msra.mxu1 %v4117_v28  ;;  %5554 = vmatprep.subr.mxu0 %v4165_v33 }
 0x311   : > { %5518 = vmatprep.subr.mxu1 %v4132_v18  ;;  %5555 = vmatpush3.msra.mxu0 %v4149_v58  ;;  %v4974_v3 = vpop.f32.mrf.mxu0 }
 0x312   : > { %5519 = vmatpush3.msra.mxu1 %v4116_v6  ;;  %5556 = vmatprep.subr.mxu0 %v4164_v13  ;;  %v4975_v37 = vadd.f32 %v4974_v3, %v4973_v36 }
 0x313   : > { %5520 = vmatprep.subr.mxu1 %v4131_v63  ;;  %5557 = vmatpush3.msra.mxu0 %v4148_v15  ;;  %v5046_v19 = vpop.f32.mrf.mxu0 }
 0x314   : > { %5521 = vmatpush3.msra.mxu1 %v4115_v11  ;;  %5558 = vmatprep.subr.mxu0 %v4163_v62 }
 0x315   : > { %5522 = vmatprep.subr.mxu1 %v4130_v16  ;;  %5559 = vmatpush3.msra.mxu0 %v4147_v17  ;;  %v5047_v33 = vpop.f32.mrf.mxu0 }
 0x316   : > { %5523 = vmatpush3.msra.mxu1 %v4114_v20  ;;  %5560 = vmatprep.subr.mxu0 %v4162_v21 }
 0x317   : > { %5524 = vmatprep.subr.mxu1 %v4129_v22  ;;  %5561 = vmatpush3.msra.mxu0 %v4146_v23  ;;  %v5049_v58 = vpop.f32.mrf.mxu0 }
 0x318   : > { %5525 = vmatpush3.msra.mxu1 %v4113_v25  ;;  %5562 = vmatprep.subr.mxu0 %v4161_v10 }
 0x319   : > { %5526 = vmatprep.subr.mxu1 %v4128_v24  ;;  %5563 = vmatpush3.msra.mxu0 %v4145_v2 }
 0x31a   : > { %5527 = vmatpush3.msra.mxu1 %v4112_v26  ;;  %5564 = vmatprep.subr.mxu0 %v4160_v1 }
 0x31b   : > { %5528 = vmatprep.subr.mxu1 %v4127_v27  ;;  %5565 = vmatpush3.msra.mxu0 %v4144_v14 }
 0x31c   : > { %5529 = vmatpush3.msra.mxu1 %v4111_v46  ;;  %5566 = vmatprep.subr.mxu0 %v4159_v45 }
 0x31d   : > { %5530 = vmatprep.subr.mxu1 %v4126_v29  ;;  %5567 = vmatpush3.msra.mxu0 %v4143_v30 }
 0x31e   : > { %5531 = vmatpush3.msra.mxu1 %v4110_v52  ;;  %5568 = vmatprep.subr.mxu0 %v4158_v41 }
 0x31f   : > { %5532 = vmatprep.subr.mxu1 %v4125_v39  ;;  %5569 = vmatpush3.msra.mxu0 %v4142_v38 }
 0x320   : > { %5533 = vmatpush3.msra.mxu1 %v4109_v40  ;;  %5570 = vmatprep.subr.mxu0 %v4157_v12 }
 0x321   : > { %5534 = vmatprep.subr.mxu1 %v4124_v8  ;;  %5571 = vmatpush3.msra.mxu0 %v4141_v48 }
 0x322   : > { %5535 = vmatpush3.msra.mxu1 %v4108_v9  ;;  %5572 = vmatprep.subr.mxu0 %v4156_v49 }
 0x323   : > { %4240 = vmatmul.mubr.f32.gmra.mxu0 %v6416_v0  ;;  %5536 = vmatprep.subr.mxu1 %v4123_v50 }
 0x324   : > { %5573 = vmatpush3.msra.mxu0 %v4140_v44  ;;  %5537 = vmatpush3.msra.mxu1 %v4107_v53 }
 0x325   : > { %5574 = vmatprep.subr.mxu0 %v4155_v54  ;;  %5538 = vmatprep.subr.mxu1 %v4122_v51 }
 0x326   : > { %5575 = vmatpush3.msra.mxu0 %v4139_v34  ;;  %5539 = vmatpush3.msra.mxu1 %v4106_v55 }
 0x327   : > { %5576 = vmatprep.subr.mxu0 %v4154_v32  ;;  %4310 = vmatmul.mubr.f32.vlgmr.msra.gmra.mxu1 %v6368_v59  ;;  %v4936_v59 = vpop.f32.mrf.mxu1 }
 0x328   : > { %5577 = vmatpush3.msra.mxu0 %v4138_v56  ;;  %4384 = vmatprep.mubr.f32.mxu0 %v6416_v0  ;;  %v4934_v56 = vadd.f32 %v4933_v43, %v4932_v5 }
 0x329   : > { %4314 = vmatprep.mubr.f32.mxu1 %v4070_v57  ;;  %4385 = vmatmul.mubr.f32.vlgmr.msra.gmra.mxu0 %v5687_v4  ;;  %v5008_v42 = vpop.f32.mrf.mxu1  ;;  %v4972_v57 = vadd.f32 %v4971_v31, %v4970_v35  ;;  %v5048_v4 = vadd.f32 %v5047_v33, %v5046_v19 }
 0x32a   : > { %4389 = vmatprep.mubr.f32.mxu0 %v6416_v0  ;;  %v5050_v0 = vpop.f32.mrf.mxu0 }
 0x32b   : > { %4315 = vmatmul.mubr.f32.gmra.mxu1 %v4069_v7  ;;  %v5009_v28 = vpop.f32.mrf.mxu1  ;;  %v2419_v5 = vadd.f32 %v4972_v57, %v4934_v56  ;;  %v5051_v35 = vadd.f32 %v5050_v0, %v5049_v58  ;;  %v6517_v0 = vld [vmem:[#allocation16_spill] sm:$0xff] }
 0x32c   : > { %v5122_v63 = vpop.f32.mrf.mxu0 }
 0x32d   : > { %4390 = vmatmul.mubr.f32.gmra.mxu0 %v4071_v47  ;;  %v6427_v18 = vpop.f32.mrf.mxu1  ;;  %v4937_v47 = vadd.f32 %v4936_v59, %v4935_v61 }
 0x32e   : > { %6513 = vst [vmem:[#allocation18_spill] sm:$0xff] %v6427_v18  ;;  %v5123_v11 = vpop.f32.mrf.mxu0 }
 0x32f   : > { %v5012_v6 = vpop.f32.mrf.mxu1  ;;  %v2424_v33 = vadd.f32 %v4975_v37, %v4937_v47 }
 0x330   : > { %v5125_v16 = vpop.f32.mrf.mxu0 }
 0x331   : > { %v5084_v13 = vpop.f32.mrf.mxu1 }
 0x332   : > { %v5126_v21 = vpop.f32.mrf.mxu0 }
 0x333   : > { %v5085_v15 = vpop.f32.mrf.mxu1 }
 0x334   : > { %v5086_v55 = vadd.f32 %v5085_v15, %v5084_v13 }
 0x335   : > { %v5087_v62 = vpop.f32.mrf.mxu1  ;;  %v6516_v61 = vld [vmem:[#allocation18_spill] sm:$0xff] }
 0x336   : > { %v5198_v22 = vpop.f32.mrf.mxu0  ;;  %v2809_v60 = vadd.f32 %v5086_v55, %v5048_v4  ;;  %v5013_v3 = vadd.f32 %v5012_v6, %v6516_v61 }
 0x337   : > { %v5088_v17 = vpop.f32.mrf.mxu1 }
 0x338   : > { %v5199_v25 = vpop.f32.mrf.mxu0  ;;  %v5089_v18 = vadd.f32 %v5088_v17, %v5087_v62 }
 0x339   : > { %v5160_v20 = vpop.f32.mrf.mxu1  ;;  %v5200_v31 = vadd.f32 %v5199_v25, %v5198_v22 }
 0x33b   : > { %v5161_v23 = vpop.f32.mrf.mxu1  ;;  %v5201_v24 = vpop.f32.mrf.mxu0 }
 0x33c   : > { %v5162_v43 = vadd.f32 %v5161_v23, %v5160_v20 }
 0x33d   : > { %v5163_v10 = vpop.f32.mrf.mxu1  ;;  %v5202_v1 = vpop.f32.mrf.mxu0 }
 0x33e   : > { %v3200_v17 = vadd.f32 %v5200_v31, %v5162_v43  ;;  %v5203_v56 = vadd.f32 %v5202_v1, %v5201_v24 }
 0x33f   : > { %v5164_v2 = vpop.f32.mrf.mxu1 }
 0x340   : > { %v5165_v62 = vadd.f32 %v5164_v2, %v5163_v10 }
 0x342   : > { %v3205_v10 = vadd.f32 %v5203_v56, %v5165_v62 }
 0x358   : > { %v5236_v26 = vpop.f32.mrf.mxu1 }
 0x359   : > { %v5274_v27 = vpop.f32.mrf.mxu0 }
 0x35a   : > { %v5237_v14 = vpop.f32.mrf.mxu1 }
 0x35b   : > { %v5275_v46 = vpop.f32.mrf.mxu0 }
 0x35c   : > { %v5276_v4 = vadd.f32 %v5275_v46, %v5274_v27 }
 0x35e   : > { %v5239_v45 = vpop.f32.mrf.mxu1 }
 0x360   : > { %v5240_v30 = vpop.f32.mrf.mxu1 }
 0x378   : > { %v6429_v29 = vpop.f32.mrf.mxu0 }
 0x379   : > { %6514 = vst [vmem:[#allocation19_spill] sm:$0xff] %v6429_v29  ;;  %v5010_v29 = vadd.f32 %v5009_v28, %v5008_v42  ;;  %v2814_v28 = vadd.f32 %v5089_v18, %v5051_v35  ;;  %v5238_v42 = vadd.f32 %v5237_v14, %v5236_v26 }
 0x37a   : > { %v5278_v52 = vpop.f32.mrf.mxu0 }
 0x37b   : > { %v5312_v41 = vpop.f32.mrf.mxu1  ;;  %v2494_v59 = vadd.f32 %v5010_v29, %v2419_v5  ;;  %v2499_v29 = vadd.f32 %v5013_v3, %v2424_v33  ;;  %v3275_v6 = vadd.f32 %v5238_v42, %v3200_v17  ;;  %v4551_v3 = vld [vmem:[#allocation9] ss:$0 sm:$0xff] }
 0x37d   : > { %v5313_v38 = vpop.f32.mrf.mxu1  ;;  %v2502_v37 = vadd.f32 %v2494_v59, %v6517_v0 }
 0x37e   : > { %v5350_v39 = vpop.f32.mrf.mxu0  ;;  %v5314_v19 = vadd.f32 %v5313_v38, %v5312_v41 }
 0x380   : > { %v5351_v40 = vpop.f32.mrf.mxu0  ;;  %v3591_v57 = vadd.f32 %v5314_v19, %v5276_v4  ;;  %v6518_v46 = vld [vmem:[#allocation19_spill] sm:$0xff] }
 0x381   : > { %v5315_v12 = vpop.f32.mrf.mxu1  ;;  %v5352_v20 = vadd.f32 %v5351_v40, %v5350_v39 }
 0x383   : > { %v5316_v48 = vpop.f32.mrf.mxu1  ;;  %v3666_v24 = vadd.f32 %v5352_v20, %v3591_v57 }
 0x384   : > { %v6431_v8 = vpop.f32.mrf.mxu0  ;;  %v5317_v25 = vadd.f32 %v5316_v48, %v5315_v12 }
 0x385   : > { %6515 = vst [vmem:[#allocation20_spill] sm:$0xff] %v6431_v8  ;;  %v5124_v8 = vadd.f32 %v5123_v11, %v5122_v63  ;;  %v5127_v63 = vadd.f32 %v5126_v21, %v5125_v16  ;;  %v5279_v16 = vadd.f32 %v5278_v52, %v6518_v46 }
 0x386   : > { %v5354_v49 = vpop.f32.mrf.mxu0 }
 0x387   : > { %v2884_v36 = vadd.f32 %v5124_v8, %v2809_v60  ;;  %v5241_v60 = vadd.f32 %v5240_v30, %v5239_v45  ;;  %v2889_v21 = vadd.f32 %v5127_v63, %v2814_v28  ;;  %v3596_v41 = vadd.f32 %v5317_v25, %v5279_v16  ;;  %v6520_v8 = vld [vmem:[#allocation17_spill] sm:$0xff] }
 0x388   : > { %v2503_v48 = vadd.f32 %v2499_v29, %v6520_v8 }
 0x389   : > { %v2892_v14 = vadd.f32 %v2884_v36, %v2502_v37  ;;  %v3280_v30 = vadd.f32 %v5241_v60, %v3205_v10 }
 0x38a   : > { %v2893_v47 = vadd.f32 %v2889_v21, %v2503_v48 }
 0x38b   : > { %v3283_v45 = vadd.f32 %v3275_v6, %v2892_v14 }
 0x38c   : > { %v6519_v39 = vld [vmem:[#allocation20_spill] sm:$0xff] }
 0x38d   : > { %v5355_v38 = vadd.f32 %v5354_v49, %v6519_v39 }
 0x38f   : > { %v3671_v31 = vadd.f32 %v5355_v38, %v3596_v41 }
 0x3a0   : > { %v5388_v9 = vpop.f32.mrf.mxu1 }
 0x3a2   : > { %v5426_v50 = vpop.f32.mrf.mxu0  ;;  %v5389_v44 = vpop.f32.mrf.mxu1 }
 0x3a3   : > { %v5390_v23 = vadd.f32 %v5389_v44, %v5388_v9 }
 0x3a4   : > { %v5427_v53 = vpop.f32.mrf.mxu0 }
 0x3a5   : > { %v5428_v22 = vadd.f32 %v5427_v53, %v5426_v50 }
 0x3a7   : > { %v5391_v54 = vpop.f32.mrf.mxu1  ;;  %v5429_v51 = vpop.f32.mrf.mxu0  ;;  %v3982_v2 = vadd.f32 %v5428_v22, %v5390_v23 }
 0x3a9   : > { %v5392_v34 = vpop.f32.mrf.mxu1  ;;  %v5430_v7 = vpop.f32.mrf.mxu0 }
 0x3aa   : > { %v5393_v40 = vadd.f32 %v5392_v34, %v5391_v54  ;;  %v5431_v12 = vadd.f32 %v5430_v7, %v5429_v51  ;;  %v3284_v34 = vadd.f32 %v3280_v30, %v2893_v47 }
 0x3ac   : > { %v3987_v49 = vadd.f32 %v5431_v12, %v5393_v40  ;;  %v3675_v28 = vadd.f32 %v3671_v31, %v3284_v34 }
 0x3c4   : > { %v5464_v32 = vpop.f32.mrf.mxu1 }
 0x3c5   : > { %v5502_v13 = vpop.f32.mrf.mxu0 }
 0x3c6   : > { %v5465_v15 = vpop.f32.mrf.mxu1 }
 0x3c7   : > { %v5503_v55 = vpop.f32.mrf.mxu0  ;;  %v5466_v18 = vadd.f32 %v5465_v15, %v5464_v32  ;;  %v3674_v15 = vadd.f32 %v3666_v24, %v3283_v45 }
 0x3c8   : > { %v5504_v53 = vadd.f32 %v5503_v55, %v5502_v13 }
 0x3c9   : > { %v4057_v9 = vadd.f32 %v5466_v18, %v3982_v2 }
 0x3ca   : > { %v5467_v11 = vpop.f32.mrf.mxu1 }
 0x3cb   : > { %v4065_v7 = vadd.f32 %v4057_v9, %v3674_v15 }
 0x3cc   : > { %v5468_v26 = vpop.f32.mrf.mxu1 }
 0x3cd   : > { %v5469_v52 = vadd.f32 %v5468_v26, %v5467_v11 }
 0x3cf   : > { %v4062_v33 = vadd.f32 %v5469_v52, %v3987_v49 }
 0x3d1   : > { %v4066_v11 = vadd.f32 %v4062_v33, %v3675_v28 }
 0x3e3   : > { %v5505_v58 = vpop.f32.mrf.mxu0 }
 0x3e5   : > { %v5506_v27 = vpop.f32.mrf.mxu0 }
 0x3e6   : > { %v5507_v59 = vadd.f32 %v5506_v27, %v5505_v58 }
 0x3e7   : > { %v5540_v1 = vpop.f32.mrf.mxu1 }
 0x3e9   : > { %v5578_v50 = vpop.f32.mrf.mxu0  ;;  %v5541_v44 = vpop.f32.mrf.mxu1 }
 0x3ea   : > { %v5542_v32 = vadd.f32 %v5541_v44, %v5540_v1 }
 0x3eb   : > { %v5579_v5 = vpop.f32.mrf.mxu0  ;;  %v5543_v43 = vpop.f32.mrf.mxu1 }
 0x3ec   : > { %v4312_v54 = vadd.f32 %v5542_v32, %v5504_v53  ;;  %v5580_v51 = vadd.f32 %v5579_v5, %v5578_v50 }
 0x3ed   : > { %v5581_v35 = vpop.f32.mrf.mxu0  ;;  %v5544_v19 = vpop.f32.mrf.mxu1 }
 0x3ee   : > { %v4387_v13 = vadd.f32 %v5580_v51, %v4312_v54  ;;  %v5545_v61 = vadd.f32 %v5544_v19, %v5543_v43 }
 0x3ef   : > { %v5582_v36 = vpop.f32.mrf.mxu0 }
 0x3f0   : > { %v4395_v42 = vadd.f32 %v4387_v13, %v4065_v7  ;;  %v4317_v4 = vadd.f32 %v5545_v61, %v5507_v59  ;;  %v5583_v55 = vadd.f32 %v5582_v36, %v5581_v35 }
 0x3f2   : > { %v4404_v63 = vadd.f32 %v4551_v3, %v4395_v42  ;;  %v4392_v17 = vadd.f32 %v5583_v55, %v4317_v4 }
 0x3f4   : > { %4406 = vst [vmem:[%s272_s8] sm:$0xff] %v4404_v63  ;;  %v4396_v62 = vadd.f32 %v4392_v17, %v4066_v11 }
 0x3f6   : > { %v4405_v56 = vadd.f32 %v4551_v3, %v4396_v62 }
 0x3f8   : > { %4407 = vst [vmem:[%s272_s8 + $0x8] sm:$0xff] %v4405_v56 }
 0x3f9   : > { %5805 = shalt.err (!%p5802_p4)
}
 0x3fa   : > { %s5806_s10 = scalar_lea.hbm %s6445_s15, 256  ;;  %s5810_s26 = scalar_lea.hbm %s6496_s5, 512 }
 0x3fb   : > { %p5807_p13 = scmp.ne.s32.totalorder %s6445_s15, %s5806_s10  ;;  %p5811_p6 = scmp.lt.s32.totalorder %s6445_s15, %s6496_s5 }
 0x3fc   : > { %p5812_p12 = scmp.lt.s32.totalorder %s5810_s26, %s5806_s10 }
 0x3fd   : > { %p5808_p7 = pnand %p5807_p13, %p6521_p11 }
 0x3fe   : > { %p5813_p10 = por %p5812_p12, %p5811_p6 }
 0x3ff   : > { %p5809_p5 = pneg %p5808_p7 }
 0x401   : > { %p5814_p8 = pnand %p5813_p10, %p5809_p5 }
 0x403   : > { %5817 = shalt.err (!%p5814_p8)
}
 0x404   : > { %s5876_s8 = smov 128   ;;  %s5877_s13 = smov 8  }
 0x405   : > { %5601 = dma.vmem_to_hbm [thread:$0]  (%p6521_p11), %s6447_s11, 256, %s6445_s15, %s6451_s16, %s5876_s8, %s5876_s8, %s5877_s13  }
 0x406 PF: > { %p5628_p0 = scmp.ge.s32.totalorder %s5864_s21, 2  ;;  %s4437_s9 = sand.u32 1, %s5852_s18  }
 0x407   : > { %p6522_p1 = scmp.ne.s32.totalorder %s6501_s29, 0  ;;  %s4438_s14 = scalar_lea.sflag [#allocation5], %s4437_s9 }
 0x409   : > { %p5617_p2 = pnand %p5628_p0, %p6522_p1 }
 0x40b   : > { %p5618_p9 = pneg %p5617_p2 }
 0x40d   : > { %5847 = dma.done.wait (%p5618_p9), %s4438_s14, 256  }
 0x40e   : > { %5849 = vsyncadd (%p5618_p9), %s4438_s14, 4294967040  ;;  %p18_p3 = scmp.ge.s32.totalorder %s5933_s24, 4   ;;  %s6523_s18 = smov %s5856_s19 }
 0x40f   : > { %s6524_s19 = smov %s5860_s20  ;;  %s6525_s20 = smov %s5944_s27 }
 0x410   : > { %s6526_s21 = smov %s5933_s24  ;;  %20 = sbr.rel (!%p18_p3) target bundleno = 6 (0x6), region = 102 }
 0x415   :  { %4443 = vsyncpa [#allocation4], 1 }
 0x416   :  { %4445 = vsyncpa [#allocation4 + $0x1], 1 }
 0x417   :  { %4446 = vsyncpa [#allocation7], 1 }
 0x418   :  { %4447 = vsyncpa [#allocation10], 1 }
 0x419   :  { %4448 = vsyncpa [#allocation5], 1 }
 0x41a   :  { %4450 = vsyncpa [#allocation5 + $0x1], 1 }

</bundles_post_ra>
